<compile_context>
chip_gen: v5e
topology: v5e:2x2
jax: 0.10.0
libtpu: 0.0.40
codegen_flags: <defaults>
</compile_context>

<pallas_src>
import numpy as np
import jax
import jax.numpy as jnp
from jax import lax
from jax.experimental import pallas as pl
from jax.experimental.pallas import tpu as pltpu


def _round_up(x, m):
    return ((x + m - 1) // m) * m


# --------------------- conv + 2x2 maxpool + bias + ReLU ----------------------

def _conv_pool_kernel(p_ref, w_ref, b_ref, o_ref):
    # p_ref: (1, Fp, 4*nc*S)  lane index = p*(nc*S) + n*S + s
    # w_ref: (Cout, Fp), b_ref: (Cout, 1), o_ref: (1, Cout, nc*S)
    g = o_ref.shape[-1]                                   # nc*S (multiple of 128)
    # One MXU GEMM for the whole chunk.
    y = jnp.dot(w_ref[...], p_ref[0],
                preferred_element_type=jnp.float32)       # (Cout, 4*nc*S)
    # 2x2 max-pool over four lane-aligned groups of width g.
    m = jnp.maximum(jnp.maximum(y[:, 0:g], y[:, g:2 * g]),
                    jnp.maximum(y[:, 2 * g:3 * g], y[:, 3 * g:4 * g]))
    # Bias + ReLU after the pool (exact: bias is per-channel, max/ReLU monotone).
    o_ref[0] = jnp.maximum(m + b_ref[...], 0.0)           # lane-dense store


def conv_relu_pool(x_nchw, w_oihw, b, *, n_chunk=8):
    """3x3 'SAME' conv (stride 1) + ReLU + 2x2 max-pool.

    x_nchw: (N, Cin, H, W), w_oihw: (Cout, Cin, 3, 3), b: (Cout,)
    returns (N, Cout, Ho*Wo)  (NCHW with spatial flattened ho*Wo + wo).
    """
    N, Cin, H, W = x_nchw.shape
    Cout = w_oihw.shape[0]
    Ho, Wo = H // 2, W // 2
    S, F = Ho * Wo, 9 * Cin
    Fp = _round_up(F, 8)                                  # sublane-aligned contraction

    # Chunk size: keep grid >= 2 so both v7x TCs get work; pad the tail chunk.
    nc = max(1, min(n_chunk, N // 2 if N >= 2 else 1))
    n_chunks = -(-N // nc)
    Np = n_chunks * nc

    # im2col (XLA data-movement glue): tap index f = ci*9 + ky*3 + kx matches
    # the OIHW weight flatten; pool offset p = dy*2 + dx.
    xp = jnp.pad(x_nchw.astype(jnp.float32), ((0, 0), (0, 0), (1, 1), (1, 1)))
    per_offset = []
    for p in range(4):
        dy, dx = p // 2, p % 2
        taps = []
        for ky in range(3):
            for kx in range(3):
                r0, c0 = dy + ky, dx + kx
                taps.append(xp[:, :, r0:r0 + 2 * Ho:2, c0:c0 + 2 * Wo:2])
        t = jnp.stack(taps, axis=2)                       # (N, Cin, 9, Ho, Wo)
        per_offset.append(t.reshape(N, F, S))
    tall = jnp.stack(per_offset, axis=0)                  # (4, N, F, S)
    if Np != N:
        tall = jnp.pad(tall, ((0, 0), (0, Np - N), (0, 0), (0, 0)))
    if Fp != F:
        tall = jnp.pad(tall, ((0, 0), (0, 0), (0, Fp - F), (0, 0)))
    # (4, Np, Fp, S) -> (chunks, Fp, p, n_local, s) -> (chunks, Fp, 4*nc*S)
    tall = tall.reshape(4, n_chunks, nc, Fp, S)
    patches = tall.transpose(1, 3, 0, 2, 4).reshape(n_chunks, Fp, 4 * nc * S)

    wmat = w_oihw.reshape(Cout, F).astype(jnp.float32)
    if Fp != F:
        wmat = jnp.pad(wmat, ((0, 0), (0, Fp - F)))
    bmat = b.reshape(Cout, 1).astype(jnp.float32)

    out = pl.pallas_call(
        _conv_pool_kernel,
        out_shape=jax.ShapeDtypeStruct((n_chunks, Cout, nc * S), jnp.float32),
        grid_spec=pltpu.PrefetchScalarGridSpec(
            num_scalar_prefetch=0,
            grid=(n_chunks,),
            in_specs=[
                pl.BlockSpec((1, Fp, 4 * nc * S), lambda i: (i, 0, 0)),
                pl.BlockSpec((Cout, Fp), lambda i: (0, 0)),
                pl.BlockSpec((Cout, 1), lambda i: (0, 0)),
            ],
            out_specs=pl.BlockSpec((1, Cout, nc * S), lambda i: (i, 0, 0)),
        ),
        compiler_params=pltpu.CompilerParams(
            dimension_semantics=("parallel",)),
    )(patches, wmat, bmat)

    # Image-major reorder (XLA glue; kernel stores were already lane-dense).
    y = out.reshape(n_chunks, Cout, nc, S).transpose(0, 2, 1, 3)
    return y.reshape(Np, Cout, S)[:N]


# --------------------- hoisted input projection (tiled GEMM) -----------------

def _matmul_kernel(a_ref, b_ref, o_ref, acc_ref):
    @pl.when(pl.program_id(2) == 0)
    def _():
        acc_ref[...] = jnp.zeros_like(acc_ref)

    acc_ref[...] += jnp.dot(a_ref[...], b_ref[...],
                            preferred_element_type=jnp.float32)

    @pl.when(pl.program_id(2) == pl.num_programs(2) - 1)
    def _():
        o_ref[...] = acc_ref[...].astype(o_ref.dtype)


def matmul(a, b, *, tm=256, tn=512, tk=512):
    """a: (M, K) @ b: (K, N) -> (M, N) f32.  M/N/K padded to tile multiples."""
    M, K = a.shape
    K2, N = b.shape
    assert K == K2
    tm = min(tm, _round_up(M, 8))
    tn = min(tn, _round_up(N, 128))
    tk = min(tk, _round_up(K, 128))
    Mp, Kp, Nq = _round_up(M, tm), _round_up(K, tk), _round_up(N, tn)
    if Mp != M or Kp != K:
        a = jnp.pad(a, ((0, Mp - M), (0, Kp - K)))
    if Kp != K or Nq != N:
        b = jnp.pad(b, ((0, Kp - K), (0, Nq - N)))

    out = pl.pallas_call(
        _matmul_kernel,
        out_shape=jax.ShapeDtypeStruct((Mp, Nq), jnp.float32),
        grid_spec=pltpu.PrefetchScalarGridSpec(
            num_scalar_prefetch=0,
            grid=(Mp // tm, Nq // tn, Kp // tk),
            in_specs=[
                pl.BlockSpec((tm, tk), lambda m, n, k: (m, k)),
                pl.BlockSpec((tk, tn), lambda m, n, k: (k, n)),
            ],
            out_specs=pl.BlockSpec((tm, tn), lambda m, n, k: (m, n)),
            scratch_shapes=[pltpu.VMEM((tm, tn), jnp.float32)],
        ),
        compiler_params=pltpu.CompilerParams(
            dimension_semantics=("parallel", "parallel", "arbitrary")),
    )(a, b)
    return out[:M, :N]


# --------------------- fused LSTM recurrence + final Linear ------------------

def _lstm_fc_kernel(gx_ref, whh_ref, b_ref, wfc_ref, bfc_ref, o_ref):
    # gx_ref: (T, B, 4H) precomputed x@W_ih; whh_ref: (H, 4H); b_ref: (1, 4H)
    # wfc_ref: (H, NC); bfc_ref: (1, NC); o_ref: (B, NC)
    T, B, _ = gx_ref.shape
    Hn = whh_ref.shape[0]
    whh = whh_ref[...]
    bias = b_ref[...]                                     # broadcasts over B

    def step(t, carry):
        h, c = carry
        gates = (gx_ref[t]
                 + jnp.dot(h, whh, preferred_element_type=jnp.float32)
                 + bias)                                  # (B, 4H)
        i = jax.nn.sigmoid(gates[:, 0:Hn])
        f = jax.nn.sigmoid(gates[:, Hn:2 * Hn])
        g = jnp.tanh(gates[:, 2 * Hn:3 * Hn])
        o = jax.nn.sigmoid(gates[:, 3 * Hn:4 * Hn])
        c = f * c + i * g
        h = o * jnp.tanh(c)
        return (h, c)

    zeros = jnp.zeros((B, Hn), jnp.float32)
    h, _ = lax.fori_loop(0, T, step, (zeros, zeros), unroll=True)
    o_ref[...] = (jnp.dot(h, wfc_ref[...], preferred_element_type=jnp.float32)
                  + bfc_ref[...]).astype(o_ref.dtype)


def lstm_fc(gx, whh_t, b_lstm, wfc_t, bfc):
    """gx: (T, B, 4H) precomputed input projection -> (B, num_classes)."""
    T, B, G = gx.shape
    Hn = whh_t.shape[0]
    NC = wfc_t.shape[1]
    return pl.pallas_call(
        _lstm_fc_kernel,
        out_shape=jax.ShapeDtypeStruct((B, NC), jnp.float32),
        grid_spec=pltpu.PrefetchScalarGridSpec(
            num_scalar_prefetch=0,
            grid=(1,),
            in_specs=[
                pl.BlockSpec((T, B, G), lambda i: (0, 0, 0)),
                pl.BlockSpec((Hn, G), lambda i: (0, 0)),
                pl.BlockSpec((1, G), lambda i: (0, 0)),
                pl.BlockSpec((Hn, NC), lambda i: (0, 0)),
                pl.BlockSpec((1, NC), lambda i: (0, 0)),
            ],
            out_specs=pl.BlockSpec((B, NC), lambda i: (0, 0)),
        ),
        compiler_params=pltpu.CompilerParams(
            dimension_semantics=("arbitrary",)),   # sequential time loop inside
    )(gx, whh_t, b_lstm, wfc_t, bfc)


# ----------------------------- full forward ----------------------------------

def cnnrnn_forward(x, p):
    B, T, C, H, W = x.shape
    N = B * T
    xn = x.reshape(N, C, H, W).astype(jnp.float32)                # NCHW

    y1 = conv_relu_pool(xn, p["w1"], p["b1"])                     # (N, 32, 256)
    y1 = y1.reshape(N, p["w1"].shape[0], H // 2, W // 2)          # NCHW
    y2 = conv_relu_pool(y1, p["w2"], p["b2"])                     # (N, 64, 64)

    # (N, Cout, S) is already PyTorch's c*64 + h*8 + w flatten order.
    feat = y2.reshape(N, -1)                                      # (N, 4096)

    # Hoisted LSTM input projection: one batched GEMM over all time steps.
    gx = matmul(feat, p["wih_t"])                                 # (N, 4H)
    gx = gx.reshape(B, T, -1).transpose(1, 0, 2)                  # (T, B, 4H)

    return lstm_fc(gx, p["whh_t"], p["b_lstm"], p["wfc_t"], p["bfc"])


# ----------------------------- pure-JAX reference ----------------------------

def reference_forward(x, p):
    B, T, C, H, W = x.shape
    xn = x.reshape(B * T, C, H, W).astype(jnp.float32)

    def conv(xv, w, b):
        y = lax.conv_general_dilated(
            xv, w, (1, 1), "SAME",
            dimension_numbers=("NCHW", "OIHW", "NCHW"),
            precision=lax.Precision.HIGHEST)
        return jax.nn.relu(y + b[None, :, None, None])

    def pool(xv):
        return lax.reduce_window(xv, -jnp.inf, lax.max,
                                 (1, 1, 2, 2), (1, 1, 2, 2), "VALID")

    y = pool(conv(xn, p["w1"], p["b1"]))
    y = pool(conv(y, p["w2"], p["b2"]))
    feat = y.reshape(B, T, -1)
    Hn = p["whh_t"].shape[0]

    def step(carry, xt):
        h, c = carry
        gates = xt @ p["wih_t"] + h @ p["whh_t"] + p["b_lstm"]
        i = jax.nn.sigmoid(gates[:, :Hn])
        f = jax.nn.sigmoid(gates[:, Hn:2 * Hn])
        g = jnp.tanh(gates[:, 2 * Hn:3 * Hn])
        o = jax.nn.sigmoid(gates[:, 3 * Hn:4 * Hn])
        c = f * c + i * g
        h = o * jnp.tanh(c)
        return (h, c), None

    h0 = jnp.zeros((B, Hn), jnp.float32)
    (h, _), _ = lax.scan(step, (h0, h0), feat.transpose(1, 0, 2))
    return h @ p["wfc_t"] + p["bfc"]


# ----------------------------- param init ------------------------------------

def init_params(key, num_classes):
    ks = jax.random.split(key, 8)
    Hn, D = 128, 64 * 8 * 8

    def rnd(k, shape, scale):
        return jax.random.normal(k, shape, jnp.float32) * scale

    return dict(
        w1=rnd(ks[0], (32, 3, 3, 3), 0.10),        # OIHW, like PyTorch
        b1=rnd(ks[1], (32,), 0.10),
        w2=rnd(ks[2], (64, 32, 3, 3), 0.05),
        b2=rnd(ks[3], (64,), 0.05),
        wih_t=rnd(ks[4], (D, 4 * Hn), 0.01),       # W_ih^T
        whh_t=rnd(ks[5], (Hn, 4 * Hn), 0.05),      # W_hh^T
        b_lstm=rnd(ks[6], (1, 4 * Hn), 0.05),      # b_ih + b_hh combined
        wfc_t=rnd(ks[7], (Hn, num_classes), 0.10),
        bfc=jnp.zeros((1, num_classes), jnp.float32),
    )


if __name__ == "__main__":
    key = jax.random.PRNGKey(0)
    kx, kp = jax.random.split(key)
    num_classes = 10
    B, T, C, H, W = 2, 4, 3, 32, 32      # H=W=32 so flattened CNN dim = 64*8*8
    x = jax.random.normal(kx, (B, T, C, H, W), jnp.float32)
    params = init_params(kp, num_classes)

    out = jax.jit(cnnrnn_forward)(x, params)
    out = jax.block_until_ready(out)
    assert out.shape == (B, num_classes)

    ref = reference_forward(x, params)
    np.testing.assert_allclose(np.asarray(out), np.asarray(ref),
                               rtol=5e-3, atol=5e-3)
    print("KERNEL_OK")
</pallas_src>

<mosaic_0001>
module attributes {stable_mosaic.version = 11 : i64} {
  func.func @_conv_pool_kernel(%arg0: i32, %arg1: memref<1x32x4096xf32, #tpu.memory_space<vmem>>, %arg2: memref<32x32xf32, #tpu.memory_space<vmem>>, %arg3: memref<32x1xf32, #tpu.memory_space<vmem>>, %arg4: memref<1x32x1024xf32, #tpu.memory_space<vmem>>) attributes {dimension_semantics = [#tpu.dimension_semantics<parallel>], iteration_bounds = array<i64: 2>, scalar_prefetch = 0 : i64, scratch_operands = 0 : i64, tpu.core_type = #tpu.core_type<tc>, window_params = [{transform_indices = @transform_0, window_bounds = array<i64: 1, 32, 4096>}, {pipeline_mode = #tpu.pipeline_mode<synchronous>, transform_indices = @transform_1, window_bounds = array<i64: 32, 32>}, {pipeline_mode = #tpu.pipeline_mode<synchronous>, transform_indices = @transform_2, window_bounds = array<i64: 32, 1>}, {transform_indices = @transform_3, window_bounds = array<i64: 1, 32, 1024>}]} {
    %c0 = arith.constant 0 : index
    %c0_0 = arith.constant 0 : index
    %0 = vector.load %arg2[%c0, %c0_0] : memref<32x32xf32, #tpu.memory_space<vmem>>, vector<32x32xf32>
    %c0_1 = arith.constant 0 : index
    %c0_2 = arith.constant 0 : index
    %c0_3 = arith.constant 0 : index
    %1 = vector.load %arg1[%c0_1, %c0_2, %c0_3] : memref<1x32x4096xf32, #tpu.memory_space<vmem>>, vector<1x32x4096xf32>
    %2 = vector.shape_cast %1 : vector<1x32x4096xf32> to vector<32x4096xf32>
    %cst = arith.constant dense<0.000000e+00> : vector<32x4096xf32>
    %3 = tpu.matmul %0, %2, %cst {dimension_numbers = #tpu.dot_dimension_numbers<[1], [0], [0], [1], [0, 0, 1, 1], [], []>} : vector<32x32xf32>, vector<32x4096xf32>, vector<32x4096xf32> -> vector<32x4096xf32>
    %4 = vector.extract_strided_slice %3 {offsets = [0, 0], sizes = [32, 1024], strides = [1, 1]} : vector<32x4096xf32> to vector<32x1024xf32>
    %5 = vector.extract_strided_slice %3 {offsets = [0, 1024], sizes = [32, 1024], strides = [1, 1]} : vector<32x4096xf32> to vector<32x1024xf32>
    %6 = arith.maximumf %4, %5 : vector<32x1024xf32>
    %7 = vector.extract_strided_slice %3 {offsets = [0, 2048], sizes = [32, 1024], strides = [1, 1]} : vector<32x4096xf32> to vector<32x1024xf32>
    %8 = vector.extract_strided_slice %3 {offsets = [0, 3072], sizes = [32, 1024], strides = [1, 1]} : vector<32x4096xf32> to vector<32x1024xf32>
    %9 = arith.maximumf %7, %8 : vector<32x1024xf32>
    %10 = arith.maximumf %6, %9 : vector<32x1024xf32>
    %c0_4 = arith.constant 0 : index
    %c0_5 = arith.constant 0 : index
    %11 = vector.load %arg3[%c0_4, %c0_5] : memref<32x1xf32, #tpu.memory_space<vmem>>, vector<32x1xf32>
    %12 = vector.broadcast %11 : vector<32x1xf32> to vector<32x1024xf32>
    %13 = arith.addf %10, %12 : vector<32x1024xf32>
    %cst_6 = arith.constant 0.000000e+00 : f32
    %14 = vector.broadcast %cst_6 : f32 to vector<32x1024xf32>
    %15 = arith.maximumf %13, %14 : vector<32x1024xf32>
    %c0_7 = arith.constant 0 : index
    %c0_8 = arith.constant 0 : index
    %c0_9 = arith.constant 0 : index
    %16 = vector.load %arg4[%c0_7, %c0_8, %c0_9] : memref<1x32x1024xf32, #tpu.memory_space<vmem>>, vector<1x32x1024xf32>
    %17 = vector.shape_cast %16 : vector<1x32x1024xf32> to vector<32x1024xf32>
    %18 = vector.shape_cast %15 : vector<32x1024xf32> to vector<1x32x1024xf32>
    tpu.vector_store %arg4[%c0_7, %c0_8, %c0_9], %18 {strides = array<i32>} : memref<1x32x1024xf32, #tpu.memory_space<vmem>>, vector<1x32x1024xf32>,
    return
  }
  func.func @transform_0(%arg0: i32) -> (i32, i32, i32) {
    %c0_i32 = arith.constant 0 : i32
    %c0_i32_0 = arith.constant 0 : i32
    %c0_i32_1 = arith.constant 0 : i32
    return %arg0, %c0_i32, %c0_i32_0 : i32, i32, i32
  }
  func.func @transform_1(%arg0: i32) -> (i32, i32) {
    %c0_i32 = arith.constant 0 : i32
    %c0_i32_0 = arith.constant 0 : i32
    %c0_i32_1 = arith.constant 0 : i32
    return %c0_i32, %c0_i32_0 : i32, i32
  }
  func.func @transform_2(%arg0: i32) -> (i32, i32) {
    %c0_i32 = arith.constant 0 : i32
    %c0_i32_0 = arith.constant 0 : i32
    %c0_i32_1 = arith.constant 0 : i32
    return %c0_i32, %c0_i32_0 : i32, i32
  }
  func.func @transform_3(%arg0: i32) -> (i32, i32, i32) {
    %c0_i32 = arith.constant 0 : i32
    %c0_i32_0 = arith.constant 0 : i32
    %c0_i32_1 = arith.constant 0 : i32
    return %arg0, %c0_i32, %c0_i32_0 : i32, i32, i32
  }
}

module attributes {stable_mosaic.version = 11 : i64} {
  func.func @_conv_pool_kernel(%arg0: i32, %arg1: memref<1x288x1024xf32, #tpu.memory_space<vmem>>, %arg2: memref<64x288xf32, #tpu.memory_space<vmem>>, %arg3: memref<64x1xf32, #tpu.memory_space<vmem>>, %arg4: memref<1x64x256xf32, #tpu.memory_space<vmem>>) attributes {dimension_semantics = [#tpu.dimension_semantics<parallel>], iteration_bounds = array<i64: 2>, scalar_prefetch = 0 : i64, scratch_operands = 0 : i64, tpu.core_type = #tpu.core_type<tc>, window_params = [{transform_indices = @transform_0, window_bounds = array<i64: 1, 288, 1024>}, {pipeline_mode = #tpu.pipeline_mode<synchronous>, transform_indices = @transform_1, window_bounds = array<i64: 64, 288>}, {pipeline_mode = #tpu.pipeline_mode<synchronous>, transform_indices = @transform_2, window_bounds = array<i64: 64, 1>}, {transform_indices = @transform_3, window_bounds = array<i64: 1, 64, 256>}]} {
    %c0 = arith.constant 0 : index
    %c0_0 = arith.constant 0 : index
    %0 = vector.load %arg2[%c0, %c0_0] : memref<64x288xf32, #tpu.memory_space<vmem>>, vector<64x288xf32>
    %c0_1 = arith.constant 0 : index
    %c0_2 = arith.constant 0 : index
    %c0_3 = arith.constant 0 : index
    %1 = vector.load %arg1[%c0_1, %c0_2, %c0_3] : memref<1x288x1024xf32, #tpu.memory_space<vmem>>, vector<1x288x1024xf32>
    %2 = vector.shape_cast %1 : vector<1x288x1024xf32> to vector<288x1024xf32>
    %cst = arith.constant dense<0.000000e+00> : vector<64x1024xf32>
    %3 = tpu.matmul %0, %2, %cst {dimension_numbers = #tpu.dot_dimension_numbers<[1], [0], [0], [1], [0, 0, 1, 1], [], []>} : vector<64x288xf32>, vector<288x1024xf32>, vector<64x1024xf32> -> vector<64x1024xf32>
    %4 = vector.extract_strided_slice %3 {offsets = [0, 0], sizes = [64, 256], strides = [1, 1]} : vector<64x1024xf32> to vector<64x256xf32>
    %5 = vector.extract_strided_slice %3 {offsets = [0, 256], sizes = [64, 256], strides = [1, 1]} : vector<64x1024xf32> to vector<64x256xf32>
    %6 = arith.maximumf %4, %5 : vector<64x256xf32>
    %7 = vector.extract_strided_slice %3 {offsets = [0, 512], sizes = [64, 256], strides = [1, 1]} : vector<64x1024xf32> to vector<64x256xf32>
    %8 = vector.extract_strided_slice %3 {offsets = [0, 768], sizes = [64, 256], strides = [1, 1]} : vector<64x1024xf32> to vector<64x256xf32>
    %9 = arith.maximumf %7, %8 : vector<64x256xf32>
    %10 = arith.maximumf %6, %9 : vector<64x256xf32>
    %c0_4 = arith.constant 0 : index
    %c0_5 = arith.constant 0 : index
    %11 = vector.load %arg3[%c0_4, %c0_5] : memref<64x1xf32, #tpu.memory_space<vmem>>, vector<64x1xf32>
    %12 = vector.broadcast %11 : vector<64x1xf32> to vector<64x256xf32>
    %13 = arith.addf %10, %12 : vector<64x256xf32>
    %cst_6 = arith.constant 0.000000e+00 : f32
    %14 = vector.broadcast %cst_6 : f32 to vector<64x256xf32>
    %15 = arith.maximumf %13, %14 : vector<64x256xf32>
    %c0_7 = arith.constant 0 : index
    %c0_8 = arith.constant 0 : index
    %c0_9 = arith.constant 0 : index
    %16 = vector.load %arg4[%c0_7, %c0_8, %c0_9] : memref<1x64x256xf32, #tpu.memory_space<vmem>>, vector<1x64x256xf32>
    %17 = vector.shape_cast %16 : vector<1x64x256xf32> to vector<64x256xf32>
    %18 = vector.shape_cast %15 : vector<64x256xf32> to vector<1x64x256xf32>
    tpu.vector_store %arg4[%c0_7, %c0_8, %c0_9], %18 {strides = array<i32>} : memref<1x64x256xf32, #tpu.memory_space<vmem>>, vector<1x64x256xf32>,
    return
  }
  func.func @transform_0(%arg0: i32) -> (i32, i32, i32) {
    %c0_i32 = arith.constant 0 : i32
    %c0_i32_0 = arith.constant 0 : i32
    %c0_i32_1 = arith.constant 0 : i32
    return %arg0, %c0_i32, %c0_i32_0 : i32, i32, i32
  }
  func.func @transform_1(%arg0: i32) -> (i32, i32) {
    %c0_i32 = arith.constant 0 : i32
    %c0_i32_0 = arith.constant 0 : i32
    %c0_i32_1 = arith.constant 0 : i32
    return %c0_i32, %c0_i32_0 : i32, i32
  }
  func.func @transform_2(%arg0: i32) -> (i32, i32) {
    %c0_i32 = arith.constant 0 : i32
    %c0_i32_0 = arith.constant 0 : i32
    %c0_i32_1 = arith.constant 0 : i32
    return %c0_i32, %c0_i32_0 : i32, i32
  }
  func.func @transform_3(%arg0: i32) -> (i32, i32, i32) {
    %c0_i32 = arith.constant 0 : i32
    %c0_i32_0 = arith.constant 0 : i32
    %c0_i32_1 = arith.constant 0 : i32
    return %arg0, %c0_i32, %c0_i32_0 : i32, i32, i32
  }
}

module attributes {stable_mosaic.version = 11 : i64} {
  func.func @_matmul_kernel(%arg0: i32, %arg1: i32, %arg2: i32, %arg3: memref<8x512xf32, #tpu.memory_space<vmem>>, %arg4: memref<512x512xf32, #tpu.memory_space<vmem>>, %arg5: memref<8x512xf32, #tpu.memory_space<vmem>>, %arg6: memref<8x512xf32, #tpu.memory_space<vmem>>) attributes {dimension_semantics = [#tpu.dimension_semantics<parallel>, #tpu.dimension_semantics<parallel>, #tpu.dimension_semantics<arbitrary>], iteration_bounds = array<i64: 1, 1, 8>, scalar_prefetch = 0 : i64, scratch_operands = 1 : i64, tpu.core_type = #tpu.core_type<tc>, window_params = [{transform_indices = @transform_0, window_bounds = array<i64: 8, 512>}, {transform_indices = @transform_1, window_bounds = array<i64: 512, 512>}, {transform_indices = @transform_2, window_bounds = array<i64: 8, 512>}]} {
    %c0_i32 = arith.constant 0 : i32
    %0 = arith.cmpi eq, %arg2, %c0_i32 : i32
    %1 = arith.extui %0 : i1 to i32
    %c0_i32_0 = arith.constant 0 : i32
    %2 = arith.cmpi ne, %1, %c0_i32_0 : i32
    scf.if %2 {
      %cst_9 = arith.constant 0.000000e+00 : f32
      %12 = vector.broadcast %cst_9 : f32 to vector<8x512xf32>
      %c0_10 = arith.constant 0 : index
      %c0_11 = arith.constant 0 : index
      %13 = vector.load %arg6[%c0_10, %c0_11] : memref<8x512xf32, #tpu.memory_space<vmem>>, vector<8x512xf32>
      tpu.vector_store %arg6[%c0_10, %c0_11], %12 {strides = array<i32>} : memref<8x512xf32, #tpu.memory_space<vmem>>, vector<8x512xf32>,
    } else {
    }
    %c0 = arith.constant 0 : index
    %c0_1 = arith.constant 0 : index
    %3 = vector.load %arg6[%c0, %c0_1] : memref<8x512xf32, #tpu.memory_space<vmem>>, vector<8x512xf32>
    %c0_2 = arith.constant 0 : index
    %c0_3 = arith.constant 0 : index
    %4 = vector.load %arg3[%c0_2, %c0_3] : memref<8x512xf32, #tpu.memory_space<vmem>>, vector<8x512xf32>
    %c0_4 = arith.constant 0 : index
    %c0_5 = arith.constant 0 : index
    %5 = vector.load %arg4[%c0_4, %c0_5] : memref<512x512xf32, #tpu.memory_space<vmem>>, vector<512x512xf32>
    %cst = arith.constant dense<0.000000e+00> : vector<8x512xf32>
    %6 = tpu.matmul %4, %5, %cst {dimension_numbers = #tpu.dot_dimension_numbers<[1], [0], [0], [1], [0, 0, 1, 1], [], []>} : vector<8x512xf32>, vector<512x512xf32>, vector<8x512xf32> -> vector<8x512xf32>
    %7 = arith.addf %3, %6 : vector<8x512xf32>
    %c0_6 = arith.constant 0 : index
    %c0_7 = arith.constant 0 : index
    %8 = vector.load %arg6[%c0_6, %c0_7] : memref<8x512xf32, #tpu.memory_space<vmem>>, vector<8x512xf32>
    tpu.vector_store %arg6[%c0_6, %c0_7], %7 {strides = array<i32>} : memref<8x512xf32, #tpu.memory_space<vmem>>, vector<8x512xf32>,
    %c7_i32 = arith.constant 7 : i32
    %9 = arith.cmpi eq, %arg2, %c7_i32 : i32
    %10 = arith.extui %9 : i1 to i32
    %c0_i32_8 = arith.constant 0 : i32
    %11 = arith.cmpi ne, %10, %c0_i32_8 : i32
    scf.if %11 {
      %c0_9 = arith.constant 0 : index
      %c0_10 = arith.constant 0 : index
      %12 = vector.load %arg6[%c0_9, %c0_10] : memref<8x512xf32, #tpu.memory_space<vmem>>, vector<8x512xf32>
      %c0_11 = arith.constant 0 : index
      %c0_12 = arith.constant 0 : index
      %13 = vector.load %arg5[%c0_11, %c0_12] : memref<8x512xf32, #tpu.memory_space<vmem>>, vector<8x512xf32>
      tpu.vector_store %arg5[%c0_11, %c0_12], %12 {strides = array<i32>} : memref<8x512xf32, #tpu.memory_space<vmem>>, vector<8x512xf32>,
    } else {
    }
    return
  }
  func.func @transform_0(%arg0: i32, %arg1: i32, %arg2: i32) -> (i32, i32) {
    %c0_i32 = arith.constant 0 : i32
    return %arg0, %arg2 : i32, i32
  }
  func.func @transform_1(%arg0: i32, %arg1: i32, %arg2: i32) -> (i32, i32) {
    %c0_i32 = arith.constant 0 : i32
    return %arg2, %arg1 : i32, i32
  }
  func.func @transform_2(%arg0: i32, %arg1: i32, %arg2: i32) -> (i32, i32) {
    %c0_i32 = arith.constant 0 : i32
    return %arg0, %arg1 : i32, i32
  }
}

module attributes {stable_mosaic.version = 11 : i64} {
  func.func @_lstm_fc_kernel(%arg0: i32, %arg1: memref<4x2x512xf32, #tpu.memory_space<vmem>>, %arg2: memref<128x512xf32, #tpu.memory_space<vmem>>, %arg3: memref<1x512xf32, #tpu.memory_space<vmem>>, %arg4: memref<128x10xf32, #tpu.memory_space<vmem>>, %arg5: memref<1x10xf32, #tpu.memory_space<vmem>>, %arg6: memref<2x10xf32, #tpu.memory_space<vmem>>) attributes {dimension_semantics = [#tpu.dimension_semantics<arbitrary>], iteration_bounds = array<i64: 1>, scalar_prefetch = 0 : i64, scratch_operands = 0 : i64, tpu.core_type = #tpu.core_type<tc>, window_params = [{pipeline_mode = #tpu.pipeline_mode<synchronous>, transform_indices = @transform_0, window_bounds = array<i64: 4, 2, 512>}, {pipeline_mode = #tpu.pipeline_mode<synchronous>, transform_indices = @transform_1, window_bounds = array<i64: 128, 512>}, {pipeline_mode = #tpu.pipeline_mode<synchronous>, transform_indices = @transform_2, window_bounds = array<i64: 1, 512>}, {pipeline_mode = #tpu.pipeline_mode<synchronous>, transform_indices = @transform_3, window_bounds = array<i64: 128, 10>}, {pipeline_mode = #tpu.pipeline_mode<synchronous>, transform_indices = @transform_4, window_bounds = array<i64: 1, 10>}, {pipeline_mode = #tpu.pipeline_mode<synchronous>, transform_indices = @transform_5, window_bounds = array<i64: 2, 10>}]} {
    %c0 = arith.constant 0 : index
    %c0_0 = arith.constant 0 : index
    %0 = vector.load %arg2[%c0, %c0_0] : memref<128x512xf32, #tpu.memory_space<vmem>>, vector<128x512xf32>
    %c0_1 = arith.constant 0 : index
    %c0_2 = arith.constant 0 : index
    %1 = vector.load %arg3[%c0_1, %c0_2] : memref<1x512xf32, #tpu.memory_space<vmem>>, vector<1x512xf32>
    %cst = arith.constant 0.000000e+00 : f32
    %2 = vector.broadcast %cst : f32 to vector<2x128xf32>
    %c0_i32 = arith.constant 0 : i32
    %3 = arith.index_cast %c0_i32 : i32 to index
    %c0_3 = arith.constant 0 : index
    %c0_4 = arith.constant 0 : index
    %4 = vector.load %arg1[%3, %c0_3, %c0_4] : memref<4x2x512xf32, #tpu.memory_space<vmem>>, vector<1x2x512xf32>
    %5 = vector.shape_cast %4 : vector<1x2x512xf32> to vector<2x512xf32>
    %cst_5 = arith.constant dense<0.000000e+00> : vector<2x512xf32>
    %6 = tpu.matmul %2, %0, %cst_5 {dimension_numbers = #tpu.dot_dimension_numbers<[1], [0], [0], [1], [0, 0, 1, 1], [], []>} : vector<2x128xf32>, vector<128x512xf32>, vector<2x512xf32> -> vector<2x512xf32>
    %7 = arith.addf %5, %6 : vector<2x512xf32>
    %8 = vector.broadcast %1 : vector<1x512xf32> to vector<2x512xf32>
    %9 = arith.addf %7, %8 : vector<2x512xf32>
    %10 = vector.extract_strided_slice %9 {offsets = [0, 0], sizes = [2, 128], strides = [1, 1]} : vector<2x512xf32> to vector<2x128xf32>
    %11 = arith.negf %10 : vector<2x128xf32>
    %12 = math.exp %11 : vector<2x128xf32>
    %cst_6 = arith.constant 1.000000e+00 : f32
    %13 = vector.broadcast %cst_6 : f32 to vector<2x128xf32>
    %14 = arith.addf %13, %12 : vector<2x128xf32>
    %15 = arith.divf %13, %14 : vector<2x128xf32>
    %16 = vector.extract_strided_slice %9 {offsets = [0, 128], sizes = [2, 128], strides = [1, 1]} : vector<2x512xf32> to vector<2x128xf32>
    %17 = arith.negf %16 : vector<2x128xf32>
    %18 = math.exp %17 : vector<2x128xf32>
    %cst_7 = arith.constant 1.000000e+00 : f32
    %19 = vector.broadcast %cst_7 : f32 to vector<2x128xf32>
    %20 = arith.addf %19, %18 : vector<2x128xf32>
    %21 = arith.divf %19, %20 : vector<2x128xf32>
    %22 = vector.extract_strided_slice %9 {offsets = [0, 256], sizes = [2, 128], strides = [1, 1]} : vector<2x512xf32> to vector<2x128xf32>
    %23 = math.tanh %22 : vector<2x128xf32>
    %24 = vector.extract_strided_slice %9 {offsets = [0, 384], sizes = [2, 128], strides = [1, 1]} : vector<2x512xf32> to vector<2x128xf32>
    %25 = arith.negf %24 : vector<2x128xf32>
    %26 = math.exp %25 : vector<2x128xf32>
    %cst_8 = arith.constant 1.000000e+00 : f32
    %27 = vector.broadcast %cst_8 : f32 to vector<2x128xf32>
    %28 = arith.addf %27, %26 : vector<2x128xf32>
    %29 = arith.divf %27, %28 : vector<2x128xf32>
    %30 = arith.mulf %21, %2 : vector<2x128xf32>
    %31 = arith.mulf %15, %23 : vector<2x128xf32>
    %32 = arith.addf %30, %31 : vector<2x128xf32>
    %33 = math.tanh %32 : vector<2x128xf32>
    %34 = arith.mulf %29, %33 : vector<2x128xf32>
    %c1_i32 = arith.constant 1 : i32
    %35 = arith.index_cast %c1_i32 : i32 to index
    %c0_9 = arith.constant 0 : index
    %c0_10 = arith.constant 0 : index
    %36 = vector.load %arg1[%35, %c0_9, %c0_10] : memref<4x2x512xf32, #tpu.memory_space<vmem>>, vector<1x2x512xf32>
    %37 = vector.shape_cast %36 : vector<1x2x512xf32> to vector<2x512xf32>
    %cst_11 = arith.constant dense<0.000000e+00> : vector<2x512xf32>
    %38 = tpu.matmul %34, %0, %cst_11 {dimension_numbers = #tpu.dot_dimension_numbers<[1], [0], [0], [1], [0, 0, 1, 1], [], []>} : vector<2x128xf32>, vector<128x512xf32>, vector<2x512xf32> -> vector<2x512xf32>
    %39 = arith.addf %37, %38 : vector<2x512xf32>
    %40 = vector.broadcast %1 : vector<1x512xf32> to vector<2x512xf32>
    %41 = arith.addf %39, %40 : vector<2x512xf32>
    %42 = vector.extract_strided_slice %41 {offsets = [0, 0], sizes = [2, 128], strides = [1, 1]} : vector<2x512xf32> to vector<2x128xf32>
    %43 = arith.negf %42 : vector<2x128xf32>
    %44 = math.exp %43 : vector<2x128xf32>
    %cst_12 = arith.constant 1.000000e+00 : f32
    %45 = vector.broadcast %cst_12 : f32 to vector<2x128xf32>
    %46 = arith.addf %45, %44 : vector<2x128xf32>
    %47 = arith.divf %45, %46 : vector<2x128xf32>
    %48 = vector.extract_strided_slice %41 {offsets = [0, 128], sizes = [2, 128], strides = [1, 1]} : vector<2x512xf32> to vector<2x128xf32>
    %49 = arith.negf %48 : vector<2x128xf32>
    %50 = math.exp %49 : vector<2x128xf32>
    %cst_13 = arith.constant 1.000000e+00 : f32
    %51 = vector.broadcast %cst_13 : f32 to vector<2x128xf32>
    %52 = arith.addf %51, %50 : vector<2x128xf32>
    %53 = arith.divf %51, %52 : vector<2x128xf32>
    %54 = vector.extract_strided_slice %41 {offsets = [0, 256], sizes = [2, 128], strides = [1, 1]} : vector<2x512xf32> to vector<2x128xf32>
    %55 = math.tanh %54 : vector<2x128xf32>
    %56 = vector.extract_strided_slice %41 {offsets = [0, 384], sizes = [2, 128], strides = [1, 1]} : vector<2x512xf32> to vector<2x128xf32>
    %57 = arith.negf %56 : vector<2x128xf32>
    %58 = math.exp %57 : vector<2x128xf32>
    %cst_14 = arith.constant 1.000000e+00 : f32
    %59 = vector.broadcast %cst_14 : f32 to vector<2x128xf32>
    %60 = arith.addf %59, %58 : vector<2x128xf32>
    %61 = arith.divf %59, %60 : vector<2x128xf32>
    %62 = arith.mulf %53, %32 : vector<2x128xf32>
    %63 = arith.mulf %47, %55 : vector<2x128xf32>
    %64 = arith.addf %62, %63 : vector<2x128xf32>
    %65 = math.tanh %64 : vector<2x128xf32>
    %66 = arith.mulf %61, %65 : vector<2x128xf32>
    %c2_i32 = arith.constant 2 : i32
    %67 = arith.index_cast %c2_i32 : i32 to index
    %c0_15 = arith.constant 0 : index
    %c0_16 = arith.constant 0 : index
    %68 = vector.load %arg1[%67, %c0_15, %c0_16] : memref<4x2x512xf32, #tpu.memory_space<vmem>>, vector<1x2x512xf32>
    %69 = vector.shape_cast %68 : vector<1x2x512xf32> to vector<2x512xf32>
    %cst_17 = arith.constant dense<0.000000e+00> : vector<2x512xf32>
    %70 = tpu.matmul %66, %0, %cst_17 {dimension_numbers = #tpu.dot_dimension_numbers<[1], [0], [0], [1], [0, 0, 1, 1], [], []>} : vector<2x128xf32>, vector<128x512xf32>, vector<2x512xf32> -> vector<2x512xf32>
    %71 = arith.addf %69, %70 : vector<2x512xf32>
    %72 = vector.broadcast %1 : vector<1x512xf32> to vector<2x512xf32>
    %73 = arith.addf %71, %72 : vector<2x512xf32>
    %74 = vector.extract_strided_slice %73 {offsets = [0, 0], sizes = [2, 128], strides = [1, 1]} : vector<2x512xf32> to vector<2x128xf32>
    %75 = arith.negf %74 : vector<2x128xf32>
    %76 = math.exp %75 : vector<2x128xf32>
    %cst_18 = arith.constant 1.000000e+00 : f32
    %77 = vector.broadcast %cst_18 : f32 to vector<2x128xf32>
    %78 = arith.addf %77, %76 : vector<2x128xf32>
    %79 = arith.divf %77, %78 : vector<2x128xf32>
    %80 = vector.extract_strided_slice %73 {offsets = [0, 128], sizes = [2, 128], strides = [1, 1]} : vector<2x512xf32> to vector<2x128xf32>
    %81 = arith.negf %80 : vector<2x128xf32>
    %82 = math.exp %81 : vector<2x128xf32>
    %cst_19 = arith.constant 1.000000e+00 : f32
    %83 = vector.broadcast %cst_19 : f32 to vector<2x128xf32>
    %84 = arith.addf %83, %82 : vector<2x128xf32>
    %85 = arith.divf %83, %84 : vector<2x128xf32>
    %86 = vector.extract_strided_slice %73 {offsets = [0, 256], sizes = [2, 128], strides = [1, 1]} : vector<2x512xf32> to vector<2x128xf32>
    %87 = math.tanh %86 : vector<2x128xf32>
    %88 = vector.extract_strided_slice %73 {offsets = [0, 384], sizes = [2, 128], strides = [1, 1]} : vector<2x512xf32> to vector<2x128xf32>
    %89 = arith.negf %88 : vector<2x128xf32>
    %90 = math.exp %89 : vector<2x128xf32>
    %cst_20 = arith.constant 1.000000e+00 : f32
    %91 = vector.broadcast %cst_20 : f32 to vector<2x128xf32>
    %92 = arith.addf %91, %90 : vector<2x128xf32>
    %93 = arith.divf %91, %92 : vector<2x128xf32>
    %94 = arith.mulf %85, %64 : vector<2x128xf32>
    %95 = arith.mulf %79, %87 : vector<2x128xf32>
    %96 = arith.addf %94, %95 : vector<2x128xf32>
    %97 = math.tanh %96 : vector<2x128xf32>
    %98 = arith.mulf %93, %97 : vector<2x128xf32>
    %c3_i32 = arith.constant 3 : i32
    %99 = arith.index_cast %c3_i32 : i32 to index
    %c0_21 = arith.constant 0 : index
    %c0_22 = arith.constant 0 : index
    %100 = vector.load %arg1[%99, %c0_21, %c0_22] : memref<4x2x512xf32, #tpu.memory_space<vmem>>, vector<1x2x512xf32>
    %101 = vector.shape_cast %100 : vector<1x2x512xf32> to vector<2x512xf32>
    %cst_23 = arith.constant dense<0.000000e+00> : vector<2x512xf32>
    %102 = tpu.matmul %98, %0, %cst_23 {dimension_numbers = #tpu.dot_dimension_numbers<[1], [0], [0], [1], [0, 0, 1, 1], [], []>} : vector<2x128xf32>, vector<128x512xf32>, vector<2x512xf32> -> vector<2x512xf32>
    %103 = arith.addf %101, %102 : vector<2x512xf32>
    %104 = vector.broadcast %1 : vector<1x512xf32> to vector<2x512xf32>
    %105 = arith.addf %103, %104 : vector<2x512xf32>
    %106 = vector.extract_strided_slice %105 {offsets = [0, 0], sizes = [2, 128], strides = [1, 1]} : vector<2x512xf32> to vector<2x128xf32>
    %107 = arith.negf %106 : vector<2x128xf32>
    %108 = math.exp %107 : vector<2x128xf32>
    %cst_24 = arith.constant 1.000000e+00 : f32
    %109 = vector.broadcast %cst_24 : f32 to vector<2x128xf32>
    %110 = arith.addf %109, %108 : vector<2x128xf32>
    %111 = arith.divf %109, %110 : vector<2x128xf32>
    %112 = vector.extract_strided_slice %105 {offsets = [0, 128], sizes = [2, 128], strides = [1, 1]} : vector<2x512xf32> to vector<2x128xf32>
    %113 = arith.negf %112 : vector<2x128xf32>
    %114 = math.exp %113 : vector<2x128xf32>
    %cst_25 = arith.constant 1.000000e+00 : f32
    %115 = vector.broadcast %cst_25 : f32 to vector<2x128xf32>
    %116 = arith.addf %115, %114 : vector<2x128xf32>
    %117 = arith.divf %115, %116 : vector<2x128xf32>
    %118 = vector.extract_strided_slice %105 {offsets = [0, 256], sizes = [2, 128], strides = [1, 1]} : vector<2x512xf32> to vector<2x128xf32>
    %119 = math.tanh %118 : vector<2x128xf32>
    %120 = vector.extract_strided_slice %105 {offsets = [0, 384], sizes = [2, 128], strides = [1, 1]} : vector<2x512xf32> to vector<2x128xf32>
    %121 = arith.negf %120 : vector<2x128xf32>
    %122 = math.exp %121 : vector<2x128xf32>
    %cst_26 = arith.constant 1.000000e+00 : f32
    %123 = vector.broadcast %cst_26 : f32 to vector<2x128xf32>
    %124 = arith.addf %123, %122 : vector<2x128xf32>
    %125 = arith.divf %123, %124 : vector<2x128xf32>
    %126 = arith.mulf %117, %96 : vector<2x128xf32>
    %127 = arith.mulf %111, %119 : vector<2x128xf32>
    %128 = arith.addf %126, %127 : vector<2x128xf32>
    %129 = math.tanh %128 : vector<2x128xf32>
    %130 = arith.mulf %125, %129 : vector<2x128xf32>
    %c4_i32 = arith.constant 4 : i32
    %c0_27 = arith.constant 0 : index
    %c0_28 = arith.constant 0 : index
    %131 = vector.load %arg4[%c0_27, %c0_28] : memref<128x10xf32, #tpu.memory_space<vmem>>, vector<128x10xf32>
    %cst_29 = arith.constant dense<0.000000e+00> : vector<2x10xf32>
    %132 = tpu.matmul %130, %131, %cst_29 {dimension_numbers = #tpu.dot_dimension_numbers<[1], [0], [0], [1], [0, 0, 1, 1], [], []>} : vector<2x128xf32>, vector<128x10xf32>, vector<2x10xf32> -> vector<2x10xf32>
    %c0_30 = arith.constant 0 : index
    %c0_31 = arith.constant 0 : index
    %133 = vector.load %arg5[%c0_30, %c0_31] : memref<1x10xf32, #tpu.memory_space<vmem>>, vector<1x10xf32>
    %134 = vector.broadcast %133 : vector<1x10xf32> to vector<2x10xf32>
    %135 = arith.addf %132, %134 : vector<2x10xf32>
    %c0_32 = arith.constant 0 : index
    %c0_33 = arith.constant 0 : index
    %136 = vector.load %arg6[%c0_32, %c0_33] : memref<2x10xf32, #tpu.memory_space<vmem>>, vector<2x10xf32>
    tpu.vector_store %arg6[%c0_32, %c0_33], %135 {strides = array<i32>} : memref<2x10xf32, #tpu.memory_space<vmem>>, vector<2x10xf32>,
    return
  }
  func.func @transform_0(%arg0: i32) -> (i32, i32, i32) {
    %c0_i32 = arith.constant 0 : i32
    %c0_i32_0 = arith.constant 0 : i32
    %c0_i32_1 = arith.constant 0 : i32
    %c0_i32_2 = arith.constant 0 : i32
    return %c0_i32, %c0_i32_0, %c0_i32_1 : i32, i32, i32
  }
  func.func @transform_1(%arg0: i32) -> (i32, i32) {
    %c0_i32 = arith.constant 0 : i32
    %c0_i32_0 = arith.constant 0 : i32
    %c0_i32_1 = arith.constant 0 : i32
    return %c0_i32, %c0_i32_0 : i32, i32
  }
  func.func @transform_2(%arg0: i32) -> (i32, i32) {
    %c0_i32 = arith.constant 0 : i32
    %c0_i32_0 = arith.constant 0 : i32
    %c0_i32_1 = arith.constant 0 : i32
    return %c0_i32, %c0_i32_0 : i32, i32
  }
  func.func @transform_3(%arg0: i32) -> (i32, i32) {
    %c0_i32 = arith.constant 0 : i32
    %c0_i32_0 = arith.constant 0 : i32
    %c0_i32_1 = arith.constant 0 : i32
    return %c0_i32, %c0_i32_0 : i32, i32
  }
  func.func @transform_4(%arg0: i32) -> (i32, i32) {
    %c0_i32 = arith.constant 0 : i32
    %c0_i32_0 = arith.constant 0 : i32
    %c0_i32_1 = arith.constant 0 : i32
    return %c0_i32, %c0_i32_0 : i32, i32
  }
  func.func @transform_5(%arg0: i32) -> (i32, i32) {
    %c0_i32 = arith.constant 0 : i32
    %c0_i32_0 = arith.constant 0 : i32
    %c0_i32_1 = arith.constant 0 : i32
    return %c0_i32, %c0_i32_0 : i32, i32
  }
}

</mosaic_0001>

<bundles_post_ra>
// kernel: cnnrnn_forward.4
= control target key start
LH: loop header
LB: loop body
LE: loop exit
PB: predicated region body
PF: predicated region fallthrough
CT: control target
= control target key end

     0   :  { %s1696_s12 = smov 0   ;;  %s2575_s0 = inlined_call_operand.vmem [shape: f32[2,32,4096], index: 0, kind: input, shape index: {}]   ;;  %s2576_s1 = inlined_call_operand.vmem [shape: f32[32,32], index: 1, kind: input, shape index: {}]   ;;  %s2577_s2 = inlined_call_operand.vmem [shape: f32[32,1], index: 2, kind: input, shape index: {}]   ;;  %s2578_s3 = inlined_call_operand.vmem [shape: f32[2,32,1024], index: 3, kind: output, shape index: {}]  }
   0x1 LB: > { %s1515_s13 = sadd.s32 4294967295, %s1673_s12   ;;  %p1519_p0 = scmp.ge.s32.totalorder %s1673_s12, 1  ;;  %s1673_s12 = sphi %s1696_s12, %s13_s12  }
   0x2   : > { %p137_p1 = scmp.lt.s32.totalorder %s1673_s12, 3 }
   0x4   : > { %p138_p2 = pnand %p1519_p0, %p137_p1 }
   0x6   : > { %141 = sbr.rel (%p138_p2) target bundleno = 416 (0x1a0), region = 32 }
   0xb   : > { %p161_p3 = scmp.lt.s32.totalorder %s1515_s13, 1  ;;  %v1731_v16 = vld [vmem:[%s2576_s1] sm:$0xff]  ;;  %vm303_vm0 = vcmask 261120   ;;  %v1756_v29 = vld [vmem:[%s2576_s1 + $0x8] sm:$0xff]  ;;  %v1781_v42 = vld [vmem:[%s2576_s1 + $0x10] sm:$0xff] }
   0xc   : > { %v1798_v47 = vld [vmem:[%s2576_s1 + $0x18] sm:$0xff] }
   0xd   : > { %s2729_s13 = smov (!%p161_p3, %s1515_s13), 1 }
   0xe   : > { %s1654_s14 = sshll.u32 %s2729_s13, 10  ;;  %s1655_s7 = sshll.u32 %s2729_s13, 8 }
   0xf   : > { %s1710_s17 = scalar_lea.vmem %s2575_s0, %s1654_s14  ;;  %s2386_s10 = scalar_lea.vmem %s2578_s3, %s1655_s7 }
  0x10   : > { %v271_v0 = vld [vmem:[%s1710_s17 + $0x300] sm:$0xff]  ;;  %v272_v1 = vld [vmem:[%s1710_s17 + $0x308] sm:$0xff]  ;;  %v273_v2 = vld [vmem:[%s1710_s17 + $0x310] sm:$0xff] }
  0x11   : > { %328 = vmatpush.msra.mxu0 %v271_v0  ;;  %357 = vmatpush.msra.mxu1 %v272_v1  ;;  %v274_v3 = vld [vmem:[%s1710_s17 + $0x318] sm:$0xff]  ;;  %v239_v4 = vld [vmem:[%s1710_s17 + $0x200] sm:$0xff]  ;;  %v240_v5 = vld [vmem:[%s1710_s17 + $0x208] sm:$0xff] }
  0x12   : > { %386 = vmatpush.msra.mxu2 %v273_v2  ;;  %415 = vmatpush.msra.mxu3 %v274_v3  ;;  %v241_v6 = vld [vmem:[%s1710_s17 + $0x210] sm:$0xff]  ;;  %v242_v7 = vld [vmem:[%s1710_s17 + $0x218] sm:$0xff]  ;;  %v207_v8 = vld [vmem:[%s1710_s17 + $0x100] sm:$0xff] }
  0x13   : > { %329 = vmatpush.msra.mxu0 %v239_v4  ;;  %358 = vmatpush.msra.mxu1 %v240_v5  ;;  %v208_v9 = vld [vmem:[%s1710_s17 + $0x108] sm:$0xff]  ;;  %v209_v10 = vld [vmem:[%s1710_s17 + $0x110] sm:$0xff]  ;;  %v210_v11 = vld [vmem:[%s1710_s17 + $0x118] sm:$0xff] }
  0x14   : > { %387 = vmatpush.msra.mxu2 %v241_v6  ;;  %416 = vmatpush.msra.mxu3 %v242_v7  ;;  %v175_v12 = vld [vmem:[%s1710_s17] sm:$0xff]  ;;  %v176_v13 = vld [vmem:[%s1710_s17 + $0x8] sm:$0xff]  ;;  %v177_v14 = vld [vmem:[%s1710_s17 + $0x10] sm:$0xff] }
  0x15   : > { %330 = vmatpush.msra.mxu0 %v207_v8  ;;  %359 = vmatpush.msra.mxu1 %v208_v9  ;;  %v178_v15 = vld [vmem:[%s1710_s17 + $0x18] sm:$0xff]  ;;  %v277_v17 = vld [vmem:[%s1710_s17 + $0x330] sm:$0xff]  ;;  %v275_v19 = vld [vmem:[%s1710_s17 + $0x320] sm:$0xff] }
  0x16   : > { %388 = vmatpush.msra.mxu2 %v209_v10  ;;  %417 = vmatpush.msra.mxu3 %v210_v11  ;;  %v278_v18 = vld [vmem:[%s1710_s17 + $0x338] sm:$0xff]  ;;  %v276_v20 = vld [vmem:[%s1710_s17 + $0x328] sm:$0xff]  ;;  %v245_v21 = vld [vmem:[%s1710_s17 + $0x230] sm:$0xff] }
  0x17   : > { %331 = vmatpush.msra.mxu0 %v175_v12  ;;  %360 = vmatpush.msra.mxu1 %v176_v13  ;;  %v246_v22 = vld [vmem:[%s1710_s17 + $0x238] sm:$0xff]  ;;  %v243_v23 = vld [vmem:[%s1710_s17 + $0x220] sm:$0xff]  ;;  %v244_v24 = vld [vmem:[%s1710_s17 + $0x228] sm:$0xff] }
  0x18   : > { %389 = vmatpush.msra.mxu2 %v177_v14  ;;  %418 = vmatpush.msra.mxu3 %v178_v15  ;;  %v213_v25 = vld [vmem:[%s1710_s17 + $0x130] sm:$0xff]  ;;  %v214_v26 = vld [vmem:[%s1710_s17 + $0x138] sm:$0xff]  ;;  %v211_v27 = vld [vmem:[%s1710_s17 + $0x120] sm:$0xff] }
  0x19   : > { %1524 = vmatmul.msk.f32.vlgmr.msra.gmra.mxu0 %vm303_vm0, %v1731_v16  ;;  %1528 = vmatmul.msk.f32.vlgmr.msra.gmra.mxu1 %vm303_vm0, %v1731_v16  ;;  %v212_v28 = vld [vmem:[%s1710_s17 + $0x128] sm:$0xff]  ;;  %v181_v30 = vld [vmem:[%s1710_s17 + $0x30] sm:$0xff]  ;;  %v182_v31 = vld [vmem:[%s1710_s17 + $0x38] sm:$0xff] }
  0x1a   : > { %1532 = vmatmul.msk.f32.vlgmr.msra.gmra.mxu2 %vm303_vm0, %v1731_v16  ;;  %1536 = vmatmul.msk.f32.vlgmr.msra.gmra.mxu3 %vm303_vm0, %v1731_v16  ;;  %v179_v32 = vld [vmem:[%s1710_s17 + $0x20] sm:$0xff]  ;;  %v180_v33 = vld [vmem:[%s1710_s17 + $0x28] sm:$0xff]  ;;  %v281_v34 = vld [vmem:[%s1710_s17 + $0x350] sm:$0xff] }
  0x1b   : > { %502 = vmatpush.msrb.mxu2 %v277_v17  ;;  %531 = vmatpush.msrb.mxu3 %v278_v18  ;;  %v282_v35 = vld [vmem:[%s1710_s17 + $0x358] sm:$0xff]  ;;  %v279_v36 = vld [vmem:[%s1710_s17 + $0x340] sm:$0xff]  ;;  %v280_v37 = vld [vmem:[%s1710_s17 + $0x348] sm:$0xff] }
  0x1c   : > { %444 = vmatpush.msrb.mxu0 %v275_v19  ;;  %473 = vmatpush.msrb.mxu1 %v276_v20  ;;  %v249_v38 = vld [vmem:[%s1710_s17 + $0x250] sm:$0xff]  ;;  %v250_v39 = vld [vmem:[%s1710_s17 + $0x258] sm:$0xff]  ;;  %v247_v40 = vld [vmem:[%s1710_s17 + $0x240] sm:$0xff] }
  0x1d   : > { %503 = vmatpush.msrb.mxu2 %v245_v21  ;;  %532 = vmatpush.msrb.mxu3 %v246_v22  ;;  %v248_v41 = vld [vmem:[%s1710_s17 + $0x248] sm:$0xff]  ;;  %v217_v43 = vld [vmem:[%s1710_s17 + $0x150] sm:$0xff]  ;;  %v218_v44 = vld [vmem:[%s1710_s17 + $0x158] sm:$0xff] }
  0x1e   : > { %445 = vmatpush.msrb.mxu0 %v243_v23  ;;  %474 = vmatpush.msrb.mxu1 %v244_v24  ;;  %v215_v45 = vld [vmem:[%s1710_s17 + $0x140] sm:$0xff]  ;;  %v216_v46 = vld [vmem:[%s1710_s17 + $0x148] sm:$0xff]  ;;  %v185_v48 = vld [vmem:[%s1710_s17 + $0x50] sm:$0xff] }
  0x1f   : > { %504 = vmatpush.msrb.mxu2 %v213_v25  ;;  %533 = vmatpush.msrb.mxu3 %v214_v26  ;;  %v186_v49 = vld [vmem:[%s1710_s17 + $0x58] sm:$0xff]  ;;  %v183_v50 = vld [vmem:[%s1710_s17 + $0x40] sm:$0xff]  ;;  %v184_v51 = vld [vmem:[%s1710_s17 + $0x48] sm:$0xff] }
  0x20   : > { %446 = vmatpush.msrb.mxu0 %v211_v27  ;;  %475 = vmatpush.msrb.mxu1 %v212_v28  ;;  %v285_v52 = vld [vmem:[%s1710_s17 + $0x370] sm:$0xff]  ;;  %v286_v53 = vld [vmem:[%s1710_s17 + $0x378] sm:$0xff]  ;;  %v283_v54 = vld [vmem:[%s1710_s17 + $0x360] sm:$0xff] }
  0x21   : > { %1525 = vmatmul.msk.f32.gmra.mxu0 %vm303_vm0, %v1756_v29  ;;  %1529 = vmatmul.msk.f32.gmra.mxu1 %vm303_vm0, %v1756_v29  ;;  %v284_v55 = vld [vmem:[%s1710_s17 + $0x368] sm:$0xff]  ;;  %v253_v56 = vld [vmem:[%s1710_s17 + $0x270] sm:$0xff]  ;;  %v254_v57 = vld [vmem:[%s1710_s17 + $0x278] sm:$0xff] }
  0x22   : > { %1533 = vmatmul.msk.f32.gmra.mxu2 %vm303_vm0, %v1756_v29  ;;  %1537 = vmatmul.msk.f32.gmra.mxu3 %vm303_vm0, %v1756_v29  ;;  %v251_v58 = vld [vmem:[%s1710_s17 + $0x260] sm:$0xff]  ;;  %v252_v59 = vld [vmem:[%s1710_s17 + $0x268] sm:$0xff]  ;;  %v221_v60 = vld [vmem:[%s1710_s17 + $0x170] sm:$0xff] }
  0x23   : > { %505 = vmatpush.msrb.mxu2 %v181_v30  ;;  %534 = vmatpush.msrb.mxu3 %v182_v31  ;;  %v222_v61 = vld [vmem:[%s1710_s17 + $0x178] sm:$0xff]  ;;  %v219_v62 = vld [vmem:[%s1710_s17 + $0x160] sm:$0xff]  ;;  %v220_v63 = vld [vmem:[%s1710_s17 + $0x168] sm:$0xff] }
  0x24   : > { %447 = vmatpush.msrb.mxu0 %v179_v32  ;;  %476 = vmatpush.msrb.mxu1 %v180_v33  ;;  %v189_v0 = vld [vmem:[%s1710_s17 + $0x70] sm:$0xff]  ;;  %v190_v1 = vld [vmem:[%s1710_s17 + $0x78] sm:$0xff]  ;;  %v187_v2 = vld [vmem:[%s1710_s17 + $0x60] sm:$0xff] }
  0x25   : > { %618 = vmatpush.msra.mxu2 %v281_v34  ;;  %647 = vmatpush.msra.mxu3 %v282_v35  ;;  %v188_v3 = vld [vmem:[%s1710_s17 + $0x68] sm:$0xff]  ;;  %v289_v4 = vld [vmem:[%s1710_s17 + $0x390] sm:$0xff]  ;;  %v290_v5 = vld [vmem:[%s1710_s17 + $0x398] sm:$0xff] }
  0x26   : > { %560 = vmatpush.msra.mxu0 %v279_v36  ;;  %589 = vmatpush.msra.mxu1 %v280_v37  ;;  %v287_v6 = vld [vmem:[%s1710_s17 + $0x380] sm:$0xff]  ;;  %v288_v7 = vld [vmem:[%s1710_s17 + $0x388] sm:$0xff]  ;;  %v257_v8 = vld [vmem:[%s1710_s17 + $0x290] sm:$0xff] }
  0x27   : > { %619 = vmatpush.msra.mxu2 %v249_v38  ;;  %648 = vmatpush.msra.mxu3 %v250_v39  ;;  %v258_v9 = vld [vmem:[%s1710_s17 + $0x298] sm:$0xff]  ;;  %v255_v10 = vld [vmem:[%s1710_s17 + $0x280] sm:$0xff]  ;;  %v256_v11 = vld [vmem:[%s1710_s17 + $0x288] sm:$0xff] }
  0x28   : > { %561 = vmatpush.msra.mxu0 %v247_v40  ;;  %590 = vmatpush.msra.mxu1 %v248_v41  ;;  %v225_v12 = vld [vmem:[%s1710_s17 + $0x190] sm:$0xff]  ;;  %v226_v13 = vld [vmem:[%s1710_s17 + $0x198] sm:$0xff]  ;;  %v223_v14 = vld [vmem:[%s1710_s17 + $0x180] sm:$0xff] }
  0x29   : > { %1526 = vmatmul.msk.f32.gmra.mxu0 %vm303_vm0, %v1781_v42  ;;  %1530 = vmatmul.msk.f32.gmra.mxu1 %vm303_vm0, %v1781_v42  ;;  %v224_v15 = vld [vmem:[%s1710_s17 + $0x188] sm:$0xff]  ;;  %v193_v17 = vld [vmem:[%s1710_s17 + $0x90] sm:$0xff]  ;;  %v194_v18 = vld [vmem:[%s1710_s17 + $0x98] sm:$0xff] }
  0x2a   : > { %1534 = vmatmul.msk.f32.gmra.mxu2 %vm303_vm0, %v1781_v42  ;;  %1538 = vmatmul.msk.f32.gmra.mxu3 %vm303_vm0, %v1781_v42  ;;  %v191_v19 = vld [vmem:[%s1710_s17 + $0x80] sm:$0xff]  ;;  %v192_v20 = vld [vmem:[%s1710_s17 + $0x88] sm:$0xff]  ;;  %v293_v21 = vld [vmem:[%s1710_s17 + $0x3b0] sm:$0xff] }
  0x2b   : > { %620 = vmatpush.msra.mxu2 %v217_v43  ;;  %649 = vmatpush.msra.mxu3 %v218_v44  ;;  %v294_v22 = vld [vmem:[%s1710_s17 + $0x3b8] sm:$0xff]  ;;  %v291_v23 = vld [vmem:[%s1710_s17 + $0x3a0] sm:$0xff]  ;;  %v292_v24 = vld [vmem:[%s1710_s17 + $0x3a8] sm:$0xff] }
  0x2c   : > { %562 = vmatpush.msra.mxu0 %v215_v45  ;;  %591 = vmatpush.msra.mxu1 %v216_v46  ;;  %v261_v25 = vld [vmem:[%s1710_s17 + $0x2b0] sm:$0xff]  ;;  %v262_v26 = vld [vmem:[%s1710_s17 + $0x2b8] sm:$0xff]  ;;  %v259_v27 = vld [vmem:[%s1710_s17 + $0x2a0] sm:$0xff] }
  0x2d   : > { %621 = vmatpush.msra.mxu2 %v185_v48  ;;  %650 = vmatpush.msra.mxu3 %v186_v49  ;;  %v260_v28 = vld [vmem:[%s1710_s17 + $0x2a8] sm:$0xff]  ;;  %v229_v30 = vld [vmem:[%s1710_s17 + $0x1b0] sm:$0xff]  ;;  %v230_v31 = vld [vmem:[%s1710_s17 + $0x1b8] sm:$0xff] }
  0x2e   : > { %563 = vmatpush.msra.mxu0 %v183_v50  ;;  %592 = vmatpush.msra.mxu1 %v184_v51  ;;  %v227_v32 = vld [vmem:[%s1710_s17 + $0x1a0] sm:$0xff]  ;;  %v228_v33 = vld [vmem:[%s1710_s17 + $0x1a8] sm:$0xff]  ;;  %v197_v34 = vld [vmem:[%s1710_s17 + $0xb0] sm:$0xff] }
  0x2f   : > { %v198_v35 = vld [vmem:[%s1710_s17 + $0xb8] sm:$0xff]  ;;  %v195_v38 = vld [vmem:[%s1710_s17 + $0xa0] sm:$0xff]  ;;  %v196_v39 = vld [vmem:[%s1710_s17 + $0xa8] sm:$0xff] }
  0x30   : > { %v297_v40 = vld [vmem:[%s1710_s17 + $0x3d0] sm:$0xff]  ;;  %v298_v41 = vld [vmem:[%s1710_s17 + $0x3d8] sm:$0xff]  ;;  %v295_v48 = vld [vmem:[%s1710_s17 + $0x3c0] sm:$0xff] }
  0x31   : > { %1527 = vmatmul.msk.f32.gmra.mxu0 %vm303_vm0, %v1798_v47  ;;  %1531 = vmatmul.msk.f32.gmra.mxu1 %vm303_vm0, %v1798_v47  ;;  %v296_v49 = vld [vmem:[%s1710_s17 + $0x3c8] sm:$0xff]  ;;  %v265_v50 = vld [vmem:[%s1710_s17 + $0x2d0] sm:$0xff]  ;;  %v266_v51 = vld [vmem:[%s1710_s17 + $0x2d8] sm:$0xff] }
  0x32   : > { %1535 = vmatmul.msk.f32.gmra.mxu2 %vm303_vm0, %v1798_v47  ;;  %1539 = vmatmul.msk.f32.gmra.mxu3 %vm303_vm0, %v1798_v47 }
  0x39   : > { %1540 = vmatmul.msk.f32.vlgmr.msrb.gmra.mxu0 %vm303_vm0, %v1731_v16  ;;  %1544 = vmatmul.msk.f32.vlgmr.msrb.gmra.mxu1 %vm303_vm0, %v1731_v16 }
  0x3a   : > { %1548 = vmatmul.msk.f32.vlgmr.msrb.gmra.mxu2 %vm303_vm0, %v1731_v16  ;;  %1552 = vmatmul.msk.f32.vlgmr.msrb.gmra.mxu3 %vm303_vm0, %v1731_v16 }
  0x3b   : > { %734 = vmatpush.msrb.mxu2 %v285_v52  ;;  %763 = vmatpush.msrb.mxu3 %v286_v53 }
  0x3c   : > { %676 = vmatpush.msrb.mxu0 %v283_v54  ;;  %705 = vmatpush.msrb.mxu1 %v284_v55 }
  0x3d   : > { %735 = vmatpush.msrb.mxu2 %v253_v56  ;;  %764 = vmatpush.msrb.mxu3 %v254_v57  ;;  %v263_v56 = vld [vmem:[%s1710_s17 + $0x2c0] sm:$0xff]  ;;  %v264_v57 = vld [vmem:[%s1710_s17 + $0x2c8] sm:$0xff] }
  0x3e   : > { %677 = vmatpush.msrb.mxu0 %v251_v58  ;;  %706 = vmatpush.msrb.mxu1 %v252_v59  ;;  %v233_v58 = vld [vmem:[%s1710_s17 + $0x1d0] sm:$0xff]  ;;  %v234_v59 = vld [vmem:[%s1710_s17 + $0x1d8] sm:$0xff] }
  0x3f   : > { %736 = vmatpush.msrb.mxu2 %v221_v60  ;;  %765 = vmatpush.msrb.mxu3 %v222_v61 }
  0x40   : > { %678 = vmatpush.msrb.mxu0 %v219_v62  ;;  %707 = vmatpush.msrb.mxu1 %v220_v63 }
  0x41   : > { %1541 = vmatmul.msk.f32.gmra.mxu0 %vm303_vm0, %v1756_v29  ;;  %1545 = vmatmul.msk.f32.gmra.mxu1 %vm303_vm0, %v1756_v29 }
  0x42   : > { %1549 = vmatmul.msk.f32.gmra.mxu2 %vm303_vm0, %v1756_v29  ;;  %1553 = vmatmul.msk.f32.gmra.mxu3 %vm303_vm0, %v1756_v29 }
  0x43   : > { %737 = vmatpush.msrb.mxu2 %v189_v0  ;;  %766 = vmatpush.msrb.mxu3 %v190_v1  ;;  %v231_v0 = vld [vmem:[%s1710_s17 + $0x1c0] sm:$0xff]  ;;  %v232_v1 = vld [vmem:[%s1710_s17 + $0x1c8] sm:$0xff] }
  0x44   : > { %679 = vmatpush.msrb.mxu0 %v187_v2  ;;  %708 = vmatpush.msrb.mxu1 %v188_v3  ;;  %v201_v2 = vld [vmem:[%s1710_s17 + $0xd0] sm:$0xff]  ;;  %v202_v3 = vld [vmem:[%s1710_s17 + $0xd8] sm:$0xff] }
  0x49   : > { %1542 = vmatmul.msk.f32.gmra.mxu0 %vm303_vm0, %v1781_v42  ;;  %1546 = vmatmul.msk.f32.gmra.mxu1 %vm303_vm0, %v1781_v42 }
  0x4a   : > { %1550 = vmatmul.msk.f32.gmra.mxu2 %vm303_vm0, %v1781_v42  ;;  %1554 = vmatmul.msk.f32.gmra.mxu3 %vm303_vm0, %v1781_v42 }
  0x51   : > { %1543 = vmatmul.msk.f32.gmra.mxu0 %vm303_vm0, %v1798_v47  ;;  %1547 = vmatmul.msk.f32.gmra.mxu1 %vm303_vm0, %v1798_v47 }
  0x52   : > { %1551 = vmatmul.msk.f32.gmra.mxu2 %vm303_vm0, %v1798_v47  ;;  %1555 = vmatmul.msk.f32.gmra.mxu3 %vm303_vm0, %v1798_v47 }
  0x59   : > { %1556 = vmatmul.msk.f32.vlgmr.msra.gmra.mxu0 %vm303_vm0, %v1731_v16  ;;  %1560 = vmatmul.msk.f32.vlgmr.msra.gmra.mxu1 %vm303_vm0, %v1731_v16 }
  0x5a   : > { %1564 = vmatmul.msk.f32.vlgmr.msra.gmra.mxu2 %vm303_vm0, %v1731_v16  ;;  %1568 = vmatmul.msk.f32.vlgmr.msra.gmra.mxu3 %vm303_vm0, %v1731_v16 }
  0x5b   : > { %850 = vmatpush.msra.mxu2 %v289_v4  ;;  %879 = vmatpush.msra.mxu3 %v290_v5 }
  0x5c   : > { %792 = vmatpush.msra.mxu0 %v287_v6  ;;  %821 = vmatpush.msra.mxu1 %v288_v7 }
  0x5d   : > { %851 = vmatpush.msra.mxu2 %v257_v8  ;;  %880 = vmatpush.msra.mxu3 %v258_v9  ;;  %v199_v8 = vld [vmem:[%s1710_s17 + $0xc0] sm:$0xff]  ;;  %v200_v9 = vld [vmem:[%s1710_s17 + $0xc8] sm:$0xff] }
  0x5e   : > { %793 = vmatpush.msra.mxu0 %v255_v10  ;;  %822 = vmatpush.msra.mxu1 %v256_v11  ;;  %v301_v10 = vld [vmem:[%s1710_s17 + $0x3f0] sm:$0xff]  ;;  %v302_v11 = vld [vmem:[%s1710_s17 + $0x3f8] sm:$0xff] }
  0x5f   : > { %852 = vmatpush.msra.mxu2 %v225_v12  ;;  %881 = vmatpush.msra.mxu3 %v226_v13 }
  0x60   : > { %794 = vmatpush.msra.mxu0 %v223_v14  ;;  %823 = vmatpush.msra.mxu1 %v224_v15 }
  0x61   : > { %1557 = vmatmul.msk.f32.gmra.mxu0 %vm303_vm0, %v1756_v29  ;;  %1561 = vmatmul.msk.f32.gmra.mxu1 %vm303_vm0, %v1756_v29 }
  0x62   : > { %1565 = vmatmul.msk.f32.gmra.mxu2 %vm303_vm0, %v1756_v29  ;;  %1569 = vmatmul.msk.f32.gmra.mxu3 %vm303_vm0, %v1756_v29 }
  0x63   : > { %853 = vmatpush.msra.mxu2 %v193_v17  ;;  %882 = vmatpush.msra.mxu3 %v194_v18  ;;  %v299_v17 = vld [vmem:[%s1710_s17 + $0x3e0] sm:$0xff]  ;;  %v300_v18 = vld [vmem:[%s1710_s17 + $0x3e8] sm:$0xff] }
  0x64   : > { %795 = vmatpush.msra.mxu0 %v191_v19  ;;  %824 = vmatpush.msra.mxu1 %v192_v20  ;;  %v269_v19 = vld [vmem:[%s1710_s17 + $0x2f0] sm:$0xff]  ;;  %v270_v20 = vld [vmem:[%s1710_s17 + $0x2f8] sm:$0xff] }
  0x69   : > { %1558 = vmatmul.msk.f32.gmra.mxu0 %vm303_vm0, %v1781_v42  ;;  %1562 = vmatmul.msk.f32.gmra.mxu1 %vm303_vm0, %v1781_v42 }
  0x6a   : > { %1566 = vmatmul.msk.f32.gmra.mxu2 %vm303_vm0, %v1781_v42  ;;  %1570 = vmatmul.msk.f32.gmra.mxu3 %vm303_vm0, %v1781_v42 }
  0x71   : > { %1559 = vmatmul.msk.f32.gmra.mxu0 %vm303_vm0, %v1798_v47  ;;  %1563 = vmatmul.msk.f32.gmra.mxu1 %vm303_vm0, %v1798_v47 }
  0x72   : > { %1567 = vmatmul.msk.f32.gmra.mxu2 %vm303_vm0, %v1798_v47  ;;  %1571 = vmatmul.msk.f32.gmra.mxu3 %vm303_vm0, %v1798_v47 }
  0x79   : > { %1572 = vmatmul.msk.f32.vlgmr.msrb.gmra.mxu0 %vm303_vm0, %v1731_v16  ;;  %1576 = vmatmul.msk.f32.vlgmr.msrb.gmra.mxu1 %vm303_vm0, %v1731_v16 }
  0x7a   : > { %1580 = vmatmul.msk.f32.vlgmr.msrb.gmra.mxu2 %vm303_vm0, %v1731_v16  ;;  %1584 = vmatmul.msk.f32.vlgmr.msrb.gmra.mxu3 %vm303_vm0, %v1731_v16 }
  0x7b   : > { %966 = vmatpush.msrb.mxu2 %v293_v21  ;;  %995 = vmatpush.msrb.mxu3 %v294_v22 }
  0x7c   : > { %908 = vmatpush.msrb.mxu0 %v291_v23  ;;  %937 = vmatpush.msrb.mxu1 %v292_v24 }
  0x7d   : > { %967 = vmatpush.msrb.mxu2 %v261_v25  ;;  %996 = vmatpush.msrb.mxu3 %v262_v26  ;;  %v267_v25 = vld [vmem:[%s1710_s17 + $0x2e0] sm:$0xff]  ;;  %v1675_v26 = vmov 0  }
  0x7e   : > { %909 = vmatpush.msrb.mxu0 %v259_v27  ;;  %938 = vmatpush.msrb.mxu1 %v260_v28  ;;  %v268_v27 = vld [vmem:[%s1710_s17 + $0x2e8] sm:$0xff]  ;;  %v1340_v28 = vld [vmem:[%s2577_s2] sm:$0xff] }
  0x7f   : > { %968 = vmatpush.msrb.mxu2 %v229_v30  ;;  %997 = vmatpush.msrb.mxu3 %v230_v31  ;;  %v237_v30 = vld [vmem:[%s1710_s17 + $0x1f0] sm:$0xff]  ;;  %v238_v31 = vld [vmem:[%s1710_s17 + $0x1f8] sm:$0xff] }
  0x80   : > { %910 = vmatpush.msrb.mxu0 %v227_v32  ;;  %939 = vmatpush.msrb.mxu1 %v228_v33 }
  0x81   : > { %1573 = vmatmul.msk.f32.gmra.mxu0 %vm303_vm0, %v1756_v29  ;;  %1577 = vmatmul.msk.f32.gmra.mxu1 %vm303_vm0, %v1756_v29 }
  0x82   : > { %1581 = vmatmul.msk.f32.gmra.mxu2 %vm303_vm0, %v1756_v29  ;;  %1585 = vmatmul.msk.f32.gmra.mxu3 %vm303_vm0, %v1756_v29 }
  0x83   : > { %969 = vmatpush.msrb.mxu2 %v197_v34  ;;  %998 = vmatpush.msrb.mxu3 %v198_v35 }
  0x84   : > { %911 = vmatpush.msrb.mxu0 %v195_v38  ;;  %940 = vmatpush.msrb.mxu1 %v196_v39  ;;  %v235_v38 = vld [vmem:[%s1710_s17 + $0x1e0] sm:$0xff]  ;;  %v236_v39 = vld [vmem:[%s1710_s17 + $0x1e8] sm:$0xff] }
  0x85   : > { %1665 = vset.pattern.permute.xlu0 %v1675_v26  ;;  %1666 = vset.pattern.permute.xlu1 %v1675_v26 }
  0x86   : > { %1346 = vperm.xlu0 %1665, %v1340_v28  }
  0x89   : > { %1574 = vmatmul.msk.f32.gmra.mxu0 %vm303_vm0, %v1781_v42  ;;  %1578 = vmatmul.msk.f32.gmra.mxu1 %vm303_vm0, %v1781_v42 }
  0x8a   : > { %1582 = vmatmul.msk.f32.gmra.mxu2 %vm303_vm0, %v1781_v42  ;;  %1586 = vmatmul.msk.f32.gmra.mxu3 %vm303_vm0, %v1781_v42 }
  0x91   : > { %1575 = vmatmul.msk.f32.gmra.mxu0 %vm303_vm0, %v1798_v47  ;;  %1579 = vmatmul.msk.f32.gmra.mxu1 %vm303_vm0, %v1798_v47 }
  0x92   : > { %1583 = vmatmul.msk.f32.gmra.mxu2 %vm303_vm0, %v1798_v47  ;;  %1587 = vmatmul.msk.f32.gmra.mxu3 %vm303_vm0, %v1798_v47 }
  0x96   : > { %v1954_v36 = vpop.f32.mrf.mxu0  ;;  %v1956_v37 = vpop.f32.mrf.mxu1 }
  0x99   : > { %1588 = vmatmul.msk.f32.vlgmr.msra.gmra.mxu0 %vm303_vm0, %v1731_v16  ;;  %1592 = vmatmul.msk.f32.vlgmr.msra.gmra.mxu1 %vm303_vm0, %v1731_v16 }
  0x9a   : > { %1596 = vmatmul.msk.f32.vlgmr.msra.gmra.mxu2 %vm303_vm0, %v1731_v16  ;;  %1600 = vmatmul.msk.f32.vlgmr.msra.gmra.mxu3 %vm303_vm0, %v1731_v16 }
  0x9b   : > { %1082 = vmatpush.msra.mxu2 %v297_v40  ;;  %1111 = vmatpush.msra.mxu3 %v298_v41  ;;  %v1341_v40 = vld [vmem:[%s2577_s2 + $0x8] sm:$0xff]  ;;  %v205_v41 = vld [vmem:[%s1710_s17 + $0xf0] sm:$0xff] }
  0x9c   : > { %1024 = vmatpush.msra.mxu0 %v295_v48  ;;  %1053 = vmatpush.msra.mxu1 %v296_v49  ;;  %v206_v48 = vld [vmem:[%s1710_s17 + $0xf8] sm:$0xff] }
  0x9d   : > { %v1970_v43 = vpop.f32.mrf.mxu2  ;;  %v1972_v44 = vpop.f32.mrf.mxu3  ;;  %1083 = vmatpush.msra.mxu2 %v265_v50  ;;  %1112 = vmatpush.msra.mxu3 %v266_v51 }
  0x9e   : > { %v1974_v45 = vpop.f32.mrf.mxu0  ;;  %v1976_v46 = vpop.f32.mrf.mxu1  ;;  %1025 = vmatpush.msra.mxu0 %v263_v56  ;;  %1054 = vmatpush.msra.mxu1 %v264_v57 }
  0x9f   : > { %1084 = vmatpush.msra.mxu2 %v233_v58  ;;  %1113 = vmatpush.msra.mxu3 %v234_v59  ;;  %v203_v59 = vld [vmem:[%s1710_s17 + $0xe0] sm:$0xff] }
  0xa0   : > { %1026 = vmatpush.msra.mxu0 %v231_v0  ;;  %1055 = vmatpush.msra.mxu1 %v232_v1  ;;  %v204_v0 = vld [vmem:[%s1710_s17 + $0xe8] sm:$0xff]  ;;  %v1342_v1 = vld [vmem:[%s2577_s2 + $0x10] sm:$0xff] }
  0xa1   : > { %1589 = vmatmul.msk.f32.gmra.mxu0 %vm303_vm0, %v1756_v29  ;;  %1593 = vmatmul.msk.f32.gmra.mxu1 %vm303_vm0, %v1756_v29 }
  0xa2   : > { %1597 = vmatmul.msk.f32.gmra.mxu2 %vm303_vm0, %v1756_v29  ;;  %1601 = vmatmul.msk.f32.gmra.mxu3 %vm303_vm0, %v1756_v29 }
  0xa3   : > { %1085 = vmatpush.msra.mxu2 %v201_v2  ;;  %1114 = vmatpush.msra.mxu3 %v202_v3 }
  0xa4   : > { %1027 = vmatpush.msra.mxu0 %v199_v8  ;;  %1056 = vmatpush.msra.mxu1 %v200_v9 }
  0xa5   : > { %v1990_v52 = vpop.f32.mrf.mxu2  ;;  %v1992_v53 = vpop.f32.mrf.mxu3  ;;  %1351 = vperm.xlu0 %1665, %v1341_v40   ;;  %1356 = vperm.xlu1 %1666, %v1342_v1  }
  0xa6   : > { %v1994_v54 = vpop.f32.mrf.mxu0  ;;  %v1996_v55 = vpop.f32.mrf.mxu1 }
  0xa9   : > { %1590 = vmatmul.msk.f32.gmra.mxu0 %vm303_vm0, %v1781_v42  ;;  %1594 = vmatmul.msk.f32.gmra.mxu1 %vm303_vm0, %v1781_v42 }
  0xaa   : > { %1598 = vmatmul.msk.f32.gmra.mxu2 %vm303_vm0, %v1781_v42  ;;  %1602 = vmatmul.msk.f32.gmra.mxu3 %vm303_vm0, %v1781_v42 }
  0xad   : > { %v2010_v60 = vpop.f32.mrf.mxu2  ;;  %v2012_v61 = vpop.f32.mrf.mxu3 }
  0xae   : > { %v2014_v62 = vpop.f32.mrf.mxu0  ;;  %v2016_v63 = vpop.f32.mrf.mxu1 }
  0xb1   : > { %1591 = vmatmul.msk.f32.gmra.mxu0 %vm303_vm0, %v1798_v47  ;;  %1595 = vmatmul.msk.f32.gmra.mxu1 %vm303_vm0, %v1798_v47 }
  0xb2   : > { %1599 = vmatmul.msk.f32.gmra.mxu2 %vm303_vm0, %v1798_v47  ;;  %1603 = vmatmul.msk.f32.gmra.mxu3 %vm303_vm0, %v1798_v47 }
  0xb5   : > { %v2030_v4 = vpop.f32.mrf.mxu2  ;;  %v2032_v5 = vpop.f32.mrf.mxu3 }
  0xb6   : > { %v2034_v6 = vpop.f32.mrf.mxu0  ;;  %v2036_v7 = vpop.f32.mrf.mxu1 }
  0xb7   : > { %2610 = vst [vmem:[#allocation2_spill] sm:$0xff] %v2036_v7 }
  0xb9   : > { %1604 = vmatmul.msk.f32.vlgmr.msrb.gmra.mxu0 %vm303_vm0, %v1731_v16  ;;  %1608 = vmatmul.msk.f32.vlgmr.msrb.gmra.mxu1 %vm303_vm0, %v1731_v16 }
  0xba   : > { %1612 = vmatmul.msk.f32.vlgmr.msrb.gmra.mxu2 %vm303_vm0, %v1731_v16  ;;  %1616 = vmatmul.msk.f32.vlgmr.msrb.gmra.mxu3 %vm303_vm0, %v1731_v16 }
  0xbb   : > { %1198 = vmatpush.msrb.mxu2 %v301_v10  ;;  %1227 = vmatpush.msrb.mxu3 %v302_v11 }
  0xbc   : > { %1140 = vmatpush.msrb.mxu0 %v299_v17  ;;  %1169 = vmatpush.msrb.mxu1 %v300_v18 }
  0xbd   : > { %v2050_v12 = vpop.f32.mrf.mxu2  ;;  %v2052_v13 = vpop.f32.mrf.mxu3  ;;  %1199 = vmatpush.msrb.mxu2 %v269_v19  ;;  %1228 = vmatpush.msrb.mxu3 %v270_v20  ;;  %v1343_v19 = vld [vmem:[%s2577_s2 + $0x18] sm:$0xff] }
  0xbe   : > { %2611 = vst [vmem:[#allocation3_spill] sm:$0xff] %v2050_v12  ;;  %v2054_v14 = vpop.f32.mrf.mxu0  ;;  %v2056_v15 = vpop.f32.mrf.mxu1  ;;  %1141 = vmatpush.msrb.mxu0 %v267_v25  ;;  %1170 = vmatpush.msrb.mxu1 %v268_v27 }
  0xbf   : > { %2612 = vst [vmem:[#allocation4_spill] sm:$0xff] %v2052_v13  ;;  %1200 = vmatpush.msrb.mxu2 %v237_v30  ;;  %1229 = vmatpush.msrb.mxu3 %v238_v31 }
  0xc0   : > { %2613 = vst [vmem:[#allocation5_spill] sm:$0xff] %v2054_v14  ;;  %1142 = vmatpush.msrb.mxu0 %v235_v38  ;;  %1171 = vmatpush.msrb.mxu1 %v236_v39 }
  0xc1   : > { %2614 = vst [vmem:[#allocation6_spill] sm:$0xff] %v2056_v15  ;;  %1605 = vmatmul.msk.f32.gmra.mxu0 %vm303_vm0, %v1756_v29  ;;  %1609 = vmatmul.msk.f32.gmra.mxu1 %vm303_vm0, %v1756_v29 }
  0xc2   : > { %1613 = vmatmul.msk.f32.gmra.mxu2 %vm303_vm0, %v1756_v29  ;;  %1617 = vmatmul.msk.f32.gmra.mxu3 %vm303_vm0, %v1756_v29 }
  0xc3   : > { %1201 = vmatpush.msrb.mxu2 %v205_v41  ;;  %1230 = vmatpush.msrb.mxu3 %v206_v48 }
  0xc4   : > { %1143 = vmatpush.msrb.mxu0 %v203_v59  ;;  %1172 = vmatpush.msrb.mxu1 %v204_v0 }
  0xc5   : > { %v2070_v21 = vpop.f32.mrf.mxu2  ;;  %v2072_v22 = vpop.f32.mrf.mxu3  ;;  %1361 = vperm.xlu1 %1666, %v1343_v19  }
  0xc6   : > { %2615 = vst [vmem:[#allocation7_spill] sm:$0xff] %v2070_v21  ;;  %v2074_v23 = vpop.f32.mrf.mxu0  ;;  %v2076_v24 = vpop.f32.mrf.mxu1 }
  0xc7   : > { %2616 = vst [vmem:[#allocation8_spill] sm:$0xff] %v2072_v22 }
  0xc8   : > { %2617 = vst [vmem:[#allocation9_spill] sm:$0xff] %v2074_v23 }
  0xc9   : > { %2618 = vst [vmem:[#allocation10_spill] sm:$0xff] %v2076_v24  ;;  %1606 = vmatmul.msk.f32.gmra.mxu0 %vm303_vm0, %v1781_v42  ;;  %1610 = vmatmul.msk.f32.gmra.mxu1 %vm303_vm0, %v1781_v42 }
  0xca   : > { %1614 = vmatmul.msk.f32.gmra.mxu2 %vm303_vm0, %v1781_v42  ;;  %1618 = vmatmul.msk.f32.gmra.mxu3 %vm303_vm0, %v1781_v42 }
  0xcd   : > { %v2093_v32 = vpop.f32.mrf.mxu2  ;;  %v2095_v33 = vpop.f32.mrf.mxu3 }
  0xce   : > { %2619 = vst [vmem:[#allocation11_spill] sm:$0xff] %v2093_v32  ;;  %v2097_v34 = vpop.f32.mrf.mxu0  ;;  %v2099_v35 = vpop.f32.mrf.mxu1 }
  0xcf   : > { %2620 = vst [vmem:[#allocation12_spill] sm:$0xff] %v2095_v33 }
  0xd0   : > { %2621 = vst [vmem:[#allocation13_spill] sm:$0xff] %v2097_v34 }
  0xd1   : > { %2622 = vst [vmem:[#allocation14_spill] sm:$0xff] %v2099_v35  ;;  %1607 = vmatmul.msk.f32.gmra.mxu0 %vm303_vm0, %v1798_v47  ;;  %1611 = vmatmul.msk.f32.gmra.mxu1 %vm303_vm0, %v1798_v47 }
  0xd2   : > { %1615 = vmatmul.msk.f32.gmra.mxu2 %vm303_vm0, %v1798_v47  ;;  %1619 = vmatmul.msk.f32.gmra.mxu3 %vm303_vm0, %v1798_v47 }
  0xd5   : > { %v2116_v49 = vpop.f32.mrf.mxu2  ;;  %v2118_v50 = vpop.f32.mrf.mxu3 }
  0xd6   : > { %2623 = vst [vmem:[#allocation15_spill] sm:$0xff] %v2116_v49  ;;  %v2120_v51 = vpop.f32.mrf.mxu0  ;;  %v2122_v56 = vpop.f32.mrf.mxu1 }
  0xd7   : > { %2624 = vst [vmem:[#allocation16_spill] sm:$0xff] %v2118_v50 }
  0xd9   : > { %1620 = vmatmul.msk.f32.vlgmr.msra.gmra.mxu0 %vm303_vm0, %v1731_v16  ;;  %1624 = vmatmul.msk.f32.vlgmr.msra.gmra.mxu1 %vm303_vm0, %v1731_v16 }
  0xda   : > { %1628 = vmatmul.msk.f32.vlgmr.msra.gmra.mxu2 %vm303_vm0, %v1731_v16  ;;  %1632 = vmatmul.msk.f32.vlgmr.msra.gmra.mxu3 %vm303_vm0, %v1731_v16 }
  0xdd   : > { %v2141_v2 = vpop.f32.mrf.mxu2  ;;  %v2143_v3 = vpop.f32.mrf.mxu3 }
  0xde   : > { %v2149_v10 = vpop.f32.mrf.mxu0  ;;  %v2151_v11 = vpop.f32.mrf.mxu1 }
  0xe1   : > { %1621 = vmatmul.msk.f32.gmra.mxu0 %vm303_vm0, %v1756_v29  ;;  %1625 = vmatmul.msk.f32.gmra.mxu1 %vm303_vm0, %v1756_v29 }
  0xe2   : > { %1629 = vmatmul.msk.f32.gmra.mxu2 %vm303_vm0, %v1756_v29  ;;  %1633 = vmatmul.msk.f32.gmra.mxu3 %vm303_vm0, %v1756_v29 }
  0xe5   : > { %v2168_v20 = vpop.f32.mrf.mxu2  ;;  %v2170_v25 = vpop.f32.mrf.mxu3 }
  0xe6   : > { %v2176_v28 = vpop.f32.mrf.mxu0  ;;  %v2178_v30 = vpop.f32.mrf.mxu1 }
  0xe9   : > { %1622 = vmatmul.msk.f32.gmra.mxu0 %vm303_vm0, %v1781_v42  ;;  %1626 = vmatmul.msk.f32.gmra.mxu1 %vm303_vm0, %v1781_v42 }
  0xea   : > { %1630 = vmatmul.msk.f32.gmra.mxu2 %vm303_vm0, %v1781_v42  ;;  %1634 = vmatmul.msk.f32.gmra.mxu3 %vm303_vm0, %v1781_v42 }
  0xed   : > { %v2192_v39 = vpop.f32.mrf.mxu2  ;;  %v2194_v40 = vpop.f32.mrf.mxu3 }
  0xee   : > { %v2200_v59 = vpop.f32.mrf.mxu0  ;;  %v2202_v0 = vpop.f32.mrf.mxu1 }
  0xf1   : > { %1623 = vmatmul.msk.f32.gmra.mxu0 %vm303_vm0, %v1798_v47  ;;  %1627 = vmatmul.msk.f32.gmra.mxu1 %vm303_vm0, %v1798_v47 }
  0xf2   : > { %1631 = vmatmul.msk.f32.gmra.mxu2 %vm303_vm0, %v1798_v47  ;;  %1635 = vmatmul.msk.f32.gmra.mxu3 %vm303_vm0, %v1798_v47 }
  0xf5   : > { %v2216_v48 = vpop.f32.mrf.mxu2  ;;  %v2218_v41 = vpop.f32.mrf.mxu3 }
  0xf6   : > { %v2224_v38 = vpop.f32.mrf.mxu0  ;;  %v2226_v31 = vpop.f32.mrf.mxu1 }
  0xf7   : > { %2625 = vst [vmem:[#allocation17_spill] sm:$0xff] %v2224_v38 }
  0xf8   : > { %2626 = vst [vmem:[#allocation18_spill] sm:$0xff] %v2226_v31 }
  0xf9   : > { %1636 = vmatmul.msk.f32.vlgmr.msrb.gmra.mxu0 %vm303_vm0, %v1731_v16  ;;  %1640 = vmatmul.msk.f32.vlgmr.msrb.gmra.mxu1 %vm303_vm0, %v1731_v16 }
  0xfa   : > { %1644 = vmatmul.msk.f32.vlgmr.msrb.gmra.mxu2 %vm303_vm0, %v1731_v16  ;;  %1648 = vmatmul.msk.f32.vlgmr.msrb.gmra.mxu3 %vm303_vm0, %v1731_v16 }
  0xfd   : > { %v2240_v19 = vpop.f32.mrf.mxu2  ;;  %v2242_v1 = vpop.f32.mrf.mxu3 }
  0xfe   : > { %2627 = vst [vmem:[#allocation19_spill] sm:$0xff] %v2240_v19  ;;  %v2248_v18 = vpop.f32.mrf.mxu0  ;;  %v2250_v17 = vpop.f32.mrf.mxu1 }
  0xff   : > { %2628 = vst [vmem:[#allocation20_spill] sm:$0xff] %v2242_v1 }
 0x100   : > { %2629 = vst [vmem:[#allocation21_spill] sm:$0xff] %v2248_v18 }
 0x101   : > { %2630 = vst [vmem:[#allocation22_spill] sm:$0xff] %v2250_v17  ;;  %1637 = vmatmul.msk.f32.gmra.mxu0 %vm303_vm0, %v1756_v29  ;;  %1641 = vmatmul.msk.f32.gmra.mxu1 %vm303_vm0, %v1756_v29 }
 0x102   : > { %1645 = vmatmul.msk.f32.gmra.mxu2 %vm303_vm0, %v1756_v29  ;;  %1649 = vmatmul.msk.f32.gmra.mxu3 %vm303_vm0, %v1756_v29 }
 0x105   : > { %v2264_v26 = vpop.f32.mrf.mxu2  ;;  %v2266_v27 = vpop.f32.mrf.mxu3 }
 0x106   : > { %2631 = vst [vmem:[#allocation23_spill] sm:$0xff] %v2264_v26  ;;  %v2272_v8 = vpop.f32.mrf.mxu0  ;;  %v2274_v58 = vpop.f32.mrf.mxu1 }
 0x107   : > { %2632 = vst [vmem:[#allocation24_spill] sm:$0xff] %v2266_v27 }
 0x108   : > { %2633 = vst [vmem:[#allocation25_spill] sm:$0xff] %v2272_v8 }
 0x109   : > { %2634 = vst [vmem:[#allocation26_spill] sm:$0xff] %v2274_v58  ;;  %1638 = vmatmul.msk.f32.gmra.mxu0 %vm303_vm0, %v1781_v42  ;;  %1642 = vmatmul.msk.f32.gmra.mxu1 %vm303_vm0, %v1781_v42 }
 0x10a   : > { %1646 = vmatmul.msk.f32.gmra.mxu2 %vm303_vm0, %v1781_v42  ;;  %1650 = vmatmul.msk.f32.gmra.mxu3 %vm303_vm0, %v1781_v42 }
 0x10d   : > { %v2288_v16 = vpop.f32.mrf.mxu2  ;;  %v2290_v9 = vpop.f32.mrf.mxu3 }
 0x10e   : > { %2635 = vst [vmem:[#allocation27_spill] sm:$0xff] %v2288_v16  ;;  %v2296_v58 = vpop.f32.mrf.mxu0  ;;  %v2298_v24 = vpop.f32.mrf.mxu1 }
 0x10f   : > { %2636 = vst [vmem:[#allocation28_spill] sm:$0xff] %v2290_v9 }
 0x110   : > { %2637 = vst [vmem:[#allocation29_spill] sm:$0xff] %v2296_v58 }
 0x111   : > { %2638 = vst [vmem:[#allocation30_spill] sm:$0xff] %v2298_v24  ;;  %1639 = vmatmul.msk.f32.gmra.mxu0 %vm303_vm0, %v1798_v47  ;;  %1643 = vmatmul.msk.f32.gmra.mxu1 %vm303_vm0, %v1798_v47 }
 0x112   : > { %1647 = vmatmul.msk.f32.gmra.mxu2 %vm303_vm0, %v1798_v47  ;;  %1651 = vmatmul.msk.f32.gmra.mxu3 %vm303_vm0, %v1798_v47 }
 0x115   : > { %v2312_v29 = vpop.f32.mrf.mxu2  ;;  %v2314_v57 = vpop.f32.mrf.mxu3 }
 0x116   : > { %2639 = vst [vmem:[#allocation31_spill] sm:$0xff] %v2312_v29  ;;  %v797_v24 = vpop.f32.mrf.mxu0  ;;  %v826_v35 = vpop.f32.mrf.mxu1 }
 0x117   : > { %2640 = vst [vmem:[#allocation32_spill] sm:$0xff] %v2314_v57 }
 0x11d   : > { %v855_v58 = vpop.f32.mrf.mxu2  ;;  %v884_v34 = vpop.f32.mrf.mxu3 }
 0x11e   : > { %v800_v9 = vpop.f32.mrf.mxu0  ;;  %v829_v33 = vpop.f32.mrf.mxu1 }
 0x125   : > { %v2320_v16 = vpop.f32.mrf.mxu2  ;;  %v2322_v32 = vpop.f32.mrf.mxu3 }
 0x126   : > { %v2324_v47 = vpop.f32.mrf.mxu0  ;;  %v2326_v23 = vpop.f32.mrf.mxu1 }
 0x12d   : > { %v2328_v27 = vpop.f32.mrf.mxu2  ;;  %v2330_v8 = vpop.f32.mrf.mxu3 }
 0x12e   : > { %v2332_v29 = vpop.f32.mrf.mxu0  ;;  %v2334_v42 = vpop.f32.mrf.mxu1 }
 0x135   : > { %v2336_v57 = vpop.f32.mrf.mxu2  ;;  %v2338_v50 = vpop.f32.mrf.mxu3 }
 0x136   : > { %v2340_v49 = vpop.f32.mrf.mxu0  ;;  %v2342_v22 = vpop.f32.mrf.mxu1 }
 0x13d   : > { %v2344_v26 = vpop.f32.mrf.mxu2  ;;  %v2346_v21 = vpop.f32.mrf.mxu3 }
 0x13e   : > { %2641 = vst [vmem:[#allocation33_spill] sm:$0xff] %v2344_v26  ;;  %v2348_v17 = vpop.f32.mrf.mxu0  ;;  %v2350_v15 = vpop.f32.mrf.mxu1 }
 0x13f   : > { %2642 = vst [vmem:[#allocation34_spill] sm:$0xff] %v2346_v21 }
 0x140   : > { %2643 = vst [vmem:[#allocation35_spill] sm:$0xff] %v2348_v17  ;;  %v2368_v17 = vpop.permute.xlu0 %1346 }
 0x141   : > { %2644 = vst [vmem:[#allocation36_spill] sm:$0xff] %v2350_v15 }
 0x145   : > { %v2352_v18 = vpop.f32.mrf.mxu2  ;;  %v2354_v14 = vpop.f32.mrf.mxu3 }
 0x146   : > { %2645 = vst [vmem:[#allocation37_spill] sm:$0xff] %v2352_v18  ;;  %v2356_v1 = vpop.f32.mrf.mxu0  ;;  %v2358_v13 = vpop.f32.mrf.mxu1 }
 0x147   : > { %2646 = vst [vmem:[#allocation38_spill] sm:$0xff] %v2354_v14 }
 0x148   : > { %2647 = vst [vmem:[#allocation39_spill] sm:$0xff] %v2356_v1 }
 0x149   : > { %2648 = vst [vmem:[#allocation40_spill] sm:$0xff] %v2358_v13  ;;  %v2653_v13 = vmax.f32 %v1954_v36, %v2120_v51 }
 0x14d   : > { %v2360_v19 = vpop.f32.mrf.mxu2  ;;  %v2362_v12 = vpop.f32.mrf.mxu3 }
 0x14e   : > { %2649 = vst [vmem:[#allocation41_spill] sm:$0xff] %v2360_v19  ;;  %v2364_v26 = vpop.f32.mrf.mxu0  ;;  %v2366_v21 = vpop.f32.mrf.mxu1 }
 0x14f   : > { %2650 = vst [vmem:[#allocation42_spill] sm:$0xff] %v2362_v12  ;;  %v2654_v12 = vmax.f32 %v1956_v37, %v2122_v56 }
 0x150   : > { %2651 = vst [vmem:[#allocation43_spill] sm:$0xff] %v2364_v26 }
 0x151   : > { %2652 = vst [vmem:[#allocation44_spill] sm:$0xff] %v2366_v21 }
 0x155   : > { %v2370_v15 = vpop.f32.mrf.mxu2  ;;  %v2372_v18 = vpop.f32.mrf.mxu3 }
 0x156   : > { %v1029_v14 = vpop.f32.mrf.mxu0  ;;  %v1058_v31 = vpop.f32.mrf.mxu1 }
 0x157   : > { %v1276_v7 = vmax.f32 %v797_v24, %v1029_v14  ;;  %v1277_v1 = vmax.f32 %v826_v35, %v1058_v31 }
 0x159   : > { %v1308_v19 = vmax.f32 %v2653_v13, %v1276_v7  ;;  %v1309_v26 = vmax.f32 %v2654_v12, %v1277_v1  ;;  %v2656_v1 = vmax.f32 %v1972_v44, %v2143_v3 }
 0x15b   : > { %v1364_v21 = vadd.f32 %v2368_v17, %v1308_v19  ;;  %v1365_v38 = vadd.f32 %v2368_v17, %v1309_v26  ;;  %v2655_v26 = vmax.f32 %v1970_v43, %v2141_v2 }
 0x15d   : > { %v1396_v14 = vmax.f32 %v1364_v21, 0.0  ;;  %v1397_v24 = vmax.f32 %v1365_v38, 0.0  ;;  %v1087_v36 = vpop.f32.mrf.mxu2  ;;  %v1116_v7 = vpop.f32.mrf.mxu3 }
 0x15e   : > { %v1278_v13 = vmax.f32 %v855_v58, %v1087_v36  ;;  %v1279_v35 = vmax.f32 %v884_v34, %v1116_v7  ;;  %v1032_v37 = vpop.f32.mrf.mxu0  ;;  %v1061_v12 = vpop.f32.mrf.mxu1  ;;  %v2657_v34 = vmax.f32 %v1974_v45, %v2149_v10 }
 0x15f   : > { %1428 = vst [vmem:[%s2386_s10] sm:$0xff] %v1396_v14  ;;  %v1284_v51 = vmax.f32 %v800_v9, %v1032_v37  ;;  %v1285_v56 = vmax.f32 %v829_v33, %v1061_v12  ;;  %v2396_v38 = vpop.permute.xlu0 %1351  ;;  %v2658_v9 = vmax.f32 %v1976_v46, %v2151_v11 }
 0x160   : > { %1429 = vst [vmem:[%s2386_s10 + $0x8] sm:$0xff] %v1397_v24  ;;  %v1310_v31 = vmax.f32 %v2655_v26, %v1278_v13  ;;  %v1311_v21 = vmax.f32 %v2656_v1, %v1279_v35  ;;  %v2408_v24 = vpop.permute.xlu1 %1356  ;;  %v2660_v26 = vmax.f32 %v1992_v53, %v2170_v25 }
 0x161   : > { %v1316_v58 = vmax.f32 %v2657_v34, %v1284_v51  ;;  %v1317_v33 = vmax.f32 %v2658_v9, %v1285_v56  ;;  %v2659_v51 = vmax.f32 %v1990_v52, %v2168_v20 }
 0x162   : > { %v1366_v19 = vadd.f32 %v2368_v17, %v1310_v31  ;;  %v1367_v43 = vadd.f32 %v2368_v17, %v1311_v21 }
 0x163   : > { %v1372_v2 = vadd.f32 %v2396_v38, %v1316_v58  ;;  %v1373_v44 = vadd.f32 %v2396_v38, %v1317_v33 }
 0x164   : > { %v1398_v3 = vmax.f32 %v1366_v19, 0.0  ;;  %v1399_v14 = vmax.f32 %v1367_v43, 0.0 }
 0x165   : > { %v1404_v45 = vmax.f32 %v1372_v2, 0.0  ;;  %v1405_v10 = vmax.f32 %v1373_v44, 0.0  ;;  %v1090_v36 = vpop.f32.mrf.mxu2  ;;  %v1119_v46 = vpop.f32.mrf.mxu3  ;;  %v2663_v2 = vmax.f32 %v2010_v60, %v2192_v39 }
 0x166   : > { %1430 = vst [vmem:[%s2386_s10 + $0x10] sm:$0xff] %v1398_v3  ;;  %v1286_v11 = vmax.f32 %v2320_v16, %v1090_v36  ;;  %v1287_v7 = vmax.f32 %v2322_v32, %v1119_v46  ;;  %v1035_v13 = vpop.f32.mrf.mxu0  ;;  %v1064_v35 = vpop.f32.mrf.mxu1  ;;  %v2661_v32 = vmax.f32 %v1994_v54, %v2176_v28  ;;  %v2664_v3 = vmax.f32 %v2012_v61, %v2194_v40 }
 0x167   : > { %1431 = vst [vmem:[%s2386_s10 + $0x18] sm:$0xff] %v1399_v14  ;;  %v1292_v37 = vmax.f32 %v2324_v47, %v1035_v13  ;;  %v1293_v12 = vmax.f32 %v2326_v23, %v1064_v35  ;;  %v2662_v47 = vmax.f32 %v1996_v55, %v2178_v30 }
 0x168   : > { %1436 = vst [vmem:[%s2386_s10 + $0x40] sm:$0xff] %v1404_v45  ;;  %v1318_v56 = vmax.f32 %v2659_v51, %v1286_v11  ;;  %v1319_v31 = vmax.f32 %v2660_v26, %v1287_v7 }
 0x169   : > { %1437 = vst [vmem:[%s2386_s10 + $0x48] sm:$0xff] %v1405_v10  ;;  %v1324_v16 = vmax.f32 %v2661_v32, %v1292_v37  ;;  %v1325_v1 = vmax.f32 %v2662_v47, %v1293_v12  ;;  %v2667_v12 = vmax.f32 %v2030_v4, %v2216_v48  ;;  %v2671_v32 = vld [vmem:[#allocation2_spill] sm:$0xff] }
 0x16a   : > { %v1374_v23 = vadd.f32 %v2396_v38, %v1318_v56  ;;  %v1375_v52 = vadd.f32 %v2396_v38, %v1319_v31  ;;  %v2668_v56 = vmax.f32 %v2032_v5, %v2218_v41 }
 0x16b   : > { %v1380_v20 = vadd.f32 %v2408_v24, %v1324_v16  ;;  %v1381_v53 = vadd.f32 %v2408_v24, %v1325_v1  ;;  %v2672_v16 = vld [vmem:[#allocation18_spill] sm:$0xff] }
 0x16c   : > { %v1406_v25 = vmax.f32 %v1374_v23, 0.0  ;;  %v1407_v21 = vmax.f32 %v1375_v52, 0.0 }
 0x16d   : > { %v1412_v34 = vmax.f32 %v1380_v20, 0.0  ;;  %v1413_v54 = vmax.f32 %v1381_v53, 0.0  ;;  %v1093_v28 = vpop.f32.mrf.mxu2  ;;  %v1122_v58 = vpop.f32.mrf.mxu3  ;;  %v2674_v53 = vld [vmem:[#allocation33_spill] sm:$0xff] }
 0x16e   : > { %1438 = vst [vmem:[%s2386_s10 + $0x50] sm:$0xff] %v1406_v25  ;;  %v1294_v55 = vmax.f32 %v2328_v27, %v1093_v28  ;;  %v1295_v30 = vmax.f32 %v2330_v8, %v1122_v58  ;;  %v1038_v9 = vpop.f32.mrf.mxu0  ;;  %v1067_v33 = vpop.f32.mrf.mxu1  ;;  %v2665_v8 = vmax.f32 %v2014_v62, %v2200_v59  ;;  %v2676_v58 = vld [vmem:[#allocation35_spill] sm:$0xff] }
 0x16f   : > { %1439 = vst [vmem:[%s2386_s10 + $0x58] sm:$0xff] %v1407_v21  ;;  %v1300_v19 = vmax.f32 %v2332_v29, %v1038_v9  ;;  %v1301_v43 = vmax.f32 %v2334_v42, %v1067_v33  ;;  %v2447_v27 = vpop.permute.xlu1 %1361  ;;  %v2666_v29 = vmax.f32 %v2016_v63, %v2202_v0  ;;  %v2675_v21 = vld [vmem:[#allocation34_spill] sm:$0xff]  ;;  %v2678_v33 = vld [vmem:[#allocation3_spill] sm:$0xff] }
 0x170   : > { %1444 = vst [vmem:[%s2386_s10 + $0x80] sm:$0xff] %v1412_v34  ;;  %v1326_v44 = vmax.f32 %v2663_v2, %v1294_v55  ;;  %v1327_v14 = vmax.f32 %v2664_v3, %v1295_v30  ;;  %v2677_v30 = vld [vmem:[#allocation36_spill] sm:$0xff] }
 0x171   : > { %1445 = vst [vmem:[%s2386_s10 + $0x88] sm:$0xff] %v1413_v54  ;;  %v1332_v45 = vmax.f32 %v2665_v8, %v1300_v19  ;;  %v1333_v42 = vmax.f32 %v2666_v29, %v1301_v43  ;;  %v2679_v19 = vld [vmem:[#allocation19_spill] sm:$0xff]  ;;  %v2682_v3 = vld [vmem:[#allocation20_spill] sm:$0xff]  ;;  %v2685_v29 = vld [vmem:[#allocation21_spill] sm:$0xff] }
 0x172   : > { %v1382_v60 = vadd.f32 %v2408_v24, %v1326_v44  ;;  %v1383_v39 = vadd.f32 %v2408_v24, %v1327_v14  ;;  %v2680_v43 = vmax.f32 %v2678_v33, %v2679_v19  ;;  %v2681_v44 = vld [vmem:[#allocation4_spill] sm:$0xff] }
 0x173   : > { %v1388_v61 = vadd.f32 %v2447_v27, %v1332_v45  ;;  %v1389_v40 = vadd.f32 %v2447_v27, %v1333_v42  ;;  %v2683_v14 = vmax.f32 %v2681_v44, %v2682_v3  ;;  %v2684_v45 = vld [vmem:[#allocation5_spill] sm:$0xff]  ;;  %v2707_v3 = vld [vmem:[#allocation42_spill] sm:$0xff] }
 0x174   : > { %v1414_v10 = vmax.f32 %v1382_v60, 0.0  ;;  %v1415_v36 = vmax.f32 %v1383_v39, 0.0  ;;  %v2686_v42 = vmax.f32 %v2684_v45, %v2685_v29  ;;  %v2687_v39 = vld [vmem:[#allocation6_spill] sm:$0xff] }
 0x175   : > { %v1420_v46 = vmax.f32 %v1388_v61, 0.0  ;;  %v1421_v62 = vmax.f32 %v1389_v40, 0.0  ;;  %v1096_v59 = vpop.f32.mrf.mxu2  ;;  %v1125_v11 = vpop.f32.mrf.mxu3  ;;  %v2688_v61 = vld [vmem:[#allocation22_spill] sm:$0xff] }
 0x176   : > { %1446 = vst [vmem:[%s2386_s10 + $0x90] sm:$0xff] %v1414_v10  ;;  %v1302_v63 = vmax.f32 %v2336_v57, %v1096_v59  ;;  %v1303_v0 = vmax.f32 %v2338_v50, %v1125_v11  ;;  %v1145_v7 = vpop.f32.mrf.mxu0  ;;  %v1174_v13 = vpop.f32.mrf.mxu1  ;;  %v2669_v50 = vld [vmem:[#allocation17_spill] sm:$0xff]  ;;  %v2689_v40 = vmax.f32 %v2687_v39, %v2688_v61  ;;  %v2710_v39 = vld [vmem:[#allocation11_spill] sm:$0xff] }
 0x177   : > { %1447 = vst [vmem:[%s2386_s10 + $0x98] sm:$0xff] %v1415_v36  ;;  %v1280_v35 = vmax.f32 %v2340_v49, %v1145_v7  ;;  %v1281_v37 = vmax.f32 %v2342_v22, %v1174_v13  ;;  %v2670_v57 = vmax.f32 %v2034_v6, %v2669_v50  ;;  %v2673_v49 = vmax.f32 %v2671_v32, %v2672_v16  ;;  %v2694_v16 = vld [vmem:[#allocation7_spill] sm:$0xff] }
 0x178   : > { %1452 = vst [vmem:[%s2386_s10 + $0xc0] sm:$0xff] %v1420_v46  ;;  %v1334_v51 = vmax.f32 %v2667_v12, %v1302_v63  ;;  %v1335_v26 = vmax.f32 %v2668_v56, %v1303_v0  ;;  %v2711_v61 = vld [vmem:[#allocation27_spill] sm:$0xff] }
 0x179   : > { %1453 = vst [vmem:[%s2386_s10 + $0xc8] sm:$0xff] %v1421_v62  ;;  %v1312_v31 = vmax.f32 %v2670_v57, %v1280_v35  ;;  %v1313_v47 = vmax.f32 %v2673_v49, %v1281_v37  ;;  %v2690_v37 = vld [vmem:[#allocation37_spill] sm:$0xff]  ;;  %v2695_v49 = vld [vmem:[#allocation23_spill] sm:$0xff] }
 0x17a   : > { %v1390_v22 = vadd.f32 %v2447_v27, %v1334_v51  ;;  %v1391_v4 = vadd.f32 %v2447_v27, %v1335_v26  ;;  %v2691_v51 = vld [vmem:[#allocation38_spill] sm:$0xff] }
 0x17b   : > { %v1368_v48 = vadd.f32 %v2368_v17, %v1312_v31  ;;  %v1369_v5 = vadd.f32 %v2368_v17, %v1313_v47  ;;  %v2693_v31 = vld [vmem:[#allocation40_spill] sm:$0xff]  ;;  %v2696_v47 = vmax.f32 %v2694_v16, %v2695_v49 }
 0x17c   : > { %v1422_v41 = vmax.f32 %v1390_v22, 0.0  ;;  %v1423_v1 = vmax.f32 %v1391_v4, 0.0  ;;  %v2697_v4 = vld [vmem:[#allocation8_spill] sm:$0xff] }
 0x17d   : > { %v1400_v23 = vmax.f32 %v1368_v48, 0.0  ;;  %v1401_v6 = vmax.f32 %v1369_v5, 0.0  ;;  %v1203_v52 = vpop.f32.mrf.mxu2  ;;  %v1232_v20 = vpop.f32.mrf.mxu3  ;;  %v2698_v48 = vld [vmem:[#allocation24_spill] sm:$0xff] }
 0x17e   : > { %1454 = vst [vmem:[%s2386_s10 + $0xd0] sm:$0xff] %v1422_v41  ;;  %v1282_v25 = vmax.f32 %v2674_v53, %v1203_v52  ;;  %v1283_v34 = vmax.f32 %v2675_v21, %v1232_v20  ;;  %v1148_v54 = vpop.f32.mrf.mxu0  ;;  %v1177_v28 = vpop.f32.mrf.mxu1  ;;  %v2699_v5 = vmax.f32 %v2697_v4, %v2698_v48  ;;  %v2703_v20 = vld [vmem:[#allocation10_spill] sm:$0xff]  ;;  %v2723_v4 = vld [vmem:[#allocation31_spill] sm:$0xff] }
 0x17f   : > { %1455 = vst [vmem:[%s2386_s10 + $0xd8] sm:$0xff] %v1423_v1  ;;  %v1288_v55 = vmax.f32 %v2676_v58, %v1148_v54  ;;  %v1289_v9 = vmax.f32 %v2677_v30, %v1177_v28  ;;  %v2700_v1 = vld [vmem:[#allocation9_spill] sm:$0xff]  ;;  %v2704_v53 = vld [vmem:[#allocation26_spill] sm:$0xff] }
 0x180   : > { %1432 = vst [vmem:[%s2386_s10 + $0x20] sm:$0xff] %v1400_v23  ;;  %v1314_v2 = vmax.f32 %v2680_v43, %v1282_v25  ;;  %v1315_v8 = vmax.f32 %v2683_v14, %v1283_v34  ;;  %v2701_v23 = vld [vmem:[#allocation25_spill] sm:$0xff]  ;;  %v2705_v25 = vmax.f32 %v2703_v20, %v2704_v53 }
 0x181   : > { %1433 = vst [vmem:[%s2386_s10 + $0x28] sm:$0xff] %v1401_v6  ;;  %v1320_v60 = vmax.f32 %v2686_v42, %v1288_v55  ;;  %v1321_v10 = vmax.f32 %v2689_v40, %v1289_v9  ;;  %v2702_v6 = vmax.f32 %v2700_v1, %v2701_v23  ;;  %v2709_v42 = vld [vmem:[#allocation44_spill] sm:$0xff]  ;;  %v2712_v40 = vmax.f32 %v2710_v39, %v2711_v61 }
 0x182   : > { %v1370_v36 = vadd.f32 %v2368_v17, %v1314_v2  ;;  %v1371_v46 = vadd.f32 %v2368_v17, %v1315_v8  ;;  %v2692_v17 = vld [vmem:[#allocation39_spill] sm:$0xff]  ;;  %v2706_v2 = vld [vmem:[#allocation41_spill] sm:$0xff]  ;;  %v2726_v1 = vld [vmem:[#allocation32_spill] sm:$0xff] }
 0x183   : > { %v1376_v62 = vadd.f32 %v2396_v38, %v1320_v60  ;;  %v1377_v59 = vadd.f32 %v2396_v38, %v1321_v10 }
 0x184   : > { %v1402_v11 = vmax.f32 %v1370_v36, 0.0  ;;  %v1403_v63 = vmax.f32 %v1371_v46, 0.0  ;;  %v2713_v36 = vld [vmem:[#allocation12_spill] sm:$0xff] }
 0x185   : > { %v1408_v0 = vmax.f32 %v1376_v62, 0.0  ;;  %v1409_v7 = vmax.f32 %v1377_v59, 0.0  ;;  %v1206_v13 = vpop.f32.mrf.mxu2  ;;  %v1235_v35 = vpop.f32.mrf.mxu3  ;;  %v2714_v46 = vld [vmem:[#allocation28_spill] sm:$0xff] }
 0x186   : > { %1434 = vst [vmem:[%s2386_s10 + $0x30] sm:$0xff] %v1402_v11  ;;  %v1290_v12 = vmax.f32 %v2690_v37, %v1206_v13  ;;  %v1291_v56 = vmax.f32 %v2691_v51, %v1235_v35  ;;  %v1151_v26 = vpop.f32.mrf.mxu0  ;;  %v1180_v50 = vpop.f32.mrf.mxu1  ;;  %v2715_v62 = vmax.f32 %v2713_v36, %v2714_v46  ;;  %v2716_v11 = vld [vmem:[#allocation13_spill] sm:$0xff]  ;;  %v2719_v13 = vld [vmem:[#allocation14_spill] sm:$0xff] }
 0x187   : > { %1435 = vst [vmem:[%s2386_s10 + $0x38] sm:$0xff] %v1403_v63  ;;  %v1296_v57 = vmax.f32 %v2692_v17, %v1151_v26  ;;  %v1297_v32 = vmax.f32 %v2693_v31, %v1180_v50  ;;  %v2717_v63 = vld [vmem:[#allocation29_spill] sm:$0xff]  ;;  %v2720_v35 = vld [vmem:[#allocation30_spill] sm:$0xff] }
 0x188   : > { %1440 = vst [vmem:[%s2386_s10 + $0x60] sm:$0xff] %v1408_v0  ;;  %v1322_v22 = vmax.f32 %v2696_v47, %v1290_v12  ;;  %v1323_v41 = vmax.f32 %v2699_v5, %v1291_v56  ;;  %v2718_v0 = vmax.f32 %v2716_v11, %v2717_v63  ;;  %v2721_v37 = vmax.f32 %v2719_v13, %v2720_v35 }
 0x189   : > { %1441 = vst [vmem:[%s2386_s10 + $0x68] sm:$0xff] %v1409_v7  ;;  %v1328_v52 = vmax.f32 %v2702_v6, %v1296_v57  ;;  %v1329_v21 = vmax.f32 %v2705_v25, %v1297_v32 }
 0x18a   : > { %v1378_v34 = vadd.f32 %v2396_v38, %v1322_v22  ;;  %v1379_v54 = vadd.f32 %v2396_v38, %v1323_v41  ;;  %v2708_v38 = vld [vmem:[#allocation43_spill] sm:$0xff]  ;;  %v2725_v41 = vld [vmem:[#allocation16_spill] sm:$0xff] }
 0x18b   : > { %v1384_v28 = vadd.f32 %v2408_v24, %v1328_v52  ;;  %v1385_v58 = vadd.f32 %v2408_v24, %v1329_v21  ;;  %v2727_v23 = vmax.f32 %v2725_v41, %v2726_v1 }
 0x18c   : > { %v1410_v55 = vmax.f32 %v1378_v34, 0.0  ;;  %v1411_v30 = vmax.f32 %v1379_v54, 0.0 }
 0x18d   : > { %v1416_v9 = vmax.f32 %v1384_v28, 0.0  ;;  %v1417_v33 = vmax.f32 %v1385_v58, 0.0  ;;  %v1209_v19 = vpop.f32.mrf.mxu2  ;;  %v1238_v43 = vpop.f32.mrf.mxu3 }
 0x18e   : > { %1442 = vst [vmem:[%s2386_s10 + $0x70] sm:$0xff] %v1410_v55  ;;  %v1298_v44 = vmax.f32 %v2706_v2, %v1209_v19  ;;  %v1299_v14 = vmax.f32 %v2707_v3, %v1238_v43  ;;  %v1154_v8 = vpop.f32.mrf.mxu0  ;;  %v1183_v45 = vpop.f32.mrf.mxu1 }
 0x18f   : > { %1443 = vst [vmem:[%s2386_s10 + $0x78] sm:$0xff] %v1411_v30  ;;  %v1304_v29 = vmax.f32 %v2708_v38, %v1154_v8  ;;  %v1305_v60 = vmax.f32 %v2709_v42, %v1183_v45 }
 0x190   : > { %1448 = vst [vmem:[%s2386_s10 + $0xa0] sm:$0xff] %v1416_v9  ;;  %v1330_v10 = vmax.f32 %v2712_v40, %v1298_v44  ;;  %v1331_v59 = vmax.f32 %v2715_v62, %v1299_v14 }
 0x191   : > { %1449 = vst [vmem:[%s2386_s10 + $0xa8] sm:$0xff] %v1417_v33  ;;  %v1336_v7 = vmax.f32 %v2718_v0, %v1304_v29  ;;  %v1337_v12 = vmax.f32 %v2721_v37, %v1305_v60 }
 0x192   : > { %v1386_v51 = vadd.f32 %v2408_v24, %v1330_v10  ;;  %v1387_v56 = vadd.f32 %v2408_v24, %v1331_v59  ;;  %v2722_v24 = vld [vmem:[#allocation15_spill] sm:$0xff] }
 0x193   : > { %v1392_v26 = vadd.f32 %v2447_v27, %v1336_v7  ;;  %v1393_v50 = vadd.f32 %v2447_v27, %v1337_v12  ;;  %v2724_v48 = vmax.f32 %v2722_v24, %v2723_v4 }
 0x194   : > { %v1418_v17 = vmax.f32 %v1386_v51, 0.0  ;;  %v1419_v57 = vmax.f32 %v1387_v56, 0.0 }
 0x195   : > { %v1424_v31 = vmax.f32 %v1392_v26, 0.0  ;;  %v1425_v32 = vmax.f32 %v1393_v50, 0.0  ;;  %v1212_v16 = vpop.f32.mrf.mxu2  ;;  %v1241_v49 = vpop.f32.mrf.mxu3 }
 0x196   : > { %1450 = vst [vmem:[%s2386_s10 + $0xb0] sm:$0xff] %v1418_v17  ;;  %v1306_v47 = vmax.f32 %v2370_v15, %v1212_v16  ;;  %v1307_v22 = vmax.f32 %v2372_v18, %v1241_v49 }
 0x197   : > { %1451 = vst [vmem:[%s2386_s10 + $0xb8] sm:$0xff] %v1419_v57 }
 0x198   : > { %1456 = vst [vmem:[%s2386_s10 + $0xe0] sm:$0xff] %v1424_v31  ;;  %v1338_v5 = vmax.f32 %v2724_v48, %v1306_v47  ;;  %v1339_v6 = vmax.f32 %v2727_v23, %v1307_v22 }
 0x199   : > { %1457 = vst [vmem:[%s2386_s10 + $0xe8] sm:$0xff] %v1425_v32 }
 0x19a   : > { %v1394_v52 = vadd.f32 %v2447_v27, %v1338_v5  ;;  %v1395_v20 = vadd.f32 %v2447_v27, %v1339_v6 }
 0x19c   : > { %v1426_v53 = vmax.f32 %v1394_v52, 0.0  ;;  %v1427_v25 = vmax.f32 %v1395_v20, 0.0 }
 0x19e   : > { %1458 = vst [vmem:[%s2386_s10 + $0xf0] sm:$0xff] %v1426_v53 }
 0x19f   : > { %1459 = vst [vmem:[%s2386_s10 + $0xf8] sm:$0xff] %v1427_v25 }
 0x1a0 PF: > { %s13_s12 = sadd.s32 1, %s1673_s12  }
 0x1a1   : > { %p10_p4 = scmp.ge.s32.totalorder %s13_s12, 4  }
 0x1a3   :  { %12 = sbr.rel (!%p10_p4) target bundleno = 1 (0x1), region = 62 }

// kernel: cnnrnn_forward.5
= control target key start
LH: loop header
LB: loop body
LE: loop exit
PB: predicated region body
PF: predicated region fallthrough
CT: control target
= control target key end

     0   :  { %s1832_s12 = smov 0   ;;  %s3012_s0 = inlined_call_operand.vmem [shape: f32[2,288,1024], index: 0, kind: input, shape index: {}]   ;;  %s3013_s1 = inlined_call_operand.vmem [shape: f32[64,288], index: 1, kind: input, shape index: {}]   ;;  %s3014_s2 = inlined_call_operand.vmem [shape: f32[64,1], index: 2, kind: input, shape index: {}]   ;;  %s3015_s3 = inlined_call_operand.vmem [shape: f32[2,64,256], index: 3, kind: output, shape index: {}]  }
   0x1 LB: > { %s1691_s13 = sadd.s32 4294967295, %s1809_s12   ;;  %p1695_p0 = scmp.ge.s32.totalorder %s1809_s12, 1  ;;  %s1809_s12 = sphi %s1832_s12, %s13_s12  }
   0x2   : > { %p137_p1 = scmp.lt.s32.totalorder %s1809_s12, 3 }
   0x4   : > { %p138_p2 = pnand %p1695_p0, %p137_p1 }
   0x6   : > { %141 = sbr.rel (%p138_p2) target bundleno = 571 (0x23b), region = 32 }
   0xb   : > { %p161_p3 = scmp.lt.s32.totalorder %s1691_s13, 1  ;;  %v1865_v14 = vld [vmem:[%s3013_s1 + $0x10] sm:$0xff]  ;;  %vm483_vm0 = vcmask 261120   ;;  %v1884_v27 = vld [vmem:[%s3013_s1 + $0x28] sm:$0xff]  ;;  %v1905_v42 = vld [vmem:[%s3013_s1 + $0x40] sm:$0xff] }
   0xc   : > { %v1928_v59 = vld [vmem:[%s3013_s1] sm:$0xff]  ;;  %v1933_v60 = vld [vmem:[%s3013_s1 + $0x58] sm:$0xff] }
   0xd   : > { %s3057_s13 = smov (!%p161_p3, %s1691_s13), 1 }
   0xe   : > { %s1766_s14 = smul.u32 2304, %s3057_s13  ;;  %s1765_s6 = sshll.u32 %s3057_s13, 7 }
   0xf   : > { %s2913_s9 = scalar_lea.vmem %s3015_s3, %s1765_s6 }
  0x10   : > { %s1846_s17 = scalar_lea.vmem %s3012_s0, %s1766_s14 }
  0x11   : > { %v315_v0 = vld [vmem:[%s1846_s17 + $0x3c0] sm:$0xff]  ;;  %v316_v2 = vld [vmem:[%s1846_s17 + $0x3c8] sm:$0xff]  ;;  %v445_v61 = vld [vmem:[%s1846_s17 + $0x7d0] sm:$0xff] }
  0x12   : > { %v475_v1 = vld [vmem:[%s1846_s17 + $0x8c0] sm:$0xff]  ;;  %508 = vmatpush.msra.mxu0 %v315_v0  ;;  %v308_v5 = vld [vmem:[%s1846_s17 + $0x388] sm:$0xff]  ;;  %631 = vmatpush.msra.mxu3 %v316_v2  ;;  %v437_v2 = vld [vmem:[%s1846_s17 + $0x790] sm:$0xff] }
  0x13   : > { %602 = vmatpush.msra.mxu2 %v475_v1  ;;  %v307_v3 = vld [vmem:[%s1846_s17 + $0x380] sm:$0xff]  ;;  %v300_v9 = vld [vmem:[%s1846_s17 + $0x348] sm:$0xff] }
  0x14   : > { %v467_v4 = vld [vmem:[%s1846_s17 + $0x880] sm:$0xff]  ;;  %509 = vmatpush.msra.mxu0 %v307_v3  ;;  %632 = vmatpush.msra.mxu3 %v308_v5  ;;  %v292_v13 = vld [vmem:[%s1846_s17 + $0x308] sm:$0xff]  ;;  %v317_v5 = vld [vmem:[%s1846_s17 + $0x3d0] sm:$0xff] }
  0x15   : > { %v299_v6 = vld [vmem:[%s1846_s17 + $0x340] sm:$0xff]  ;;  %603 = vmatpush.msra.mxu2 %v467_v4  ;;  %v284_v17 = vld [vmem:[%s1846_s17 + $0x2c8] sm:$0xff] }
  0x16   : > { %v443_v7 = vld [vmem:[%s1846_s17 + $0x7c0] sm:$0xff]  ;;  %510 = vmatpush.msra.mxu0 %v299_v6  ;;  %633 = vmatpush.msra.mxu3 %v300_v9  ;;  %v276_v20 = vld [vmem:[%s1846_s17 + $0x288] sm:$0xff]  ;;  %v429_v6 = vld [vmem:[%s1846_s17 + $0x750] sm:$0xff] }
  0x17   : > { %v459_v8 = vld [vmem:[%s1846_s17 + $0x840] sm:$0xff]  ;;  %549 = vmatpush.msra.mxu1 %v443_v7  ;;  %v268_v23 = vld [vmem:[%s1846_s17 + $0x248] sm:$0xff]  ;;  %v309_v9 = vld [vmem:[%s1846_s17 + $0x390] sm:$0xff] }
  0x18   : > { %v435_v10 = vld [vmem:[%s1846_s17 + $0x780] sm:$0xff]  ;;  %604 = vmatpush.msra.mxu2 %v459_v8  ;;  %634 = vmatpush.msra.mxu3 %v292_v13  ;;  %v260_v26 = vld [vmem:[%s1846_s17 + $0x208] sm:$0xff]  ;;  %v1958_v8 = vld [vmem:[%s3013_s1 + $0x18] sm:$0xff] }
  0x19   : > { %v291_v11 = vld [vmem:[%s1846_s17 + $0x300] sm:$0xff]  ;;  %550 = vmatpush.msra.mxu1 %v435_v10  ;;  %v252_v30 = vld [vmem:[%s1846_s17 + $0x1c8] sm:$0xff]  ;;  %v421_v13 = vld [vmem:[%s1846_s17 + $0x710] sm:$0xff] }
  0x1a   : > { %v451_v12 = vld [vmem:[%s1846_s17 + $0x800] sm:$0xff]  ;;  %511 = vmatpush.msra.mxu0 %v291_v11  ;;  %635 = vmatpush.msra.mxu3 %v284_v17  ;;  %v244_v33 = vld [vmem:[%s1846_s17 + $0x188] sm:$0xff]  ;;  %v1965_v11 = vld [vmem:[%s3013_s1 + $0x70] sm:$0xff] }
  0x1b   : > { %v283_v15 = vld [vmem:[%s1846_s17 + $0x2c0] sm:$0xff]  ;;  %605 = vmatpush.msra.mxu2 %v451_v12  ;;  %v444_v34 = vld [vmem:[%s1846_s17 + $0x7c8] sm:$0xff]  ;;  %v301_v12 = vld [vmem:[%s1846_s17 + $0x350] sm:$0xff] }
  0x1c   : > { %v427_v16 = vld [vmem:[%s1846_s17 + $0x740] sm:$0xff]  ;;  %1699 = vmatmul.msk.f32.vlgmr.msra.gmra.mxu2 %vm483_vm0, %v1865_v14  ;;  %512 = vmatpush.msra.mxu0 %v283_v15  ;;  %v236_v37 = vld [vmem:[%s1846_s17 + $0x148] sm:$0xff]  ;;  %v413_v17 = vld [vmem:[%s1846_s17 + $0x6d0] sm:$0xff] }
  0x1d   : > { %v275_v18 = vld [vmem:[%s1846_s17 + $0x280] sm:$0xff]  ;;  %551 = vmatpush.msra.mxu1 %v427_v16  ;;  %636 = vmatpush.msra.mxu3 %v276_v20  ;;  %v436_v38 = vld [vmem:[%s1846_s17 + $0x788] sm:$0xff]  ;;  %v293_v16 = vld [vmem:[%s1846_s17 + $0x310] sm:$0xff] }
  0x1e   : > { %v419_v19 = vld [vmem:[%s1846_s17 + $0x700] sm:$0xff]  ;;  %513 = vmatpush.msra.mxu0 %v275_v18  ;;  %672 = vmatpush.msrb.mxu2 %v444_v34  ;;  %v228_v41 = vld [vmem:[%s1846_s17 + $0x108] sm:$0xff]  ;;  %v285_v20 = vld [vmem:[%s1846_s17 + $0x2d0] sm:$0xff] }
  0x1f   : > { %v267_v21 = vld [vmem:[%s1846_s17 + $0x240] sm:$0xff]  ;;  %552 = vmatpush.msra.mxu1 %v419_v19  ;;  %637 = vmatpush.msra.mxu3 %v268_v23  ;;  %v428_v43 = vld [vmem:[%s1846_s17 + $0x748] sm:$0xff]  ;;  %v1989_v23 = vld [vmem:[%s3013_s1 + $0x30] sm:$0xff] }
  0x20   : > { %v411_v22 = vld [vmem:[%s1846_s17 + $0x6c0] sm:$0xff]  ;;  %514 = vmatpush.msra.mxu0 %v267_v21  ;;  %673 = vmatpush.msrb.mxu2 %v436_v38  ;;  %v220_v46 = vld [vmem:[%s1846_s17 + $0xc8] sm:$0xff]  ;;  %v405_v21 = vld [vmem:[%s1846_s17 + $0x690] sm:$0xff] }
  0x21   : > { %v259_v24 = vld [vmem:[%s1846_s17 + $0x200] sm:$0xff]  ;;  %553 = vmatpush.msra.mxu1 %v411_v22  ;;  %638 = vmatpush.msra.mxu3 %v260_v26  ;;  %v420_v47 = vld [vmem:[%s1846_s17 + $0x708] sm:$0xff]  ;;  %v397_v26 = vld [vmem:[%s1846_s17 + $0x650] sm:$0xff] }
  0x22   : > { %v403_v25 = vld [vmem:[%s1846_s17 + $0x680] sm:$0xff]  ;;  %515 = vmatpush.msra.mxu0 %v259_v24  ;;  %674 = vmatpush.msrb.mxu2 %v428_v43  ;;  %v212_v50 = vld [vmem:[%s1846_s17 + $0x88] sm:$0xff]  ;;  %v277_v24 = vld [vmem:[%s1846_s17 + $0x290] sm:$0xff] }
  0x23   : > { %v251_v28 = vld [vmem:[%s1846_s17 + $0x1c0] sm:$0xff]  ;;  %554 = vmatpush.msra.mxu1 %v403_v25  ;;  %639 = vmatpush.msra.mxu3 %v252_v30  ;;  %v412_v51 = vld [vmem:[%s1846_s17 + $0x6c8] sm:$0xff]  ;;  %v389_v30 = vld [vmem:[%s1846_s17 + $0x610] sm:$0xff] }
  0x24   : > { %v395_v29 = vld [vmem:[%s1846_s17 + $0x640] sm:$0xff]  ;;  %1700 = vmatmul.msk.f32.gmra.mxu2 %vm483_vm0, %v1884_v27  ;;  %516 = vmatpush.msra.mxu0 %v251_v28  ;;  %v204_v54 = vld [vmem:[%s1846_s17 + $0x48] sm:$0xff]  ;;  %v269_v28 = vld [vmem:[%s1846_s17 + $0x250] sm:$0xff] }
  0x25   : > { %v243_v31 = vld [vmem:[%s1846_s17 + $0x180] sm:$0xff]  ;;  %555 = vmatpush.msra.mxu1 %v395_v29  ;;  %640 = vmatpush.msra.mxu3 %v244_v33  ;;  %v404_v55 = vld [vmem:[%s1846_s17 + $0x688] sm:$0xff]  ;;  %v381_v34 = vld [vmem:[%s1846_s17 + $0x5d0] sm:$0xff] }
  0x26   : > { %v387_v32 = vld [vmem:[%s1846_s17 + $0x600] sm:$0xff]  ;;  %517 = vmatpush.msra.mxu0 %v243_v31  ;;  %675 = vmatpush.msrb.mxu2 %v420_v47  ;;  %v196_v58 = vld [vmem:[%s1846_s17 + $0x8] sm:$0xff]  ;;  %v261_v31 = vld [vmem:[%s1846_s17 + $0x210] sm:$0xff] }
  0x27   : > { %v235_v35 = vld [vmem:[%s1846_s17 + $0x140] sm:$0xff]  ;;  %556 = vmatpush.msra.mxu1 %v387_v32  ;;  %641 = vmatpush.msra.mxu3 %v236_v37  ;;  %v476_v63 = vld [vmem:[%s1846_s17 + $0x8c8] sm:$0xff]  ;;  %v2009_v32 = vld [vmem:[%s3013_s1 + $0x38] sm:$0xff] }
  0x28   : > { %v379_v36 = vld [vmem:[%s1846_s17 + $0x5c0] sm:$0xff]  ;;  %518 = vmatpush.msra.mxu0 %v235_v35  ;;  %676 = vmatpush.msrb.mxu2 %v412_v51  ;;  %v396_v0 = vld [vmem:[%s1846_s17 + $0x648] sm:$0xff]  ;;  %v253_v35 = vld [vmem:[%s1846_s17 + $0x1d0] sm:$0xff] }
  0x29   : > { %v227_v39 = vld [vmem:[%s1846_s17 + $0x100] sm:$0xff]  ;;  %557 = vmatpush.msra.mxu1 %v379_v36  ;;  %642 = vmatpush.msra.mxu3 %v228_v41  ;;  %v1948_v3 = vld [vmem:[%s3013_s1 + $0x8] sm:$0xff]  ;;  %v373_v38 = vld [vmem:[%s1846_s17 + $0x590] sm:$0xff] }
  0x2a   : > { %v371_v40 = vld [vmem:[%s1846_s17 + $0x580] sm:$0xff]  ;;  %519 = vmatpush.msra.mxu0 %v227_v39  ;;  %677 = vmatpush.msrb.mxu2 %v404_v55  ;;  %v468_v4 = vld [vmem:[%s1846_s17 + $0x888] sm:$0xff]  ;;  %v245_v43 = vld [vmem:[%s1846_s17 + $0x190] sm:$0xff] }
  0x2b   : > { %v219_v44 = vld [vmem:[%s1846_s17 + $0xc0] sm:$0xff]  ;;  %558 = vmatpush.msra.mxu1 %v371_v40  ;;  %643 = vmatpush.msra.mxu3 %v220_v46  ;;  %v388_v7 = vld [vmem:[%s1846_s17 + $0x608] sm:$0xff]  ;;  %v237_v46 = vld [vmem:[%s1846_s17 + $0x150] sm:$0xff] }
  0x2c   : > { %v363_v45 = vld [vmem:[%s1846_s17 + $0x540] sm:$0xff]  ;;  %1701 = vmatmul.msk.f32.gmra.mxu2 %vm483_vm0, %v1905_v42  ;;  %520 = vmatpush.msra.mxu0 %v219_v44  ;;  %v460_v10 = vld [vmem:[%s1846_s17 + $0x848] sm:$0xff]  ;;  %v365_v44 = vld [vmem:[%s1846_s17 + $0x550] sm:$0xff] }
  0x2d   : > { %v211_v48 = vld [vmem:[%s1846_s17 + $0x80] sm:$0xff]  ;;  %559 = vmatpush.msra.mxu1 %v363_v45  ;;  %644 = vmatpush.msra.mxu3 %v212_v50  ;;  %v380_v15 = vld [vmem:[%s1846_s17 + $0x5c8] sm:$0xff]  ;;  %v2040_v47 = vld [vmem:[%s3013_s1 + $0x50] sm:$0xff] }
  0x2e   : > { %v355_v49 = vld [vmem:[%s1846_s17 + $0x500] sm:$0xff]  ;;  %521 = vmatpush.msra.mxu0 %v211_v48  ;;  %678 = vmatpush.msrb.mxu2 %v396_v0  ;;  %v372_v19 = vld [vmem:[%s1846_s17 + $0x588] sm:$0xff]  ;;  %v357_v48 = vld [vmem:[%s1846_s17 + $0x510] sm:$0xff] }
  0x2f   : > { %v203_v52 = vld [vmem:[%s1846_s17 + $0x40] sm:$0xff]  ;;  %560 = vmatpush.msra.mxu1 %v355_v49  ;;  %645 = vmatpush.msra.mxu3 %v204_v54  ;;  %v364_v22 = vld [vmem:[%s1846_s17 + $0x548] sm:$0xff]  ;;  %v229_v49 = vld [vmem:[%s1846_s17 + $0x110] sm:$0xff] }
  0x30   : > { %v347_v53 = vld [vmem:[%s1846_s17 + $0x4c0] sm:$0xff]  ;;  %522 = vmatpush.msra.mxu0 %v203_v52  ;;  %679 = vmatpush.msrb.mxu2 %v388_v7  ;;  %v1995_v25 = vld [vmem:[%s3013_s1 + $0x88] sm:$0xff]  ;;  %v349_v50 = vld [vmem:[%s1846_s17 + $0x4d0] sm:$0xff] }
  0x31   : > { %v195_v56 = vld [vmem:[%s1846_s17] sm:$0xff]  ;;  %561 = vmatpush.msra.mxu1 %v347_v53  ;;  %646 = vmatpush.msra.mxu3 %v196_v58  ;;  %v356_v29 = vld [vmem:[%s1846_s17 + $0x508] sm:$0xff]  ;;  %v221_v52 = vld [vmem:[%s1846_s17 + $0xd0] sm:$0xff] }
  0x32   : > { %v339_v57 = vld [vmem:[%s1846_s17 + $0x480] sm:$0xff]  ;;  %523 = vmatpush.msra.mxu0 %v195_v56  ;;  %647 = vmatmul.f32.vlgmr.msra.gmra.mxu3 %v1928_v59  ;;  %v348_v33 = vld [vmem:[%s1846_s17 + $0x4c8] sm:$0xff]  ;;  %v2055_v53 = vld [vmem:[%s3013_s1 + $0xb8] sm:$0xff] }
  0x33   : > { %562 = vmatpush.msra.mxu1 %v339_v57  ;;  %v331_v62 = vld [vmem:[%s1846_s17 + $0x440] sm:$0xff]  ;;  %524 = vmatmul.f32.vlgmr.msra.gmra.mxu0 %v1928_v59  ;;  %v340_v36 = vld [vmem:[%s1846_s17 + $0x488] sm:$0xff]  ;;  %v341_v54 = vld [vmem:[%s1846_s17 + $0x490] sm:$0xff] }
  0x34   : > { %1702 = vmatmul.msk.f32.gmra.mxu2 %vm483_vm0, %v1933_v60  ;;  %v323_v1 = vld [vmem:[%s1846_s17 + $0x400] sm:$0xff]  ;;  %795 = vmatpush.msrb.mxu3 %v445_v61  ;;  %v2019_v37 = vld [vmem:[%s3013_s1 + $0x48] sm:$0xff]  ;;  %v213_v55 = vld [vmem:[%s1846_s17 + $0x90] sm:$0xff] }
  0x35   : > { %563 = vmatpush.msra.mxu1 %v331_v62  ;;  %725 = vmatpush.msrb.mxu0 %v476_v63  ;;  %v1979_v18 = vld [vmem:[%s3013_s1 + $0x20] sm:$0xff]  ;;  %v452_v39 = vld [vmem:[%s1846_s17 + $0x808] sm:$0xff]  ;;  %v333_v56 = vld [vmem:[%s1846_s17 + $0x450] sm:$0xff] }
  0x36   : > { %796 = vmatpush.msrb.mxu3 %v437_v2  ;;  %680 = vmatpush.msrb.mxu2 %v380_v15  ;;  %v2026_v40 = vld [vmem:[%s3013_s1 + $0xa0] sm:$0xff]  ;;  %v332_v41 = vld [vmem:[%s1846_s17 + $0x448] sm:$0xff]  ;;  %v205_v57 = vld [vmem:[%s1846_s17 + $0x50] sm:$0xff] }
  0x37   : > { %564 = vmatpush.msra.mxu1 %v323_v1  ;;  %726 = vmatpush.msrb.mxu0 %v468_v4  ;;  %v324_v45 = vld [vmem:[%s1846_s17 + $0x408] sm:$0xff]  ;;  %v2049_v51 = vld [vmem:[%s3013_s1 + $0x60] sm:$0xff]  ;;  %v477_v58 = vld [vmem:[%s1846_s17 + $0x8d0] sm:$0xff] }
  0x38   : > { %565 = vmatmul.f32.vlgmr.msra.gmra.mxu1 %v1948_v3  ;;  %797 = vmatpush.msrb.mxu3 %v429_v6  ;;  %v2069_v61 = vld [vmem:[%s3013_s1 + $0x68] sm:$0xff]  ;;  %v325_v62 = vld [vmem:[%s1846_s17 + $0x410] sm:$0xff]  ;;  %v478_v0 = vld [vmem:[%s1846_s17 + $0x8d8] sm:$0xff] }
  0x39   : > { %754 = vmatpush.msrb.mxu1 %v317_v5  ;;  %727 = vmatpush.msrb.mxu0 %v460_v10  ;;  %v197_v63 = vld [vmem:[%s1846_s17 + $0x10] sm:$0xff]  ;;  %v2078_v1 = vld [vmem:[%s3013_s1 + $0x78] sm:$0xff]  ;;  %v2090_v7 = vld [vmem:[%s3013_s1 + $0x80] sm:$0xff] }
  0x3a   : > { %650 = vmatmul.f32.gmra.mxu3 %v1958_v8  ;;  %681 = vmatpush.msrb.mxu2 %v372_v19  ;;  %v318_v2 = vld [vmem:[%s1846_s17 + $0x3d8] sm:$0xff] }
  0x3b   : > { %527 = vmatmul.f32.gmra.mxu0 %v1958_v8  ;;  %755 = vmatpush.msrb.mxu1 %v309_v9  ;;  %v446_v4 = vld [vmem:[%s1846_s17 + $0x7d8] sm:$0xff]  ;;  %v2096_v9 = vld [vmem:[%s3013_s1 + $0x90] sm:$0xff] }
  0x3c   : > { %1703 = vmatmul.msk.f32.gmra.mxu2 %vm483_vm0, %v1965_v11  ;;  %798 = vmatpush.msrb.mxu3 %v421_v13  ;;  %v310_v5 = vld [vmem:[%s1846_s17 + $0x398] sm:$0xff]  ;;  %v469_v13 = vld [vmem:[%s1846_s17 + $0x890] sm:$0xff] }
  0x3d   : > { %756 = vmatpush.msrb.mxu1 %v301_v12  ;;  %682 = vmatpush.msrb.mxu2 %v364_v22  ;;  %v438_v6 = vld [vmem:[%s1846_s17 + $0x798] sm:$0xff] }
  0x3e   : > { %799 = vmatpush.msrb.mxu3 %v413_v17  ;;  %728 = vmatpush.msrb.mxu0 %v452_v39  ;;  %v302_v10 = vld [vmem:[%s1846_s17 + $0x358] sm:$0xff]  ;;  %v453_v39 = vld [vmem:[%s1846_s17 + $0x810] sm:$0xff] }
  0x3f   : > { %757 = vmatpush.msrb.mxu1 %v293_v16  ;;  %683 = vmatpush.msrb.mxu2 %v356_v29  ;;  %v430_v12 = vld [vmem:[%s1846_s17 + $0x758] sm:$0xff] }
  0x40   : > { %568 = vmatmul.f32.gmra.mxu1 %v1979_v18  ;;  %800 = vmatpush.msrb.mxu3 %v405_v21  ;;  %v294_v15 = vld [vmem:[%s1846_s17 + $0x318] sm:$0xff] }
  0x41   : > { %758 = vmatpush.msrb.mxu1 %v285_v20  ;;  %684 = vmatpush.msrb.mxu2 %v348_v33  ;;  %v422_v16 = vld [vmem:[%s1846_s17 + $0x718] sm:$0xff]  ;;  %v2116_v20 = vld [vmem:[%s3013_s1 + $0xa8] sm:$0xff] }
  0x42   : > { %653 = vmatmul.f32.gmra.mxu3 %v1989_v23  ;;  %877 = vmatpush.msra.mxu0 %v318_v2  ;;  %v2109_v17 = vld [vmem:[%s3013_s1 + $0x98] sm:$0xff]  ;;  %v311_v2 = vld [vmem:[%s1846_s17 + $0x3a0] sm:$0xff] }
  0x43   : > { %530 = vmatmul.f32.gmra.mxu0 %v1989_v23  ;;  %759 = vmatpush.msrb.mxu1 %v277_v24  ;;  %v470_v19 = vld [vmem:[%s1846_s17 + $0x898] sm:$0xff] }
  0x44   : > { %1704 = vmatmul.msk.f32.gmra.mxu2 %vm483_vm0, %v1995_v25  ;;  %801 = vmatpush.msrb.mxu3 %v397_v26  ;;  %v286_v21 = vld [vmem:[%s1846_s17 + $0x2d8] sm:$0xff] }
  0x45   : > { %760 = vmatpush.msrb.mxu1 %v269_v28  ;;  %685 = vmatpush.msrb.mxu2 %v340_v36  ;;  %v414_v22 = vld [vmem:[%s1846_s17 + $0x6d8] sm:$0xff]  ;;  %v2128_v28 = vld [vmem:[%s3013_s1 + $0xb0] sm:$0xff] }
  0x46   : > { %802 = vmatpush.msrb.mxu3 %v389_v30  ;;  %878 = vmatpush.msra.mxu0 %v310_v5  ;;  %v278_v24 = vld [vmem:[%s1846_s17 + $0x298] sm:$0xff]  ;;  %v479_v5 = vld [vmem:[%s1846_s17 + $0x8e0] sm:$0xff] }
  0x47   : > { %761 = vmatpush.msrb.mxu1 %v261_v31  ;;  %686 = vmatpush.msrb.mxu2 %v332_v41  ;;  %v406_v26 = vld [vmem:[%s1846_s17 + $0x698] sm:$0xff]  ;;  %v461_v31 = vld [vmem:[%s1846_s17 + $0x850] sm:$0xff] }
  0x48   : > { %571 = vmatmul.f32.gmra.mxu1 %v2009_v32  ;;  %803 = vmatpush.msrb.mxu3 %v381_v34  ;;  %v270_v29 = vld [vmem:[%s1846_s17 + $0x258] sm:$0xff] }
  0x49   : > { %762 = vmatpush.msrb.mxu1 %v253_v35  ;;  %687 = vmatpush.msrb.mxu2 %v324_v45  ;;  %v398_v30 = vld [vmem:[%s1846_s17 + $0x658] sm:$0xff] }
  0x4a   : > { %804 = vmatpush.msrb.mxu3 %v373_v38  ;;  %879 = vmatpush.msra.mxu0 %v302_v10  ;;  %v262_v33 = vld [vmem:[%s1846_s17 + $0x218] sm:$0xff]  ;;  %v303_v10 = vld [vmem:[%s1846_s17 + $0x360] sm:$0xff] }
  0x4b   : > { %533 = vmatmul.f32.gmra.mxu0 %v2019_v37  ;;  %656 = vmatmul.f32.gmra.mxu3 %v2019_v37  ;;  %v390_v34 = vld [vmem:[%s1846_s17 + $0x618] sm:$0xff] }
  0x4c   : > { %1705 = vmatmul.msk.f32.gmra.mxu2 %vm483_vm0, %v2026_v40  ;;  %763 = vmatpush.msrb.mxu1 %v245_v43  ;;  %v462_v35 = vld [vmem:[%s1846_s17 + $0x858] sm:$0xff] }
  0x4d   : > { %805 = vmatpush.msrb.mxu3 %v365_v44  ;;  %848 = vmatpush.msra.mxu2 %v477_v58  ;;  %v254_v36 = vld [vmem:[%s1846_s17 + $0x1d8] sm:$0xff] }
  0x4e   : > { %764 = vmatpush.msrb.mxu1 %v237_v46  ;;  %880 = vmatpush.msra.mxu0 %v294_v15  ;;  %v382_v38 = vld [vmem:[%s1846_s17 + $0x5d8] sm:$0xff] }
  0x4f   : > { %806 = vmatpush.msrb.mxu3 %v357_v48  ;;  %849 = vmatpush.msra.mxu2 %v469_v13  ;;  %v246_v41 = vld [vmem:[%s1846_s17 + $0x198] sm:$0xff]  ;;  %v304_v13 = vld [vmem:[%s1846_s17 + $0x368] sm:$0xff] }
  0x50   : > { %574 = vmatmul.f32.gmra.mxu1 %v2040_v47  ;;  %881 = vmatpush.msra.mxu0 %v286_v21  ;;  %v374_v43 = vld [vmem:[%s1846_s17 + $0x598] sm:$0xff]  ;;  %v296_v21 = vld [vmem:[%s1846_s17 + $0x328] sm:$0xff] }
  0x51   : > { %765 = vmatpush.msrb.mxu1 %v229_v49  ;;  %807 = vmatpush.msrb.mxu3 %v349_v50  ;;  %v238_v44 = vld [vmem:[%s1846_s17 + $0x158] sm:$0xff] }
  0x52   : > { %882 = vmatpush.msra.mxu0 %v278_v24  ;;  %850 = vmatpush.msra.mxu2 %v461_v31  ;;  %v366_v45 = vld [vmem:[%s1846_s17 + $0x558] sm:$0xff]  ;;  %v423_v24 = vld [vmem:[%s1846_s17 + $0x720] sm:$0xff] }
  0x53   : > { %536 = vmatmul.f32.gmra.mxu0 %v2049_v51  ;;  %766 = vmatpush.msrb.mxu1 %v221_v52  ;;  %v230_v46 = vld [vmem:[%s1846_s17 + $0x118] sm:$0xff]  ;;  %v415_v31 = vld [vmem:[%s1846_s17 + $0x6e0] sm:$0xff] }
  0x54   : > { %1706 = vmatmul.msk.f32.gmra.mxu2 %vm483_vm0, %v2055_v53  ;;  %659 = vmatmul.f32.gmra.mxu3 %v2049_v51  ;;  %v358_v48 = vld [vmem:[%s1846_s17 + $0x518] sm:$0xff] }
  0x55   : > { %808 = vmatpush.msrb.mxu3 %v341_v54  ;;  %767 = vmatpush.msrb.mxu1 %v213_v55  ;;  %v454_v49 = vld [vmem:[%s1846_s17 + $0x818] sm:$0xff] }
  0x56   : > { %883 = vmatpush.msra.mxu0 %v270_v29  ;;  %851 = vmatpush.msra.mxu2 %v453_v39  ;;  %v222_v50 = vld [vmem:[%s1846_s17 + $0xd8] sm:$0xff]  ;;  %v272_v39 = vld [vmem:[%s1846_s17 + $0x268] sm:$0xff] }
  0x57   : > { %809 = vmatpush.msrb.mxu3 %v333_v56  ;;  %768 = vmatpush.msrb.mxu1 %v205_v57  ;;  %v350_v52 = vld [vmem:[%s1846_s17 + $0x4d8] sm:$0xff] }
  0x58   : > { %577 = vmatmul.f32.gmra.mxu1 %v2069_v61  ;;  %884 = vmatpush.msra.mxu0 %v262_v33  ;;  %v214_v54 = vld [vmem:[%s1846_s17 + $0x98] sm:$0xff]  ;;  %v471_v33 = vld [vmem:[%s1846_s17 + $0x8a0] sm:$0xff] }
  0x59   : > { %810 = vmatpush.msrb.mxu3 %v325_v62  ;;  %769 = vmatpush.msrb.mxu1 %v197_v63  ;;  %v342_v55 = vld [vmem:[%s1846_s17 + $0x498] sm:$0xff]  ;;  %v319_v63 = vld [vmem:[%s1846_s17 + $0x3e0] sm:$0xff] }
  0x5a   : > { %885 = vmatpush.msra.mxu0 %v254_v36  ;;  %v206_v56 = vld [vmem:[%s1846_s17 + $0x58] sm:$0xff]  ;;  %v263_v36 = vld [vmem:[%s1846_s17 + $0x220] sm:$0xff] }
  0x5b   : > { %971 = vmatpush.msra.mxu3 %v478_v0  ;;  %539 = vmatmul.f32.gmra.mxu0 %v2078_v1  ;;  %v334_v57 = vld [vmem:[%s1846_s17 + $0x458] sm:$0xff]  ;;  %v320_v0 = vld [vmem:[%s1846_s17 + $0x3e8] sm:$0xff] }
  0x5c   : > { %918 = vmatpush.msra.mxu1 %v446_v4  ;;  %662 = vmatmul.f32.gmra.mxu3 %v2078_v1  ;;  %v198_v58 = vld [vmem:[%s1846_s17 + $0x18] sm:$0xff]  ;;  %v447_v4 = vld [vmem:[%s1846_s17 + $0x7e0] sm:$0xff] }
  0x5d   : > { %688 = vmatmul.f32.vlgmr.msrb.gmra.mxu2 %v1948_v3  ;;  %972 = vmatpush.msra.mxu3 %v470_v19  ;;  %v326_v62 = vld [vmem:[%s1846_s17 + $0x418] sm:$0xff]  ;;  %v431_v19 = vld [vmem:[%s1846_s17 + $0x760] sm:$0xff] }
  0x5e   : > { %919 = vmatpush.msra.mxu1 %v438_v6  ;;  %886 = vmatpush.msra.mxu0 %v246_v41  ;;  %v312_v6 = vld [vmem:[%s1846_s17 + $0x3a8] sm:$0xff]  ;;  %v255_v41 = vld [vmem:[%s1846_s17 + $0x1e0] sm:$0xff] }
  0x5f   : > { %973 = vmatpush.msra.mxu3 %v462_v35  ;;  %1000 = vmatpush.msrb.mxu2 %v319_v63  ;;  %v271_v35 = vld [vmem:[%s1846_s17 + $0x260] sm:$0xff] }
  0x60   : > { %580 = vmatmul.f32.gmra.mxu1 %v2090_v7  ;;  %887 = vmatpush.msra.mxu0 %v238_v44  ;;  %v247_v44 = vld [vmem:[%s1846_s17 + $0x1a0] sm:$0xff] }
  0x61   : > { %920 = vmatpush.msra.mxu1 %v430_v12  ;;  %974 = vmatpush.msra.mxu3 %v454_v49  ;;  %v439_v12 = vld [vmem:[%s1846_s17 + $0x7a0] sm:$0xff] }
  0x62   : > { %888 = vmatpush.msra.mxu0 %v230_v46  ;;  %1001 = vmatpush.msrb.mxu2 %v311_v2  ;;  %v399_v46 = vld [vmem:[%s1846_s17 + $0x660] sm:$0xff] }
  0x63   : > { %542 = vmatmul.f32.gmra.mxu0 %v2096_v9  ;;  %921 = vmatpush.msra.mxu1 %v422_v16  ;;  %v295_v16 = vld [vmem:[%s1846_s17 + $0x320] sm:$0xff] }
  0x64   : > { %665 = vmatmul.f32.gmra.mxu3 %v2096_v9  ;;  %889 = vmatpush.msra.mxu0 %v222_v50  ;;  %v239_v49 = vld [vmem:[%s1846_s17 + $0x160] sm:$0xff] }
  0x65   : > { %691 = vmatmul.f32.gmra.mxu2 %v1979_v18  ;;  %922 = vmatpush.msra.mxu1 %v414_v22  ;;  %v287_v22 = vld [vmem:[%s1846_s17 + $0x2e0] sm:$0xff] }
  0x66   : > { %890 = vmatpush.msra.mxu0 %v214_v54  ;;  %1002 = vmatpush.msrb.mxu2 %v303_v10  ;;  %v231_v50 = vld [vmem:[%s1846_s17 + $0x120] sm:$0xff]  ;;  %v256_v54 = vld [vmem:[%s1846_s17 + $0x1e8] sm:$0xff] }
  0x67   : > { %923 = vmatpush.msra.mxu1 %v406_v26  ;;  %v288_v26 = vld [vmem:[%s1846_s17 + $0x2e8] sm:$0xff]  ;;  %v383_v2 = vld [vmem:[%s1846_s17 + $0x5e0] sm:$0xff] }
  0x68   : > { %583 = vmatmul.f32.gmra.mxu1 %v2109_v17  ;;  %891 = vmatpush.msra.mxu0 %v206_v56  ;;  %v199_v10 = vld [vmem:[%s1846_s17 + $0x20] sm:$0xff] }
  0x69   : > { %924 = vmatpush.msra.mxu1 %v398_v30  ;;  %1003 = vmatpush.msrb.mxu2 %v295_v16  ;;  %v279_v30 = vld [vmem:[%s1846_s17 + $0x2a0] sm:$0xff] }
  0x6a   : > { %892 = vmatpush.msra.mxu0 %v198_v58  ;;  %v215_v58 = vld [vmem:[%s1846_s17 + $0xa0] sm:$0xff] }
  0x6b   : > { %545 = vmatmul.f32.gmra.mxu0 %v2116_v20  ;;  %925 = vmatpush.msra.mxu1 %v390_v34  ;;  %v280_v34 = vld [vmem:[%s1846_s17 + $0x2a8] sm:$0xff] }
  0x6c   : > { %668 = vmatmul.f32.gmra.mxu3 %v2116_v20  ;;  %1004 = vmatpush.msrb.mxu2 %v287_v22 }
  0x6d   : > { %694 = vmatmul.f32.gmra.mxu2 %v2009_v32  ;;  %926 = vmatpush.msra.mxu1 %v382_v38  ;;  %v407_v38 = vld [vmem:[%s1846_s17 + $0x6a0] sm:$0xff] }
  0x6e   : > { %1005 = vmatpush.msrb.mxu2 %v279_v30  ;;  %v224_v30 = vld [vmem:[%s1846_s17 + $0xe8] sm:$0xff] }
  0x6f   : > { %927 = vmatpush.msra.mxu1 %v374_v43 }
  0x70   : > { %586 = vmatmul.f32.gmra.mxu1 %v2128_v28  ;;  %1006 = vmatpush.msrb.mxu2 %v271_v35 }
  0x71   : > { %928 = vmatpush.msra.mxu1 %v366_v45 }
  0x72   : > { %1007 = vmatpush.msrb.mxu2 %v263_v36 }
  0x73   : > { %1707 = vmatmul.msk.f32.vlgmr.msrb.gmra.mxu0 %vm483_vm0, %v1865_v14  ;;  %929 = vmatpush.msra.mxu1 %v358_v48  ;;  %v264_v48 = vld [vmem:[%s1846_s17 + $0x228] sm:$0xff] }
  0x74   : > { %811 = vmatmul.f32.vlgmr.msrb.gmra.mxu3 %v1948_v3  ;;  %1041 = vmatpush.msrb.mxu0 %v447_v4  ;;  %v463_v4 = vld [vmem:[%s1846_s17 + $0x860] sm:$0xff] }
  0x75   : > { %697 = vmatmul.f32.gmra.mxu2 %v2040_v47  ;;  %930 = vmatpush.msra.mxu1 %v350_v52  ;;  %v391_v52 = vld [vmem:[%s1846_s17 + $0x620] sm:$0xff] }
  0x76   : > { %1123 = vmatpush.msrb.mxu3 %v320_v0  ;;  %1042 = vmatpush.msrb.mxu0 %v439_v12  ;;  %v375_v12 = vld [vmem:[%s1846_s17 + $0x5a0] sm:$0xff] }
  0x77   : > { %931 = vmatpush.msra.mxu1 %v342_v55  ;;  %1008 = vmatpush.msrb.mxu2 %v255_v41  ;;  %v223_v55 = vld [vmem:[%s1846_s17 + $0xe0] sm:$0xff]  ;;  %v216_v41 = vld [vmem:[%s1846_s17 + $0xa8] sm:$0xff] }
  0x78   : > { %770 = vmatmul.f32.vlgmr.msrb.gmra.mxu1 %v1928_v59  ;;  %1124 = vmatpush.msrb.mxu3 %v312_v6  ;;  %v207_v6 = vld [vmem:[%s1846_s17 + $0x60] sm:$0xff] }
  0x79   : > { %932 = vmatpush.msra.mxu1 %v334_v57  ;;  %1043 = vmatpush.msrb.mxu0 %v431_v19 }
  0x7a   : > { %1125 = vmatpush.msrb.mxu3 %v304_v13  ;;  %1009 = vmatpush.msrb.mxu2 %v247_v44  ;;  %v240_v13 = vld [vmem:[%s1846_s17 + $0x168] sm:$0xff] }
  0x7b   : > { %1708 = vmatmul.msk.f32.gmra.mxu0 %vm483_vm0, %v1884_v27  ;;  %933 = vmatpush.msra.mxu1 %v326_v62  ;;  %v208_v44 = vld [vmem:[%s1846_s17 + $0x68] sm:$0xff] }
  0x7c   : > { %814 = vmatmul.f32.gmra.mxu3 %v1979_v18  ;;  %1044 = vmatpush.msrb.mxu0 %v423_v24 }
  0x7d   : > { %700 = vmatmul.f32.gmra.mxu2 %v2069_v61  ;;  %1094 = vmatpush.msrb.mxu1 %v479_v5  ;;  %v248_v5 = vld [vmem:[%s1846_s17 + $0x1a8] sm:$0xff] }
  0x7e   : > { %1126 = vmatpush.msrb.mxu3 %v296_v21  ;;  %1045 = vmatpush.msrb.mxu0 %v415_v31 }
  0x7f   : > { %1095 = vmatpush.msrb.mxu1 %v471_v33  ;;  %1010 = vmatpush.msrb.mxu2 %v239_v49 }
  0x80   : > { %773 = vmatmul.f32.gmra.mxu1 %v1958_v8  ;;  %1127 = vmatpush.msrb.mxu3 %v288_v26  ;;  %v367_v26 = vld [vmem:[%s1846_s17 + $0x560] sm:$0xff] }
  0x81   : > { %1046 = vmatpush.msrb.mxu0 %v407_v38  ;;  %1011 = vmatpush.msrb.mxu2 %v231_v50 }
  0x82   : > { %1128 = vmatpush.msrb.mxu3 %v280_v34  ;;  %1096 = vmatpush.msrb.mxu1 %v463_v4 }
  0x83   : > { %1709 = vmatmul.msk.f32.gmra.mxu0 %vm483_vm0, %v1905_v42  ;;  %1012 = vmatpush.msrb.mxu2 %v223_v55  ;;  %v327_v55 = vld [vmem:[%s1846_s17 + $0x420] sm:$0xff] }
  0x84   : > { %817 = vmatmul.f32.gmra.mxu3 %v2009_v32  ;;  %1047 = vmatpush.msrb.mxu0 %v399_v46 }
  0x85   : > { %703 = vmatmul.f32.gmra.mxu2 %v2090_v7  ;;  %1129 = vmatpush.msrb.mxu3 %v272_v39  ;;  %v351_v39 = vld [vmem:[%s1846_s17 + $0x4e0] sm:$0xff] }
  0x86   : > { %1048 = vmatpush.msrb.mxu0 %v391_v52  ;;  %1013 = vmatpush.msrb.mxu2 %v215_v58 }
  0x87   : > { %1130 = vmatpush.msrb.mxu3 %v264_v48 }
  0x88   : > { %776 = vmatmul.f32.gmra.mxu1 %v1989_v23  ;;  %1049 = vmatpush.msrb.mxu0 %v383_v2 }
  0x89   : > { %1131 = vmatpush.msrb.mxu3 %v256_v54  ;;  %1014 = vmatpush.msrb.mxu2 %v207_v6  ;;  %v200_v54 = vld [vmem:[%s1846_s17 + $0x28] sm:$0xff] }
  0x8a   : > { %1050 = vmatpush.msrb.mxu0 %v375_v12  ;;  %v480_v6 = vld [vmem:[%s1846_s17 + $0x8e8] sm:$0xff]  ;;  %v441_v12 = vld [vmem:[%s1846_s17 + $0x7b0] sm:$0xff] }
  0x8b   : > { %1710 = vmatmul.msk.f32.gmra.mxu0 %vm483_vm0, %v1933_v60  ;;  %1132 = vmatpush.msrb.mxu3 %v248_v5  ;;  %v440_v5 = vld [vmem:[%s1846_s17 + $0x7a8] sm:$0xff] }
  0x8c   : > { %820 = vmatmul.f32.gmra.mxu3 %v2040_v47  ;;  %1015 = vmatpush.msrb.mxu2 %v199_v10  ;;  %v321_v10 = vld [vmem:[%s1846_s17 + $0x3f0] sm:$0xff] }
  0x8d   : > { %706 = vmatmul.f32.gmra.mxu2 %v2109_v17  ;;  %1133 = vmatpush.msrb.mxu3 %v240_v13  ;;  %v432_v13 = vld [vmem:[%s1846_s17 + $0x768] sm:$0xff] }
  0x8e   : > { %1051 = vmatpush.msrb.mxu0 %v367_v26 }
  0x90   : > { %779 = vmatmul.f32.gmra.mxu1 %v2019_v37 }
  0x93   : > { %1711 = vmatmul.msk.f32.gmra.mxu0 %vm483_vm0, %v1965_v11 }
  0x94   : > { %823 = vmatmul.f32.gmra.mxu3 %v2069_v61 }
  0x95   : > { %709 = vmatmul.f32.gmra.mxu2 %v2128_v28 }
  0x98   : > { %782 = vmatmul.f32.gmra.mxu1 %v2049_v51 }
  0x9b   : > { %1712 = vmatmul.msk.f32.gmra.mxu0 %vm483_vm0, %v1995_v25 }
  0x9c   : > { %826 = vmatmul.f32.gmra.mxu3 %v2090_v7 }
  0x9d   : > { %1715 = vmatmul.msk.f32.vlgmr.msra.gmra.mxu2 %vm483_vm0, %v1865_v14 }
  0x9f   : > { %v2194_v15 = vpop.f32.mrf.mxu2 }
  0xa0   : > { %785 = vmatmul.f32.gmra.mxu1 %v2078_v1 }
  0xa3   : > { %1713 = vmatmul.msk.f32.gmra.mxu0 %vm483_vm0, %v2026_v40 }
  0xa4   : > { %829 = vmatmul.f32.gmra.mxu3 %v2109_v17 }
  0xa5   : > { %1716 = vmatmul.msk.f32.gmra.mxu2 %vm483_vm0, %v1884_v27 }
  0xa7   : > { %v2208_v29 = vpop.f32.mrf.mxu2 }
  0xa8   : > { %788 = vmatmul.f32.gmra.mxu1 %v2096_v9 }
  0xab   : > { %1714 = vmatmul.msk.f32.gmra.mxu0 %vm483_vm0, %v2055_v53 }
  0xac   : > { %832 = vmatmul.f32.gmra.mxu3 %v2128_v28 }
  0xad   : > { %1717 = vmatmul.msk.f32.gmra.mxu2 %vm483_vm0, %v1905_v42 }
  0xaf   : > { %v2225_v43 = vpop.f32.mrf.mxu2 }
  0xb0   : > { %791 = vmatmul.f32.gmra.mxu1 %v2116_v20  ;;  %v525_v45 = vpop.f32.mrf.mxu0 }
  0xb3   : > { %893 = vmatmul.f32.vlgmr.msra.gmra.mxu0 %v1928_v59 }
  0xb4   : > { %1723 = vmatmul.msk.f32.vlgmr.msra.gmra.mxu3 %vm483_vm0, %v1865_v14 }
  0xb5   : > { %1718 = vmatmul.msk.f32.gmra.mxu2 %vm483_vm0, %v1933_v60  ;;  %v566_v56 = vpop.f32.mrf.mxu1  ;;  %v2244_v63 = vpop.f32.mrf.mxu3 }
  0xb6   : > { %v567_v57 = vadd.f32 %v566_v56, %v525_v45  ;;  %v448_v56 = vld [vmem:[%s1846_s17 + $0x7e8] sm:$0xff] }
  0xb7   : > { %v2242_v62 = vpop.f32.mrf.mxu2  ;;  %1164 = vmatpush.msra.mxu2 %v448_v56  ;;  %v384_v56 = vld [vmem:[%s1846_s17 + $0x5e8] sm:$0xff] }
  0xb8   : > { %v2247_v14 = vadd.f32 %v2194_v15, %v567_v57  ;;  %934 = vmatmul.f32.vlgmr.msra.gmra.mxu1 %v1948_v3  ;;  %v528_v0 = vpop.f32.mrf.mxu0  ;;  %v449_v57 = vld [vmem:[%s1846_s17 + $0x7f0] sm:$0xff] }
  0xb9   : > { %1165 = vmatpush.msra.mxu2 %v440_v5 }
  0xbb   : > { %896 = vmatmul.f32.gmra.mxu0 %v1958_v8  ;;  %1166 = vmatpush.msra.mxu2 %v432_v13  ;;  %v393_v13 = vld [vmem:[%s1846_s17 + $0x630] sm:$0xff] }
  0xbc   : > { %1724 = vmatmul.msk.f32.gmra.mxu3 %vm483_vm0, %v1884_v27  ;;  %v232_v27 = vld [vmem:[%s1846_s17 + $0x128] sm:$0xff] }
  0xbd   : > { %1719 = vmatmul.msk.f32.gmra.mxu2 %vm483_vm0, %v1965_v11  ;;  %v569_v15 = vpop.f32.mrf.mxu1  ;;  %v2262_v21 = vpop.f32.mrf.mxu3  ;;  %1134 = vmatpush.msrb.mxu3 %v232_v27 }
  0xbe   : > { %v570_v16 = vadd.f32 %v569_v15, %v528_v0  ;;  %v313_v15 = vld [vmem:[%s1846_s17 + $0x3b0] sm:$0xff] }
  0xbf   : > { %v619_v19 = vpop.f32.mrf.mxu2  ;;  %1135 = vmatpush.msrb.mxu3 %v224_v30  ;;  %v424_v30 = vld [vmem:[%s1846_s17 + $0x728] sm:$0xff] }
  0xc0   : > { %v2265_v22 = vadd.f32 %v2208_v29, %v570_v16  ;;  %937 = vmatmul.f32.gmra.mxu1 %v1979_v18  ;;  %v531_v24 = vpop.f32.mrf.mxu0  ;;  %v359_v29 = vld [vmem:[%s1846_s17 + $0x520] sm:$0xff]  ;;  %v433_v16 = vld [vmem:[%s1846_s17 + $0x770] sm:$0xff]  ;;  %1167 = vmatpush.msra.mxu2 %v424_v30 }
  0xc1   : > { %1052 = vmatpush.msrb.mxu0 %v359_v29  ;;  %1136 = vmatpush.msrb.mxu3 %v216_v41  ;;  %v408_v41 = vld [vmem:[%s1846_s17 + $0x6a8] sm:$0xff] }
  0xc3   : > { %899 = vmatmul.f32.gmra.mxu0 %v1989_v23  ;;  %1137 = vmatpush.msrb.mxu3 %v208_v44 }
  0xc4   : > { %1725 = vmatmul.msk.f32.gmra.mxu3 %vm483_vm0, %v1905_v42  ;;  %v455_v42 = vld [vmem:[%s1846_s17 + $0x820] sm:$0xff]  ;;  %1053 = vmatpush.msrb.mxu0 %v351_v39 }
  0xc5   : > { %1720 = vmatmul.msk.f32.gmra.mxu2 %vm483_vm0, %v1995_v25  ;;  %v572_v31 = vpop.f32.mrf.mxu1  ;;  %v2279_v35 = vpop.f32.mrf.mxu3  ;;  %1097 = vmatpush.msrb.mxu1 %v455_v42 }
  0xc6   : > { %v573_v33 = vadd.f32 %v572_v31, %v531_v24  ;;  %1138 = vmatpush.msrb.mxu3 %v200_v54  ;;  %v305_v31 = vld [vmem:[%s1846_s17 + $0x370] sm:$0xff]  ;;  %v400_v54 = vld [vmem:[%s1846_s17 + $0x668] sm:$0xff] }
  0xc7   : > { %v2277_v34 = vpop.f32.mrf.mxu2  ;;  %1246 = vmatpush.msra.mxu1 %v321_v10 }
  0xc8   : > { %v2282_v36 = vadd.f32 %v2225_v43, %v573_v33  ;;  %940 = vmatmul.f32.gmra.mxu1 %v2009_v32  ;;  %v534_v38 = vpop.f32.mrf.mxu0  ;;  %v343_v43 = vld [vmem:[%s1846_s17 + $0x4a0] sm:$0xff]  ;;  %1287 = vmatpush.msra.mxu3 %v449_v57  ;;  %v425_v33 = vld [vmem:[%s1846_s17 + $0x730] sm:$0xff] }
  0xc9   : > { %1054 = vmatpush.msrb.mxu0 %v343_v43  ;;  %1247 = vmatpush.msra.mxu1 %v313_v15  ;;  %v368_v15 = vld [vmem:[%s1846_s17 + $0x568] sm:$0xff] }
  0xca   : > { %1288 = vmatpush.msra.mxu3 %v441_v12  ;;  %v273_v12 = vld [vmem:[%s1846_s17 + $0x270] sm:$0xff] }
  0xcb   : > { %902 = vmatmul.f32.gmra.mxu0 %v2019_v37  ;;  %1248 = vmatpush.msra.mxu1 %v305_v31 }
  0xcc   : > { %1726 = vmatmul.msk.f32.gmra.mxu3 %vm483_vm0, %v1933_v60  ;;  %v335_v60 = vld [vmem:[%s1846_s17 + $0x460] sm:$0xff] }
  0xcd   : > { %1721 = vmatmul.msk.f32.gmra.mxu2 %vm483_vm0, %v2026_v40  ;;  %v575_v45 = vpop.f32.mrf.mxu1  ;;  %1055 = vmatpush.msrb.mxu0 %v335_v60  ;;  %v409_v60 = vld [vmem:[%s1846_s17 + $0x6b0] sm:$0xff] }
  0xce   : > { %v576_v46 = vadd.f32 %v575_v45, %v534_v38  ;;  %v2297_v49 = vpop.f32.mrf.mxu3  ;;  %1289 = vmatpush.msra.mxu3 %v433_v16  ;;  %v417_v38 = vld [vmem:[%s1846_s17 + $0x6f0] sm:$0xff]  ;;  %v360_v16 = vld [vmem:[%s1846_s17 + $0x528] sm:$0xff] }
  0xcf   : > { %v2295_v48 = vpop.f32.mrf.mxu2  ;;  %1056 = vmatpush.msrb.mxu0 %v327_v55  ;;  %v401_v55 = vld [vmem:[%s1846_s17 + $0x670] sm:$0xff] }
  0xd0   : > { %v2300_v50 = vadd.f32 %v2242_v62, %v576_v46  ;;  %943 = vmatmul.f32.gmra.mxu1 %v2040_v47  ;;  %v537_v52 = vpop.f32.mrf.mxu0  ;;  %1290 = vmatpush.msra.mxu3 %v425_v33  ;;  %v472_v46 = vld [vmem:[%s1846_s17 + $0x8a8] sm:$0xff] }
  0xd1   : > { %1217 = vmatpush.msra.mxu0 %v480_v6 }
  0xd2   : > { %1291 = vmatpush.msra.mxu3 %v417_v38  ;;  %v464_v38 = vld [vmem:[%s1846_s17 + $0x868] sm:$0xff] }
  0xd3   : > { %905 = vmatmul.f32.gmra.mxu0 %v2049_v51 }
  0xd4   : > { %1727 = vmatmul.msk.f32.gmra.mxu3 %vm483_vm0, %v1965_v11  ;;  %1218 = vmatpush.msra.mxu0 %v472_v46  ;;  %v369_v46 = vld [vmem:[%s1846_s17 + $0x570] sm:$0xff] }
  0xd5   : > { %1722 = vmatmul.msk.f32.gmra.mxu2 %vm483_vm0, %v2055_v53  ;;  %v578_v58 = vpop.f32.mrf.mxu1  ;;  %1292 = vmatpush.msra.mxu3 %v409_v60 }
  0xd6   : > { %v579_v62 = vadd.f32 %v578_v58, %v537_v52  ;;  %v289_v52 = vld [vmem:[%s1846_s17 + $0x2f0] sm:$0xff]  ;;  %1219 = vmatpush.msra.mxu0 %v464_v38 }
  0xd7   : > { %v2313_v0 = vpop.f32.mrf.mxu2  ;;  %v2315_v2 = vpop.f32.mrf.mxu3  ;;  %1293 = vmatpush.msra.mxu3 %v401_v55 }
  0xd8   : > { %v2317_v4 = vadd.f32 %v619_v19, %v579_v62  ;;  %946 = vmatmul.f32.gmra.mxu1 %v2069_v61  ;;  %v540_v11 = vpop.f32.mrf.mxu0  ;;  %v376_v62 = vld [vmem:[%s1846_s17 + $0x5a8] sm:$0xff] }
  0xd9   : > { %1294 = vmatpush.msra.mxu3 %v393_v13 }
  0xdb   : > { %908 = vmatmul.f32.gmra.mxu0 %v2078_v1 }
  0xdc   : > { %1728 = vmatmul.msk.f32.gmra.mxu3 %vm483_vm0, %v1995_v25 }
  0xdd   : > { %1016 = vmatmul.f32.vlgmr.msrb.gmra.mxu2 %v1928_v59  ;;  %v581_v19 = vpop.f32.mrf.mxu1 }
  0xde   : > { %v582_v24 = vadd.f32 %v581_v19, %v540_v11  ;;  %v385_v19 = vld [vmem:[%s1846_s17 + $0x5f0] sm:$0xff] }
  0xdf   : > { %v2331_v26 = vpop.f32.mrf.mxu3  ;;  %1295 = vmatpush.msra.mxu3 %v385_v19  ;;  %v345_v19 = vld [vmem:[%s1846_s17 + $0x4b0] sm:$0xff] }
  0xe0   : > { %v689_v27 = vpop.f32.mrf.mxu2  ;;  %v2334_v25 = vadd.f32 %v2277_v34, %v582_v24  ;;  %949 = vmatmul.f32.gmra.mxu1 %v2090_v7  ;;  %v543_v29 = vpop.f32.mrf.mxu0  ;;  %v416_v34 = vld [vmem:[%s1846_s17 + $0x6e8] sm:$0xff] }
  0xe1   : > { %v2337_v59 = vadd.f32 %v689_v27, %v2244_v63  ;;  %v297_v63 = vld [vmem:[%s1846_s17 + $0x330] sm:$0xff]  ;;  %1168 = vmatpush.msra.mxu2 %v416_v34  ;;  %v352_v24 = vld [vmem:[%s1846_s17 + $0x4e8] sm:$0xff] }
  0xe2   : > { %1249 = vmatpush.msra.mxu1 %v297_v63  ;;  %v2408_v34 = vld [vmem:[%s3013_s1 + $0x10] sm:$0xff] }
  0xe3   : > { %911 = vmatmul.f32.gmra.mxu0 %v2096_v9  ;;  %1169 = vmatpush.msra.mxu2 %v408_v41  ;;  %v328_v41 = vld [vmem:[%s1846_s17 + $0x428] sm:$0xff] }
  0xe4   : > { %1729 = vmatmul.msk.f32.gmra.mxu3 %vm483_vm0, %v2026_v40  ;;  %1250 = vmatpush.msra.mxu1 %v289_v52 }
  0xe5   : > { %1019 = vmatmul.f32.gmra.mxu2 %v1958_v8  ;;  %v584_v39 = vpop.f32.mrf.mxu1 }
  0xe6   : > { %v585_v42 = vadd.f32 %v584_v39, %v543_v29  ;;  %1170 = vmatpush.msra.mxu2 %v400_v54  ;;  %v257_v39 = vld [vmem:[%s1846_s17 + $0x1f0] sm:$0xff] }
  0xe7   : > { %v2351_v43 = vpop.f32.mrf.mxu3 }
  0xe8   : > { %v692_v44 = vpop.f32.mrf.mxu2  ;;  %v2354_v8 = vadd.f32 %v2295_v48, %v585_v42  ;;  %952 = vmatmul.f32.gmra.mxu1 %v2109_v17  ;;  %v546_v45 = vpop.f32.mrf.mxu0  ;;  %v392_v48 = vld [vmem:[%s1846_s17 + $0x628] sm:$0xff]  ;;  %v377_v42 = vld [vmem:[%s1846_s17 + $0x5b0] sm:$0xff] }
  0xe9   : > { %v2357_v40 = vadd.f32 %v692_v44, %v2262_v21  ;;  %v281_v21 = vld [vmem:[%s1846_s17 + $0x2b0] sm:$0xff]  ;;  %1171 = vmatpush.msra.mxu2 %v392_v48  ;;  %1296 = vmatpush.msra.mxu3 %v377_v42  ;;  %v2424_v44 = vld [vmem:[%s3013_s1 + $0x18] sm:$0xff] }
  0xea   : > { %1251 = vmatpush.msra.mxu1 %v281_v21  ;;  %v2437_v21 = vld [vmem:[%s3013_s1 + $0x28] sm:$0xff]  ;;  %v329_v42 = vld [vmem:[%s1846_s17 + $0x430] sm:$0xff] }
  0xeb   : > { %914 = vmatmul.f32.gmra.mxu0 %v2116_v20  ;;  %1172 = vmatpush.msra.mxu2 %v384_v56  ;;  %v241_v56 = vld [vmem:[%s1846_s17 + $0x170] sm:$0xff] }
  0xec   : > { %1730 = vmatmul.msk.f32.gmra.mxu3 %vm483_vm0, %v2055_v53  ;;  %1252 = vmatpush.msra.mxu1 %v273_v12 }
  0xed   : > { %1022 = vmatmul.f32.gmra.mxu2 %v1989_v23  ;;  %v587_v57 = vpop.f32.mrf.mxu1  ;;  %1297 = vmatpush.msra.mxu3 %v369_v46 }
  0xee   : > { %v588_v58 = vadd.f32 %v587_v57, %v546_v45  ;;  %1173 = vmatpush.msra.mxu2 %v376_v62  ;;  %v249_v45 = vld [vmem:[%s1846_s17 + $0x1b0] sm:$0xff] }
  0xef   : > { %v2373_v11 = vpop.f32.mrf.mxu3  ;;  %v361_v57 = vld [vmem:[%s1846_s17 + $0x530] sm:$0xff] }
  0xf0   : > { %v695_v5 = vpop.f32.mrf.mxu2  ;;  %v2376_v53 = vadd.f32 %v2313_v0, %v588_v58  ;;  %955 = vmatmul.f32.gmra.mxu1 %v2128_v28  ;;  %v2382_v10 = vpop.f32.mrf.mxu0  ;;  %1174 = vmatpush.msra.mxu2 %v368_v15  ;;  %v265_v0 = vld [vmem:[%s1846_s17 + $0x230] sm:$0xff] }
  0xf1   : > { %v2379_v6 = vadd.f32 %v695_v5, %v2279_v35  ;;  %v2393_v35 = vld [vmem:[%s3013_s1] sm:$0xff]  ;;  %1253 = vmatpush.msra.mxu1 %v265_v0  ;;  %v353_v58 = vld [vmem:[%s1846_s17 + $0x4f0] sm:$0xff]  ;;  %1298 = vmatpush.msra.mxu3 %v361_v57  ;;  %v450_v57 = vld [vmem:[%s1846_s17 + $0x7f8] sm:$0xff] }
  0xf2   : > { %1175 = vmatpush.msra.mxu2 %v360_v16  ;;  %v456_v16 = vld [vmem:[%s1846_s17 + $0x828] sm:$0xff]  ;;  %v225_v0 = vld [vmem:[%s1846_s17 + $0xf0] sm:$0xff] }
  0xf3   : > { %1057 = vmatmul.f32.vlgmr.msrb.gmra.mxu0 %v1948_v3  ;;  %v344_v3 = vld [vmem:[%s1846_s17 + $0x4a8] sm:$0xff]  ;;  %1254 = vmatpush.msra.mxu1 %v257_v39  ;;  %v209_v39 = vld [vmem:[%s1846_s17 + $0x70] sm:$0xff] }
  0xf4   : > { %1139 = vmatmul.f32.vlgmr.msrb.gmra.mxu3 %v2393_v35  ;;  %1176 = vmatpush.msra.mxu2 %v352_v24  ;;  %v337_v24 = vld [vmem:[%s1846_s17 + $0x470] sm:$0xff] }
  0xf5   : > { %1025 = vmatmul.f32.gmra.mxu2 %v2019_v37  ;;  %v771_v27 = vpop.f32.mrf.mxu1  ;;  %1255 = vmatpush.msra.mxu1 %v249_v45 }
  0xf6   : > { %1177 = vmatpush.msra.mxu2 %v344_v3  ;;  %1299 = vmatpush.msra.mxu3 %v353_v58  ;;  %v442_v58 = vld [vmem:[%s1846_s17 + $0x7b8] sm:$0xff] }
  0xf7   : > { %v812_v30 = vpop.f32.mrf.mxu3  ;;  %1256 = vmatpush.msra.mxu1 %v241_v56  ;;  %1220 = vmatpush.msra.mxu0 %v456_v16  ;;  %v322_v56 = vld [vmem:[%s1846_s17 + $0x3f8] sm:$0xff]  ;;  %v2528_v16 = vld [vmem:[%s3013_s1 + $0x88] sm:$0xff] }
  0xf8   : > { %v698_v29 = vpop.f32.mrf.mxu2  ;;  %v2403_v33 = vadd.f32 %v812_v30, %v771_v27  ;;  %1731 = vmatmul.msk.f32.vlgmr.msrb.gmra.mxu1 %vm483_vm0, %v2408_v34  ;;  %v2412_v63 = vpop.f32.mrf.mxu0  ;;  %1300 = vmatpush.msra.mxu3 %v345_v19 }
  0xf9   : > { %v2401_v31 = vadd.f32 %v698_v29, %v2297_v49  ;;  %v336_v49 = vld [vmem:[%s1846_s17 + $0x468] sm:$0xff]  ;;  %1369 = vmatpush.msrb.mxu0 %v322_v56  ;;  %v418_v56 = vld [vmem:[%s1846_s17 + $0x6f8] sm:$0xff] }
  0xfa   : > { %1178 = vmatpush.msra.mxu2 %v336_v49  ;;  %1301 = vmatpush.msra.mxu3 %v337_v24  ;;  %v481_v49 = vld [vmem:[%s1846_s17 + $0x8f0] sm:$0xff]  ;;  %v434_v24 = vld [vmem:[%s1846_s17 + $0x778] sm:$0xff] }
  0xfb   : > { %1060 = vmatmul.f32.gmra.mxu0 %v1979_v18 }
  0xfc   : > { %1142 = vmatmul.f32.gmra.mxu3 %v2424_v44  ;;  %1179 = vmatpush.msra.mxu2 %v328_v41  ;;  %v482_v41 = vld [vmem:[%s1846_s17 + $0x8f8] sm:$0xff] }
  0xfd   : > { %1028 = vmatmul.f32.gmra.mxu2 %v2049_v51  ;;  %v774_v52 = vpop.f32.mrf.mxu1  ;;  %1302 = vmatpush.msra.mxu3 %v329_v42  ;;  %v474_v42 = vld [vmem:[%s1846_s17 + $0x8b8] sm:$0xff] }
  0xfe   : > { %1340 = vmatpush.msrb.mxu2 %v481_v49 }
  0xff   : > { %v815_v60 = vpop.f32.mrf.mxu3  ;;  %1463 = vmatpush.msrb.mxu3 %v482_v41  ;;  %v2558_v41 = vld [vmem:[%s3013_s1 + $0xa0] sm:$0xff] }
 0x100   : > { %v701_v18 = vpop.f32.mrf.mxu2  ;;  %v2432_v48 = vadd.f32 %v815_v60, %v774_v52  ;;  %1732 = vmatmul.msk.f32.gmra.mxu1 %vm483_vm0, %v2437_v21  ;;  %v2441_v55 = vpop.f32.mrf.mxu0 }
 0x101   : > { %v2430_v54 = vadd.f32 %v701_v18, %v2315_v2  ;;  %v233_v2 = vld [vmem:[%s1846_s17 + $0x130] sm:$0xff]  ;;  %1464 = vmatpush.msrb.mxu3 %v474_v42  ;;  %v394_v42 = vld [vmem:[%s1846_s17 + $0x638] sm:$0xff] }
 0x102   : > { %1257 = vmatpush.msra.mxu1 %v233_v2  ;;  %v314_v2 = vld [vmem:[%s1846_s17 + $0x3b8] sm:$0xff] }
 0x103   : > { %1063 = vmatmul.f32.gmra.mxu0 %v2009_v32 }
 0x104   : > { %1145 = vmatmul.f32.gmra.mxu3 %v1989_v23  ;;  %v2458_v23 = vld [vmem:[%s3013_s1 + $0x40] sm:$0xff]  ;;  %1258 = vmatpush.msra.mxu1 %v225_v0 }
 0x105   : > { %1031 = vmatmul.f32.gmra.mxu2 %v2078_v1  ;;  %v777_v62 = vpop.f32.mrf.mxu1  ;;  %1370 = vmatpush.msrb.mxu0 %v314_v2  ;;  %v410_v2 = vld [vmem:[%s1846_s17 + $0x6b8] sm:$0xff] }
 0x107   : > { %v818_v12 = vpop.f32.mrf.mxu3 }
 0x108   : > { %v704_v5 = vpop.f32.mrf.mxu2  ;;  %v2453_v13 = vadd.f32 %v818_v12, %v777_v62  ;;  %1733 = vmatmul.msk.f32.gmra.mxu1 %vm483_vm0, %v2458_v23  ;;  %v2462_v15 = vpop.f32.mrf.mxu0 }
 0x109   : > { %v2451_v32 = vadd.f32 %v704_v5, %v2331_v26  ;;  %v217_v26 = vld [vmem:[%s1846_s17 + $0xb0] sm:$0xff] }
 0x10a   : > { %1259 = vmatpush.msra.mxu1 %v217_v26  ;;  %v306_v26 = vld [vmem:[%s1846_s17 + $0x378] sm:$0xff] }
 0x10b   : > { %1066 = vmatmul.f32.gmra.mxu0 %v2040_v47 }
 0x10c   : > { %1148 = vmatmul.f32.gmra.mxu3 %v2019_v37  ;;  %v2480_v37 = vld [vmem:[%s3013_s1 + $0x58] sm:$0xff]  ;;  %1260 = vmatpush.msra.mxu1 %v209_v39 }
 0x10d   : > { %1034 = vmatmul.f32.gmra.mxu2 %v2096_v9  ;;  %v780_v27 = vpop.f32.mrf.mxu1  ;;  %1371 = vmatpush.msrb.mxu0 %v306_v26 }
 0x10f   : > { %v821_v29 = vpop.f32.mrf.mxu3 }
 0x110   : > { %v707_v3 = vpop.f32.mrf.mxu2  ;;  %v2475_v30 = vadd.f32 %v821_v29, %v780_v27  ;;  %1734 = vmatmul.msk.f32.gmra.mxu1 %vm483_vm0, %v2480_v37  ;;  %v2484_v38 = vpop.f32.mrf.mxu0  ;;  %v473_v27 = vld [vmem:[%s1846_s17 + $0x8b0] sm:$0xff]  ;;  %v426_v29 = vld [vmem:[%s1846_s17 + $0x738] sm:$0xff] }
 0x111   : > { %v2473_v47 = vadd.f32 %v707_v3, %v2351_v43  ;;  %v201_v43 = vld [vmem:[%s1846_s17 + $0x30] sm:$0xff]  ;;  %v298_v3 = vld [vmem:[%s1846_s17 + $0x338] sm:$0xff]  ;;  %1341 = vmatpush.msrb.mxu2 %v473_v27 }
 0x112   : > { %1261 = vmatpush.msra.mxu1 %v201_v43  ;;  %1372 = vmatpush.msrb.mxu0 %v298_v3  ;;  %v274_v27 = vld [vmem:[%s1846_s17 + $0x278] sm:$0xff] }
 0x113   : > { %1069 = vmatmul.f32.gmra.mxu0 %v2069_v61  ;;  %v402_v3 = vld [vmem:[%s1846_s17 + $0x678] sm:$0xff] }
 0x114   : > { %1151 = vmatmul.f32.gmra.mxu3 %v2049_v51  ;;  %v2502_v51 = vld [vmem:[%s3013_s1 + $0x70] sm:$0xff]  ;;  %1410 = vmatpush.msrb.mxu1 %v450_v57  ;;  %v282_v57 = vld [vmem:[%s1846_s17 + $0x2b8] sm:$0xff] }
 0x115   : > { %1037 = vmatmul.f32.gmra.mxu2 %v2116_v20  ;;  %v783_v45 = vpop.f32.mrf.mxu1 }
 0x116   : > { %1411 = vmatpush.msrb.mxu1 %v442_v58 }
 0x117   : > { %v824_v52 = vpop.f32.mrf.mxu3 }
 0x118   : > { %v710_v46 = vpop.f32.mrf.mxu2  ;;  %v2497_v18 = vadd.f32 %v824_v52, %v783_v45  ;;  %1735 = vmatmul.msk.f32.gmra.mxu1 %vm483_vm0, %v2502_v51  ;;  %v2506_v60 = vpop.f32.mrf.mxu0  ;;  %v290_v52 = vld [vmem:[%s1846_s17 + $0x2f8] sm:$0xff] }
 0x119   : > { %v2495_v61 = vadd.f32 %v710_v46, %v2373_v11  ;;  %v2515_v11 = vld [vmem:[%s3013_s1 + $0x8] sm:$0xff]  ;;  %1412 = vmatpush.msrb.mxu1 %v434_v24  ;;  %1373 = vmatpush.msrb.mxu0 %v290_v52 }
 0x11a   : > { %v2707_v24 = vld [vmem:[%s3013_s1 + $0x48] sm:$0xff] }
 0x11b   : > { %1072 = vmatmul.f32.gmra.mxu0 %v2090_v7  ;;  %1413 = vmatpush.msrb.mxu1 %v426_v29  ;;  %v465_v29 = vld [vmem:[%s1846_s17 + $0x870] sm:$0xff] }
 0x11c   : > { %1154 = vmatmul.f32.gmra.mxu3 %v2078_v1  ;;  %1374 = vmatpush.msrb.mxu0 %v282_v57 }
 0x11d   : > { %1180 = vmatmul.f32.vlgmr.msra.gmra.mxu2 %v2515_v11  ;;  %v786_v62 = vpop.f32.mrf.mxu1  ;;  %1414 = vmatpush.msrb.mxu1 %v418_v56 }
 0x11e   : > { %1375 = vmatpush.msrb.mxu0 %v274_v27  ;;  %1342 = vmatpush.msrb.mxu2 %v465_v29  ;;  %v386_v29 = vld [vmem:[%s1846_s17 + $0x5f8] sm:$0xff] }
 0x11f   : > { %v827_v5 = vpop.f32.mrf.mxu3  ;;  %1415 = vmatpush.msrb.mxu1 %v410_v2  ;;  %v2609_v2 = vadd.f32 %v2382_v10, %v2337_v59  ;;  %v2629_v59 = vld [vmem:[%s3013_s1 + $0x68] sm:$0xff]  ;;  %v250_v10 = vld [vmem:[%s1846_s17 + $0x1b8] sm:$0xff] }
 0x120   : > { %v853_v7 = vpop.f32.mrf.mxu2  ;;  %v2520_v1 = vadd.f32 %v827_v5, %v786_v62  ;;  %1736 = vmatmul.msk.f32.gmra.mxu1 %vm483_vm0, %v2528_v16  ;;  %v2532_v0 = vpop.f32.mrf.mxu0 }
 0x121   : > { %v2523_v12 = vadd.f32 %v853_v7, %v2403_v33  ;;  %v2543_v33 = vld [vmem:[%s3013_s1 + $0x20] sm:$0xff]  ;;  %v2586_v7 = vld [vmem:[%s3013_s1 + $0xb8] sm:$0xff]  ;;  %1416 = vmatpush.msrb.mxu1 %v402_v3 }
 0x122   : > { %v258_v3 = vld [vmem:[%s1846_s17 + $0x1f8] sm:$0xff] }
 0x123   : > { %1075 = vmatmul.f32.gmra.mxu0 %v2109_v17  ;;  %1417 = vmatpush.msrb.mxu1 %v394_v42 }
 0x124   : > { %1157 = vmatmul.f32.gmra.mxu3 %v2096_v9 }
 0x125   : > { %1183 = vmatmul.f32.gmra.mxu2 %v2543_v33  ;;  %v789_v39 = vpop.f32.mrf.mxu1  ;;  %1418 = vmatpush.msrb.mxu1 %v386_v29 }
 0x127   : > { %v830_v17 = vpop.f32.mrf.mxu3 }
 0x128   : > { %v856_v9 = vpop.f32.mrf.mxu2  ;;  %v2550_v43 = vadd.f32 %v830_v17, %v789_v39  ;;  %1737 = vmatmul.msk.f32.gmra.mxu1 %vm483_vm0, %v2558_v41  ;;  %v2562_v45 = vpop.f32.mrf.mxu0  ;;  %v266_v39 = vld [vmem:[%s1846_s17 + $0x238] sm:$0xff] }
 0x129   : > { %v2553_v49 = vadd.f32 %v856_v9, %v2432_v48  ;;  %v2573_v48 = vld [vmem:[%s3013_s1 + $0x38] sm:$0xff]  ;;  %1376 = vmatpush.msrb.mxu0 %v266_v39  ;;  %v457_v39 = vld [vmem:[%s1846_s17 + $0x830] sm:$0xff] }
 0x12a   : > { %v466_v9 = vld [vmem:[%s1846_s17 + $0x878] sm:$0xff]  ;;  %1343 = vmatpush.msrb.mxu2 %v457_v39 }
 0x12b   : > { %1078 = vmatmul.f32.gmra.mxu0 %v2128_v28  ;;  %1465 = vmatpush.msrb.mxu3 %v466_v9 }
 0x12c   : > { %1160 = vmatmul.f32.gmra.mxu3 %v2116_v20  ;;  %1377 = vmatpush.msrb.mxu0 %v258_v3 }
 0x12d   : > { %1186 = vmatmul.f32.gmra.mxu2 %v2573_v48  ;;  %v792_v58 = vpop.f32.mrf.mxu1 }
 0x12e   : > { %1378 = vmatpush.msrb.mxu0 %v250_v10  ;;  %v242_v10 = vld [vmem:[%s1846_s17 + $0x178] sm:$0xff] }
 0x12f   : > { %v833_v62 = vpop.f32.mrf.mxu3 }
 0x130   : > { %v859_v28 = vpop.f32.mrf.mxu2  ;;  %v2578_v20 = vadd.f32 %v833_v62, %v792_v58  ;;  %1738 = vmatmul.msk.f32.gmra.mxu1 %vm483_vm0, %v2586_v7  ;;  %v894_v26 = vpop.f32.mrf.mxu0  ;;  %1379 = vmatpush.msrb.mxu0 %v242_v10  ;;  %v2675_v10 = vld [vmem:[%s3013_s1 + $0x30] sm:$0xff] }
 0x131   : > { %v2581_v5 = vadd.f32 %v859_v28, %v2453_v13  ;;  %v2599_v13 = vld [vmem:[%s3013_s1 + $0x50] sm:$0xff] }
 0x133   : > { %1739 = vmatmul.msk.f32.vlgmr.msra.gmra.mxu0 %vm483_vm0, %v2408_v34 }
 0x134   : > { %1303 = vmatmul.f32.vlgmr.msra.gmra.mxu3 %v2515_v11 }
 0x135   : > { %1189 = vmatmul.f32.gmra.mxu2 %v2599_v13  ;;  %v935_v17 = vpop.f32.mrf.mxu1 }
 0x136   : > { %v936_v52 = vadd.f32 %v935_v17, %v894_v26 }
 0x137   : > { %v976_v57 = vpop.f32.mrf.mxu3 }
 0x138   : > { %v862_v56 = vpop.f32.mrf.mxu2  ;;  %v2614_v62 = vadd.f32 %v976_v57, %v936_v52  ;;  %1262 = vmatmul.f32.vlgmr.msra.gmra.mxu1 %v2393_v35  ;;  %v897_v28 = vpop.f32.mrf.mxu0 }
 0x139   : > { %v2612_v58 = vadd.f32 %v862_v56, %v2475_v30  ;;  %v378_v30 = vld [vmem:[%s1846_s17 + $0x5b8] sm:$0xff]  ;;  %v2637_v56 = vadd.f32 %v2412_v63, %v2357_v40  ;;  %v2656_v40 = vld [vmem:[%s3013_s1 + $0x80] sm:$0xff] }
 0x13a   : > { %1419 = vmatpush.msrb.mxu1 %v378_v30  ;;  %v370_v30 = vld [vmem:[%s1846_s17 + $0x578] sm:$0xff] }
 0x13b   : > { %1740 = vmatmul.msk.f32.gmra.mxu0 %vm483_vm0, %v2437_v21  ;;  %v234_v63 = vld [vmem:[%s1846_s17 + $0x138] sm:$0xff] }
 0x13c   : > { %1306 = vmatmul.f32.gmra.mxu3 %v2543_v33  ;;  %1420 = vmatpush.msrb.mxu1 %v370_v30 }
 0x13d   : > { %1192 = vmatmul.f32.gmra.mxu2 %v2629_v59  ;;  %v938_v42 = vpop.f32.mrf.mxu1  ;;  %1380 = vmatpush.msrb.mxu0 %v234_v63 }
 0x13e   : > { %v939_v17 = vadd.f32 %v938_v42, %v897_v28  ;;  %v458_v42 = vld [vmem:[%s1846_s17 + $0x838] sm:$0xff]  ;;  %v2665_v28 = vadd.f32 %v2441_v55, %v2379_v6 }
 0x13f   : > { %v979_v52 = vpop.f32.mrf.mxu3  ;;  %1466 = vmatpush.msrb.mxu3 %v458_v42  ;;  %v226_v55 = vld [vmem:[%s1846_s17 + $0xf8] sm:$0xff] }
 0x140   : > { %v865_v9 = vpop.f32.mrf.mxu2  ;;  %v2642_v29 = vadd.f32 %v979_v52, %v939_v17  ;;  %1265 = vmatmul.f32.gmra.mxu1 %v2424_v44  ;;  %v900_v3 = vpop.f32.mrf.mxu0  ;;  %v218_v42 = vld [vmem:[%s1846_s17 + $0xb8] sm:$0xff]  ;;  %1381 = vmatpush.msrb.mxu0 %v226_v55 }
 0x141   : > { %v2640_v57 = vadd.f32 %v865_v9, %v2497_v18  ;;  %v362_v18 = vld [vmem:[%s1846_s17 + $0x538] sm:$0xff] }
 0x142   : > { %1421 = vmatpush.msrb.mxu1 %v362_v18  ;;  %v354_v18 = vld [vmem:[%s1846_s17 + $0x4f8] sm:$0xff]  ;;  %1382 = vmatpush.msrb.mxu0 %v218_v42  ;;  %v1540_v42 = vld [vmem:[%s3014_s2] sm:$0xff] }
 0x143   : > { %1741 = vmatmul.msk.f32.gmra.mxu0 %vm483_vm0, %v2458_v23 }
 0x144   : > { %1309 = vmatmul.f32.gmra.mxu3 %v2573_v48  ;;  %1422 = vmatpush.msrb.mxu1 %v354_v18  ;;  %v2697_v18 = vadd.f32 %v2462_v15, %v2401_v31  ;;  %v210_v15 = vld [vmem:[%s1846_s17 + $0x78] sm:$0xff] }
 0x145   : > { %1195 = vmatmul.f32.gmra.mxu2 %v2656_v40  ;;  %v941_v17 = vpop.f32.mrf.mxu1  ;;  %1383 = vmatpush.msrb.mxu0 %v210_v15  ;;  %v2742_v15 = vld [vmem:[%s3013_s1 + $0x60] sm:$0xff] }
 0x146   : > { %v942_v9 = vadd.f32 %v941_v17, %v900_v3  ;;  %v346_v17 = vld [vmem:[%s1846_s17 + $0x4b8] sm:$0xff] }
 0x147   : > { %v982_v30 = vpop.f32.mrf.mxu3  ;;  %1423 = vmatpush.msrb.mxu1 %v346_v17  ;;  %v2724_v17 = vld [vmem:[%s3013_s1 + $0xb0] sm:$0xff] }
 0x148   : > { %v868_v52 = vpop.f32.mrf.mxu2  ;;  %v2670_v26 = vadd.f32 %v982_v30, %v942_v9  ;;  %1268 = vmatmul.f32.gmra.mxu1 %v2675_v10  ;;  %v903_v3 = vpop.f32.mrf.mxu0 }
 0x149   : > { %v2668_v39 = vadd.f32 %v868_v52, %v2520_v1  ;;  %v2689_v1 = vld [vmem:[%s3013_s1 + $0x98] sm:$0xff] }
 0x14b   : > { %1742 = vmatmul.msk.f32.gmra.mxu0 %vm483_vm0, %v2480_v37 }
 0x14c   : > { %1312 = vmatmul.f32.gmra.mxu3 %v2599_v13 }
 0x14d   : > { %1198 = vmatmul.f32.gmra.mxu2 %v2689_v1  ;;  %v944_v9 = vpop.f32.mrf.mxu1 }
 0x14e   : > { %v945_v52 = vadd.f32 %v944_v9, %v903_v3  ;;  %v202_v9 = vld [vmem:[%s1846_s17 + $0x38] sm:$0xff] }
 0x14f   : > { %v985_v63 = vpop.f32.mrf.mxu3  ;;  %1384 = vmatpush.msrb.mxu0 %v202_v9 }
 0x150   : > { %v871_v30 = vpop.f32.mrf.mxu2  ;;  %v2702_v27 = vadd.f32 %v985_v63, %v945_v52  ;;  %1271 = vmatmul.f32.gmra.mxu1 %v2707_v24  ;;  %v906_v3 = vpop.f32.mrf.mxu0  ;;  %v1811_v63 = vmov 0   ;;  %v330_v52 = vld [vmem:[%s1846_s17 + $0x438] sm:$0xff] }
 0x151   : > { %v2700_v6 = vadd.f32 %v871_v30, %v2550_v43  ;;  %v338_v43 = vld [vmem:[%s1846_s17 + $0x478] sm:$0xff]  ;;  %1776 = vset.pattern.permute.xlu0 %v1811_v63  ;;  %1777 = vset.pattern.permute.xlu1 %v1811_v63 }
 0x152   : > { %1424 = vmatpush.msrb.mxu1 %v338_v43  ;;  %1550 = vperm.xlu0 %1776, %v1540_v42   ;;  %v2732_v43 = vadd.f32 %v2484_v38, %v2430_v54  ;;  %v1541_v38 = vld [vmem:[%s3014_s2 + $0x8] sm:$0xff]  ;;  %v2759_v42 = vadd.f32 %v2506_v60, %v2451_v32  ;;  %v2803_v54 = vadd.f32 %v2562_v45, %v2495_v61 }
 0x153   : > { %3024 = vst [vmem:[#allocation2_spill] sm:$0xff] %v2700_v6  ;;  %1743 = vmatmul.msk.f32.gmra.mxu0 %vm483_vm0, %v2502_v51  ;;  %1778 = vset.pattern.permute.xlu2 %v1811_v63 }
 0x154   : > { %1315 = vmatmul.f32.gmra.mxu3 %v2629_v59  ;;  %1425 = vmatpush.msrb.mxu1 %v330_v52  ;;  %3026 = vst [vmem:[#allocation4_spill] sm:$0xff] %v2759_v42  ;;  %v2766_v52 = vld [vmem:[%s3013_s1 + $0x78] sm:$0xff] }
 0x155   : > { %1201 = vmatmul.f32.gmra.mxu2 %v2724_v17  ;;  %v947_v30 = vpop.f32.mrf.mxu1  ;;  %3030 = vst [vmem:[#allocation8_spill] sm:$0xff] %v2803_v54 }
 0x156   : > { %v948_v55 = vadd.f32 %v947_v30, %v906_v3 }
 0x157   : > { %v988_v46 = vpop.f32.mrf.mxu3 }
 0x158   : > { %v874_v31 = vpop.f32.mrf.mxu2  ;;  %v2737_v6 = vadd.f32 %v988_v46, %v948_v55  ;;  %1274 = vmatmul.f32.gmra.mxu1 %v2742_v15  ;;  %v909_v3 = vpop.f32.mrf.mxu0 }
 0x159   : > { %v2735_v19 = vadd.f32 %v874_v31, %v2578_v20 }
 0x15a   : > { %1555 = vperm.xlu0 %1776, %v1541_v38  }
 0x15b   : > { %3025 = vst [vmem:[#allocation3_spill] sm:$0xff] %v2735_v19  ;;  %1744 = vmatmul.msk.f32.gmra.mxu0 %vm483_vm0, %v2528_v16 }
 0x15c   : > { %1318 = vmatmul.f32.gmra.mxu3 %v2656_v40 }
 0x15d   : > { %1747 = vmatmul.msk.f32.vlgmr.msrb.gmra.mxu2 %vm483_vm0, %v2408_v34  ;;  %v950_v46 = vpop.f32.mrf.mxu1 }
 0x15e   : > { %v951_v20 = vadd.f32 %v950_v46, %v909_v3  ;;  %v1542_v3 = vld [vmem:[%s3014_s2 + $0x10] sm:$0xff] }
 0x15f   : > { %v991_v55 = vpop.f32.mrf.mxu3  ;;  %1560 = vperm.xlu1 %1777, %v1542_v3   ;;  %v2788_v3 = vld [vmem:[%s3013_s1 + $0x90] sm:$0xff] }
 0x160   : > { %v1017_v31 = vpop.f32.mrf.mxu2  ;;  %v2761_v9 = vadd.f32 %v991_v55, %v951_v20  ;;  %1277 = vmatmul.f32.gmra.mxu1 %v2766_v52  ;;  %v912_v30 = vpop.f32.mrf.mxu0  ;;  %v2781_v55 = vadd.f32 %v2532_v0, %v2473_v47 }
 0x162   : > { %3027 = vst [vmem:[#allocation5_spill] sm:$0xff] %v2761_v9 }
 0x163   : > { %1745 = vmatmul.msk.f32.gmra.mxu0 %vm483_vm0, %v2558_v41  ;;  %3028 = vst [vmem:[#allocation6_spill] sm:$0xff] %v2781_v55 }
 0x164   : > { %1321 = vmatmul.f32.gmra.mxu3 %v2689_v1 }
 0x165   : > { %1748 = vmatmul.msk.f32.gmra.mxu2 %vm483_vm0, %v2437_v21  ;;  %v953_v32 = vpop.f32.mrf.mxu1 }
 0x166   : > { %v954_v60 = vadd.f32 %v953_v32, %v912_v30  ;;  %v1543_v30 = vld [vmem:[%s3014_s2 + $0x18] sm:$0xff] }
 0x167   : > { %v994_v46 = vpop.f32.mrf.mxu3  ;;  %1565 = vperm.xlu1 %1777, %v1543_v30   ;;  %v2810_v30 = vld [vmem:[%s3013_s1 + $0xa8] sm:$0xff] }
 0x168   : > { %v1020_v20 = vpop.f32.mrf.mxu2  ;;  %v2783_v63 = vadd.f32 %v994_v46, %v954_v60  ;;  %1280 = vmatmul.f32.gmra.mxu1 %v2788_v3  ;;  %v915_v38 = vpop.f32.mrf.mxu0 }
 0x16a   : > { %3029 = vst [vmem:[#allocation7_spill] sm:$0xff] %v2783_v63 }
 0x16b   : > { %1746 = vmatmul.msk.f32.gmra.mxu0 %vm483_vm0, %v2586_v7 }
 0x16c   : > { %1324 = vmatmul.f32.gmra.mxu3 %v2724_v17 }
 0x16d   : > { %1749 = vmatmul.msk.f32.gmra.mxu2 %vm483_vm0, %v2458_v23  ;;  %v956_v47 = vpop.f32.mrf.mxu1 }
 0x16e   : > { %v957_v0 = vadd.f32 %v956_v47, %v915_v38 }
 0x16f   : > { %v997_v60 = vpop.f32.mrf.mxu3 }
 0x170   : > { %v1023_v46 = vpop.f32.mrf.mxu2  ;;  %v2805_v9 = vadd.f32 %v997_v60, %v957_v0  ;;  %1283 = vmatmul.f32.gmra.mxu1 %v2810_v30  ;;  %v1058_v32 = vpop.f32.mrf.mxu0 }
 0x171   : > { %v1059_v63 = vadd.f32 %v1058_v32, %v1017_v31 }
 0x172   : > { %3031 = vst [vmem:[#allocation9_spill] sm:$0xff] %v2805_v9 }
 0x173   : > { %1385 = vmatmul.f32.vlgmr.msrb.gmra.mxu0 %v2393_v35 }
 0x174   : > { %1755 = vmatmul.msk.f32.vlgmr.msrb.gmra.mxu3 %vm483_vm0, %v2408_v34 }
 0x175   : > { %1750 = vmatmul.msk.f32.gmra.mxu2 %vm483_vm0, %v2480_v37  ;;  %v1099_v61 = vpop.f32.mrf.mxu1 }
 0x176   : > { %v2820_v45 = vadd.f32 %v1099_v61, %v1059_v63 }
 0x177   : > { %v1140_v0 = vpop.f32.mrf.mxu3 }
 0x178   : > { %v1026_v47 = vpop.f32.mrf.mxu2  ;;  %1426 = vmatmul.f32.vlgmr.msrb.gmra.mxu1 %v2515_v11  ;;  %v1061_v60 = vpop.f32.mrf.mxu0  ;;  %v1546_v11 = vld [vmem:[%s3014_s2 + $0x30] sm:$0xff] }
 0x179   : > { %v1062_v31 = vadd.f32 %v1061_v60, %v1020_v20  ;;  %1580 = vperm.xlu0 %1776, %v1546_v11   ;;  %v1545_v11 = vld [vmem:[%s3014_s2 + $0x28] sm:$0xff] }
 0x17b   : > { %1388 = vmatmul.f32.gmra.mxu0 %v2424_v44 }
 0x17c   : > { %1756 = vmatmul.msk.f32.gmra.mxu3 %vm483_vm0, %v2437_v21 }
 0x17d   : > { %1751 = vmatmul.msk.f32.gmra.mxu2 %vm483_vm0, %v2502_v51  ;;  %v1102_v35 = vpop.f32.mrf.mxu1 }
 0x17e   : > { %v2828_v32 = vadd.f32 %v1102_v35, %v1062_v31  ;;  %v1544_v31 = vld [vmem:[%s3014_s2 + $0x20] sm:$0xff] }
 0x17f   : > { %v1143_v63 = vpop.f32.mrf.mxu3  ;;  %1570 = vperm.xlu2 %1778, %v1544_v31  }
 0x180   : > { %v1029_v34 = vpop.f32.mrf.mxu2  ;;  %1429 = vmatmul.f32.gmra.mxu1 %v2543_v33  ;;  %v1064_v61 = vpop.f32.mrf.mxu0 }
 0x181   : > { %v1065_v38 = vadd.f32 %v1064_v61, %v1023_v46 }
 0x183   : > { %1391 = vmatmul.f32.gmra.mxu0 %v2675_v10  ;;  %v1547_v10 = vld [vmem:[%s3014_s2 + $0x38] sm:$0xff] }
 0x184   : > { %1757 = vmatmul.msk.f32.gmra.mxu3 %vm483_vm0, %v2458_v23  ;;  %1585 = vperm.xlu1 %1777, %v1547_v10  }
 0x185   : > { %1752 = vmatmul.msk.f32.gmra.mxu2 %vm483_vm0, %v2528_v16  ;;  %v1105_v44 = vpop.f32.mrf.mxu1 }
 0x186   : > { %v2839_v21 = vadd.f32 %v1105_v44, %v1065_v38 }
 0x187   : > { %v1146_v33 = vpop.f32.mrf.mxu3  ;;  %1575 = vperm.xlu2 %1778, %v1545_v11  }
 0x188   : > { %v1032_v20 = vpop.f32.mrf.mxu2  ;;  %1432 = vmatmul.f32.gmra.mxu1 %v2573_v48  ;;  %v1067_v46 = vpop.f32.mrf.mxu0 }
 0x189   : > { %v1068_v60 = vadd.f32 %v1067_v46, %v1026_v47 }
 0x18b   : > { %1394 = vmatmul.f32.gmra.mxu0 %v2707_v24 }
 0x18c   : > { %1758 = vmatmul.msk.f32.gmra.mxu3 %vm483_vm0, %v2480_v37 }
 0x18d   : > { %1753 = vmatmul.msk.f32.gmra.mxu2 %vm483_vm0, %v2558_v41  ;;  %v1108_v23 = vpop.f32.mrf.mxu1 }
 0x18e   : > { %v2853_v48 = vadd.f32 %v1108_v23, %v1068_v60 }
 0x18f   : > { %v1149_v47 = vpop.f32.mrf.mxu3 }
 0x190   : > { %v1035_v38 = vpop.f32.mrf.mxu2  ;;  %1435 = vmatmul.f32.gmra.mxu1 %v2599_v13  ;;  %v1070_v35 = vpop.f32.mrf.mxu0 }
 0x191   : > { %v1071_v61 = vadd.f32 %v1070_v35, %v1029_v34 }
 0x193   : > { %1397 = vmatmul.f32.gmra.mxu0 %v2742_v15 }
 0x194   : > { %1759 = vmatmul.msk.f32.gmra.mxu3 %vm483_vm0, %v2502_v51 }
 0x195   : > { %1754 = vmatmul.msk.f32.gmra.mxu2 %vm483_vm0, %v2586_v7  ;;  %v1111_v37 = vpop.f32.mrf.mxu1 }
 0x196   : > { %v2864_v24 = vadd.f32 %v1111_v37, %v1071_v61 }
 0x197   : > { %v1152_v13 = vpop.f32.mrf.mxu3 }
 0x198   : > { %v1038_v44 = vpop.f32.mrf.mxu2  ;;  %1438 = vmatmul.f32.gmra.mxu1 %v2629_v59  ;;  %v1073_v34 = vpop.f32.mrf.mxu0 }
 0x199   : > { %v1074_v46 = vadd.f32 %v1073_v34, %v1032_v20 }
 0x19b   : > { %1400 = vmatmul.f32.gmra.mxu0 %v2766_v52 }
 0x19c   : > { %1760 = vmatmul.msk.f32.gmra.mxu3 %vm483_vm0, %v2528_v16 }
 0x19d   : > { %v1114_v15 = vpop.f32.mrf.mxu1 }
 0x19e   : > { %v2870_v60 = vadd.f32 %v1114_v15, %v1074_v46 }
 0x19f   : > { %v1155_v31 = vpop.f32.mrf.mxu3 }
 0x1a0   : > { %v1181_v10 = vpop.f32.mrf.mxu2  ;;  %1441 = vmatmul.f32.gmra.mxu1 %v2656_v40  ;;  %v1076_v23 = vpop.f32.mrf.mxu0 }
 0x1a1   : > { %v1182_v51 = vadd.f32 %v1181_v10, %v1140_v0  ;;  %v1077_v35 = vadd.f32 %v1076_v23, %v1035_v38 }
 0x1a3   : > { %1403 = vmatmul.f32.gmra.mxu0 %v2788_v3 }
 0x1a4   : > { %1761 = vmatmul.msk.f32.gmra.mxu3 %vm483_vm0, %v2558_v41 }
 0x1a5   : > { %v1117_v59 = vpop.f32.mrf.mxu1 }
 0x1a6   : > { %v2876_v52 = vadd.f32 %v1117_v59, %v1077_v35 }
 0x1a7   : > { %v1158_v20 = vpop.f32.mrf.mxu3 }
 0x1a8   : > { %v1184_v16 = vpop.f32.mrf.mxu2  ;;  %1444 = vmatmul.f32.gmra.mxu1 %v2689_v1  ;;  %v1079_v11 = vpop.f32.mrf.mxu0 }
 0x1a9   : > { %v1185_v61 = vadd.f32 %v1184_v16, %v1143_v63  ;;  %v1080_v37 = vadd.f32 %v1079_v11, %v1038_v44 }
 0x1ab   : > { %1406 = vmatmul.f32.gmra.mxu0 %v2810_v30 }
 0x1ac   : > { %1762 = vmatmul.msk.f32.gmra.mxu3 %vm483_vm0, %v2586_v7 }
 0x1ad   : > { %v1120_v40 = vpop.f32.mrf.mxu1 }
 0x1ae   : > { %v2882_v3 = vadd.f32 %v1120_v40, %v1080_v37 }
 0x1af   : > { %v1161_v0 = vpop.f32.mrf.mxu3 }
 0x1b0   : > { %v1187_v41 = vpop.f32.mrf.mxu2  ;;  %1447 = vmatmul.f32.gmra.mxu1 %v2724_v17  ;;  %v1222_v34 = vpop.f32.mrf.mxu0 }
 0x1b1   : > { %v1188_v38 = vadd.f32 %v1187_v41, %v1146_v33  ;;  %v2885_v46 = vadd.f32 %v1222_v34, %v1182_v51 }
 0x1b5   : > { %v1263_v63 = vpop.f32.mrf.mxu1 }
 0x1b7   : > { %v1304_v15 = vpop.f32.mrf.mxu3 }
 0x1b8   : > { %v1190_v1 = vpop.f32.mrf.mxu2  ;;  %v1225_v10 = vpop.f32.mrf.mxu0 }
 0x1b9   : > { %v1191_v44 = vadd.f32 %v1190_v1, %v1149_v47  ;;  %v2887_v30 = vadd.f32 %v1225_v10, %v1185_v61 }
 0x1bd   : > { %v1266_v23 = vpop.f32.mrf.mxu1 }
 0x1bf   : > { %v1307_v35 = vpop.f32.mrf.mxu3 }
 0x1c0   : > { %v1193_v7 = vpop.f32.mrf.mxu2  ;;  %v1228_v16 = vpop.f32.mrf.mxu0 }
 0x1c1   : > { %v1194_v59 = vadd.f32 %v1193_v7, %v1152_v13  ;;  %v2889_v11 = vadd.f32 %v1228_v16, %v1188_v38 }
 0x1c5   : > { %v1269_v33 = vpop.f32.mrf.mxu1 }
 0x1c7   : > { %v1310_v17 = vpop.f32.mrf.mxu3 }
 0x1c8   : > { %v1196_v37 = vpop.f32.mrf.mxu2  ;;  %v1231_v51 = vpop.f32.mrf.mxu0 }
 0x1c9   : > { %v1197_v40 = vadd.f32 %v1196_v37, %v1155_v31  ;;  %v2891_v41 = vadd.f32 %v1231_v51, %v1191_v44  ;;  %v1305_v31 = vadd.f32 %v1304_v15, %v1263_v63 }
 0x1cd   : > { %v1272_v34 = vpop.f32.mrf.mxu1 }
 0x1cf   : > { %v1313_v47 = vpop.f32.mrf.mxu3 }
 0x1d0   : > { %v1199_v9 = vpop.f32.mrf.mxu2  ;;  %v1234_v61 = vpop.f32.mrf.mxu0 }
 0x1d1   : > { %v1200_v1 = vadd.f32 %v1199_v9, %v1158_v20  ;;  %v2893_v10 = vadd.f32 %v1234_v61, %v1194_v59  ;;  %v1551_v20 = vpop.permute.xlu0 %1550 }
 0x1d5   : > { %v1275_v54 = vpop.f32.mrf.mxu1 }
 0x1d7   : > { %v1316_v7 = vpop.f32.mrf.mxu3 }
 0x1d8   : > { %v1202_v13 = vpop.f32.mrf.mxu2  ;;  %v1237_v16 = vpop.f32.mrf.mxu0 }
 0x1d9   : > { %v1203_v38 = vadd.f32 %v1202_v13, %v1161_v0  ;;  %v2895_v55 = vadd.f32 %v1237_v16, %v1197_v40  ;;  %v3032_v0 = vmax.f32 %v2247_v14, %v2523_v12  ;;  %v1308_v13 = vadd.f32 %v1307_v35, %v1266_v23  ;;  %v1556_v12 = vpop.permute.xlu0 %1555 }
 0x1da   : > { %v3033_v23 = vmax.f32 %v2265_v22, %v2553_v49 }
 0x1dd   : > { %v2897_v42 = vpop.f32.mrf.mxu1 }
 0x1df   : > { %v2899_v44 = vpop.f32.mrf.mxu3 }
 0x1e0   : > { %v1345_v37 = vpop.f32.mrf.mxu2  ;;  %v1240_v19 = vpop.f32.mrf.mxu0 }
 0x1e1   : > { %v1346_v51 = vadd.f32 %v1345_v37, %v1305_v31  ;;  %v2901_v9 = vadd.f32 %v1240_v19, %v1200_v1 }
 0x1e3   : > { %v1508_v59 = vmax.f32 %v2820_v45, %v1346_v51  ;;  %v1311_v51 = vadd.f32 %v1310_v17, %v1269_v33 }
 0x1e5   : > { %v1524_v61 = vmax.f32 %v3032_v0, %v1508_v59  ;;  %v2908_v40 = vpop.f32.mrf.mxu1 }
 0x1e7   : > { %v1588_v16 = vadd.f32 %v1551_v20, %v1524_v61  ;;  %v2915_v19 = vpop.f32.mrf.mxu3 }
 0x1e8   : > { %v1348_v63 = vpop.f32.mrf.mxu2  ;;  %v1243_v1 = vpop.f32.mrf.mxu0 }
 0x1e9   : > { %v1604_v15 = vmax.f32 %v1588_v16, 0.0  ;;  %v1349_v45 = vadd.f32 %v1348_v63, %v1308_v13  ;;  %v2917_v31 = vadd.f32 %v1243_v1, %v1203_v38  ;;  %v1561_v63 = vpop.permute.xlu1 %1560 }
 0x1eb   : > { %1620 = vst [vmem:[%s2913_s9] sm:$0xff] %v1604_v15  ;;  %v1510_v14 = vmax.f32 %v2828_v32, %v1349_v45  ;;  %v3034_v15 = vmax.f32 %v2282_v36, %v2581_v5  ;;  %v1314_v45 = vadd.f32 %v1313_v47, %v1272_v34  ;;  %v3035_v36 = vmax.f32 %v2609_v2, %v2614_v62  ;;  %v2942_v2 = vpop.permute.xlu2 %1570 }
 0x1ec   : > { %v3036_v34 = vmax.f32 %v2300_v50, %v2612_v58  ;;  %v3037_v58 = vmax.f32 %v2637_v56, %v2642_v29 }
 0x1ed   : > { %v1526_v35 = vmax.f32 %v3033_v23, %v1510_v14  ;;  %v2924_v37 = vpop.f32.mrf.mxu1 }
 0x1ef   : > { %v1590_v59 = vadd.f32 %v1556_v12, %v1526_v35  ;;  %v2926_v0 = vpop.f32.mrf.mxu3 }
 0x1f0   : > { %v1351_v61 = vpop.f32.mrf.mxu2  ;;  %v1386_v38 = vpop.f32.mrf.mxu0 }
 0x1f1   : > { %v1606_v13 = vmax.f32 %v1590_v59, 0.0  ;;  %v1352_v16 = vadd.f32 %v1351_v61, %v1311_v51 }
 0x1f3   : > { %1622 = vst [vmem:[%s2913_s9 + $0x10] sm:$0xff] %v1606_v13  ;;  %v1512_v32 = vmax.f32 %v2839_v21, %v1352_v16  ;;  %v1566_v21 = vpop.permute.xlu1 %1565 }
 0x1f5   : > { %v1528_v22 = vmax.f32 %v3034_v15, %v1512_v32  ;;  %v1427_v49 = vpop.f32.mrf.mxu1 }
 0x1f6   : > { %v1428_v33 = vadd.f32 %v1427_v49, %v1386_v38  ;;  %v1317_v38 = vadd.f32 %v1316_v7, %v1275_v54  ;;  %v3038_v7 = vmax.f32 %v2317_v4, %v2640_v57 }
 0x1f7   : > { %v1592_v1 = vadd.f32 %v1561_v63, %v1528_v22  ;;  %v1468_v14 = vpop.f32.mrf.mxu3 }
 0x1f8   : > { %v1354_v17 = vpop.f32.mrf.mxu2  ;;  %v1469_v59 = vadd.f32 %v1468_v14, %v1428_v33  ;;  %v1389_v51 = vpop.f32.mrf.mxu0 }
 0x1f9   : > { %v1608_v23 = vmax.f32 %v1592_v1, 0.0  ;;  %v1355_v35 = vadd.f32 %v1354_v17, %v1314_v45 }
 0x1fa   : > { %v1509_v13 = vmax.f32 %v2885_v46, %v1469_v59 }
 0x1fb   : > { %1624 = vst [vmem:[%s2913_s9 + $0x20] sm:$0xff] %v1608_v23  ;;  %v1514_v61 = vmax.f32 %v2853_v48, %v1355_v35  ;;  %v1320_v23 = vadd.f32 %v2899_v44, %v2897_v42  ;;  %v3039_v42 = vmax.f32 %v2665_v28, %v2670_v26 }
 0x1fc   : > { %v1525_v5 = vmax.f32 %v3035_v36, %v1509_v13 }
 0x1fd   : > { %v1530_v47 = vmax.f32 %v3036_v34, %v1514_v61  ;;  %v1430_v16 = vpop.f32.mrf.mxu1 }
 0x1fe   : > { %v1589_v32 = vadd.f32 %v1551_v20, %v1525_v5  ;;  %v1431_v22 = vadd.f32 %v1430_v16, %v1389_v51  ;;  %v1576_v5 = vpop.permute.xlu2 %1575  ;;  %v1323_v16 = vadd.f32 %v2915_v19, %v2908_v40  ;;  %v3041_v40 = vmax.f32 %v2697_v18, %v2702_v27 }
 0x1ff   : > { %v1594_v15 = vadd.f32 %v1566_v21, %v1530_v47  ;;  %v1471_v48 = vpop.f32.mrf.mxu3 }
 0x200   : > { %v1357_v49 = vpop.f32.mrf.mxu2  ;;  %v1605_v45 = vmax.f32 %v1589_v32, 0.0  ;;  %v1472_v33 = vadd.f32 %v1471_v48, %v1431_v22  ;;  %v1392_v17 = vpop.f32.mrf.mxu0 }
 0x201   : > { %v1610_v46 = vmax.f32 %v1594_v15, 0.0  ;;  %v1358_v1 = vadd.f32 %v1357_v49, %v1317_v38 }
 0x202   : > { %1621 = vst [vmem:[%s2913_s9 + $0x8] sm:$0xff] %v1605_v45  ;;  %v1511_v50 = vmax.f32 %v2887_v30, %v1472_v33 }
 0x203   : > { %v1516_v62 = vmax.f32 %v2864_v24, %v1358_v1  ;;  %1626 = vst [vmem:[%s2913_s9 + $0x30] sm:$0xff] %v1610_v46 }
 0x204   : > { %v1527_v54 = vmax.f32 %v3037_v58, %v1511_v50 }
 0x205   : > { %v1532_v20 = vmax.f32 %v3038_v7, %v1516_v62  ;;  %v1433_v14 = vpop.f32.mrf.mxu1 }
 0x206   : > { %v1591_v35 = vadd.f32 %v1556_v12, %v1527_v54  ;;  %v1434_v59 = vadd.f32 %v1433_v14, %v1392_v17  ;;  %v3040_v12 = vmax.f32 %v2334_v25, %v2668_v39  ;;  %v1581_v39 = vpop.permute.xlu0 %1580  ;;  %v1326_v17 = vadd.f32 %v2926_v0, %v2924_v37 }
 0x207   : > { %v1596_v24 = vadd.f32 %v2942_v2, %v1532_v20  ;;  %v1474_v51 = vpop.f32.mrf.mxu3  ;;  %v3044_v37 = vmax.f32 %v2732_v43, %v2737_v6  ;;  %v3047_v6 = vld [vmem:[#allocation4_spill] sm:$0xff]  ;;  %v3048_v43 = vld [vmem:[#allocation5_spill] sm:$0xff] }
 0x208   : > { %v1360_v30 = vpop.f32.mrf.mxu2  ;;  %v1607_v61 = vmax.f32 %v1591_v35, 0.0  ;;  %v1475_v56 = vadd.f32 %v1474_v51, %v1434_v59  ;;  %v1395_v29 = vpop.f32.mrf.mxu0 }
 0x209   : > { %v1612_v13 = vmax.f32 %v1596_v24, 0.0  ;;  %v1361_v36 = vadd.f32 %v1360_v30, %v1320_v23  ;;  %v1586_v23 = vpop.permute.xlu1 %1585 }
 0x20a   : > { %1623 = vst [vmem:[%s2913_s9 + $0x18] sm:$0xff] %v1607_v61  ;;  %v1513_v57 = vmax.f32 %v2889_v11, %v1475_v56 }
 0x20b   : > { %v1518_v4 = vmax.f32 %v2870_v60, %v1361_v36  ;;  %1628 = vst [vmem:[%s2913_s9 + $0x40] sm:$0xff] %v1612_v13 }
 0x20c   : > { %v1529_v44 = vmax.f32 %v3039_v42, %v1513_v57 }
 0x20d   : > { %v1534_v34 = vmax.f32 %v3040_v12, %v1518_v4  ;;  %v1436_v47 = vpop.f32.mrf.mxu1  ;;  %v3049_v4 = vmax.f32 %v3047_v6, %v3048_v43 }
 0x20e   : > { %v1593_v38 = vadd.f32 %v1561_v63, %v1529_v44  ;;  %v1437_v32 = vadd.f32 %v1436_v47, %v1395_v29  ;;  %v3042_v63 = vld [vmem:[#allocation2_spill] sm:$0xff] }
 0x20f   : > { %v1598_v60 = vadd.f32 %v1576_v5, %v1534_v34  ;;  %v1477_v15 = vpop.f32.mrf.mxu3  ;;  %v3043_v46 = vmax.f32 %v2354_v8, %v3042_v63 }
 0x210   : > { %v1363_v11 = vpop.f32.mrf.mxu2  ;;  %v1609_v22 = vmax.f32 %v1593_v38, 0.0  ;;  %v1478_v45 = vadd.f32 %v1477_v15, %v1437_v32  ;;  %v1398_v26 = vpop.f32.mrf.mxu0  ;;  %v3050_v38 = vld [vmem:[#allocation6_spill] sm:$0xff] }
 0x211   : > { %v1614_v49 = vmax.f32 %v1598_v60, 0.0  ;;  %v1364_v48 = vadd.f32 %v1363_v11, %v1323_v16  ;;  %v3051_v60 = vld [vmem:[#allocation7_spill] sm:$0xff] }
 0x212   : > { %1625 = vst [vmem:[%s2913_s9 + $0x28] sm:$0xff] %v1609_v22  ;;  %v1515_v25 = vmax.f32 %v2891_v41, %v1478_v45 }
 0x213   : > { %v1520_v28 = vmax.f32 %v2876_v52, %v1364_v48  ;;  %1630 = vst [vmem:[%s2913_s9 + $0x50] sm:$0xff] %v1614_v49 }
 0x214   : > { %v1531_v19 = vmax.f32 %v3041_v40, %v1515_v25 }
 0x215   : > { %v1536_v1 = vmax.f32 %v3043_v46, %v1520_v28  ;;  %v1439_v33 = vpop.f32.mrf.mxu1  ;;  %v3054_v28 = vld [vmem:[#allocation9_spill] sm:$0xff] }
 0x216   : > { %v1595_v62 = vadd.f32 %v1566_v21, %v1531_v19  ;;  %v1440_v50 = vadd.f32 %v1439_v33, %v1398_v26  ;;  %v3045_v21 = vld [vmem:[#allocation3_spill] sm:$0xff]  ;;  %v3053_v26 = vld [vmem:[#allocation8_spill] sm:$0xff] }
 0x217   : > { %v1600_v52 = vadd.f32 %v1581_v39, %v1536_v1  ;;  %v1480_v58 = vpop.f32.mrf.mxu3  ;;  %v3046_v35 = vmax.f32 %v2376_v53, %v3045_v21  ;;  %v3055_v25 = vmax.f32 %v3053_v26, %v3054_v28 }
 0x218   : > { %v1366_v41 = vpop.f32.mrf.mxu2  ;;  %v1611_v54 = vmax.f32 %v1595_v62, 0.0  ;;  %v1481_v14 = vadd.f32 %v1480_v58, %v1440_v50  ;;  %v1401_v27 = vpop.f32.mrf.mxu0 }
 0x219   : > { %v1616_v7 = vmax.f32 %v1600_v52, 0.0  ;;  %v1367_v20 = vadd.f32 %v1366_v41, %v1326_v17 }
 0x21a   : > { %1627 = vst [vmem:[%s2913_s9 + $0x38] sm:$0xff] %v1611_v54  ;;  %v1517_v18 = vmax.f32 %v2893_v10, %v1481_v14 }
 0x21b   : > { %v1522_v8 = vmax.f32 %v2882_v3, %v1367_v20  ;;  %1632 = vst [vmem:[%s2913_s9 + $0x60] sm:$0xff] %v1616_v7 }
 0x21c   : > { %v1533_v0 = vmax.f32 %v3044_v37, %v1517_v18 }
 0x21d   : > { %v1538_v24 = vmax.f32 %v3046_v35, %v1522_v8  ;;  %v1442_v59 = vpop.f32.mrf.mxu1 }
 0x21e   : > { %v1597_v30 = vadd.f32 %v2942_v2, %v1533_v0  ;;  %v1443_v61 = vadd.f32 %v1442_v59, %v1401_v27 }
 0x21f   : > { %v1602_v51 = vadd.f32 %v1586_v23, %v1538_v24  ;;  %v1483_v3 = vpop.f32.mrf.mxu3 }
 0x220   : > { %v1613_v13 = vmax.f32 %v1597_v30, 0.0  ;;  %v1484_v36 = vadd.f32 %v1483_v3, %v1443_v61  ;;  %v1404_v56 = vpop.f32.mrf.mxu0 }
 0x221   : > { %v1618_v10 = vmax.f32 %v1602_v51, 0.0 }
 0x222   : > { %1629 = vst [vmem:[%s2913_s9 + $0x48] sm:$0xff] %v1613_v13  ;;  %v1519_v29 = vmax.f32 %v2895_v55, %v1484_v36  ;;  %v3052_v55 = vmax.f32 %v3050_v38, %v3051_v60 }
 0x223   : > { %1634 = vst [vmem:[%s2913_s9 + $0x70] sm:$0xff] %v1618_v10 }
 0x224   : > { %v1535_v53 = vmax.f32 %v3049_v4, %v1519_v29 }
 0x225   : > { %v1445_v57 = vpop.f32.mrf.mxu1 }
 0x226   : > { %v1599_v42 = vadd.f32 %v1576_v5, %v1535_v53  ;;  %v1446_v2 = vadd.f32 %v1445_v57, %v1404_v56 }
 0x227   : > { %v1486_v44 = vpop.f32.mrf.mxu3 }
 0x228   : > { %v1615_v12 = vmax.f32 %v1599_v42, 0.0  ;;  %v1487_v34 = vadd.f32 %v1486_v44, %v1446_v2  ;;  %v1407_v16 = vpop.f32.mrf.mxu0 }
 0x22a   : > { %1631 = vst [vmem:[%s2913_s9 + $0x58] sm:$0xff] %v1615_v12  ;;  %v1521_v47 = vmax.f32 %v2901_v9, %v1487_v34 }
 0x22c   : > { %v1537_v32 = vmax.f32 %v3052_v55, %v1521_v47 }
 0x22d   : > { %v1448_v11 = vpop.f32.mrf.mxu1 }
 0x22e   : > { %v1601_v15 = vadd.f32 %v1581_v39, %v1537_v32  ;;  %v1449_v22 = vadd.f32 %v1448_v11, %v1407_v16 }
 0x22f   : > { %v1489_v49 = vpop.f32.mrf.mxu3 }
 0x230   : > { %v1617_v48 = vmax.f32 %v1601_v15, 0.0  ;;  %v1490_v45 = vadd.f32 %v1489_v49, %v1449_v22 }
 0x232   : > { %1633 = vst [vmem:[%s2913_s9 + $0x68] sm:$0xff] %v1617_v48  ;;  %v1523_v5 = vmax.f32 %v2917_v31, %v1490_v45 }
 0x234   : > { %v1539_v40 = vmax.f32 %v3055_v25, %v1523_v5 }
 0x236   : > { %v1603_v19 = vadd.f32 %v1586_v23, %v1539_v40 }
 0x238   : > { %v1619_v9 = vmax.f32 %v1603_v19, 0.0 }
 0x23a   : > { %1635 = vst [vmem:[%s2913_s9 + $0x78] sm:$0xff] %v1619_v9 }
 0x23b PF: > { %s13_s12 = sadd.s32 1, %s1809_s12  }
 0x23c   : > { %p10_p4 = scmp.ge.s32.totalorder %s13_s12, 4  }
 0x23e   :  { %12 = sbr.rel (!%p10_p4) target bundleno = 1 (0x1), region = 62 }

// kernel: cnnrnn_forward.6
= control target key start
LH: loop header
LB: loop body
LE: loop exit
PB: predicated region body
PF: predicated region fallthrough
CT: control target
= control target key end

     0   :  { %s1029_s9 = smov 0   ;;  %s1031_s10 = smov 0   ;;  %s1368_s0 = inlined_call_operand.vmem [shape: f32[8,4096], index: 0, kind: input, shape index: {}]   ;;  %s1369_s1 = inlined_call_operand.vmem [shape: f32[4096,512], index: 1, kind: input, shape index: {}]   ;;  %s1370_s2 = inlined_call_operand.vmem [shape: f32[8,512], index: 2, kind: output, shape index: {}]  }
   0x1   :  { %s1033_s11 = smov 0  }
   0x2 LB: > { %s24_s12 = sadd.s32 1, %s1007_s10  ;;  %p951_p0 = scmp.ge.s32.totalorder %s1011_s11, 1  ;;  %s1011_s11 = sphi %s1033_s11, %s12_s11   ;;  %s1007_s10 = sphi %s1031_s10, %s1372_s10   ;;  %s1003_s9 = sphi %s1029_s9, %s1371_s9  }
   0x3   : > { %p25_p1 = scmp.ge.s32.totalorder %s24_s12, 8  ;;  %p159_p2 = scmp.lt.s32.totalorder %s1011_s11, 9 }
   0x5   : > { %s1374_s12 = smov (%p25_p1, %s24_s12), 0  ;;  %p160_p3 = pnand %p951_p0, %p159_p2 }
   0x6   : > { %s952_s13 = sshll.u32 (!%p160_p3), %s1003_s9, 2  ;;  %s954_s14 = sshll.u32 (!%p160_p3), %s1003_s9, 6 }
   0x7   : > { %163 = sbr.rel (%p160_p3) target bundleno = 335 (0x14f), region = 28  ;;  %p202_p4 = scmp.lt.s32.totalorder (!%p160_p3), %s952_s13, 31 }
   0x8   : > { %p211_p5 = scmp.lt.s32.totalorder (!%p160_p3), %s954_s14, 511  ;;  %p957_p6 = scmp.ne.s32.totalorder (!%p160_p3), %s1003_s9, 0 }
   0xc   : > { %s1376_s13 = smov (!%p202_p4, %s952_s13), 31  ;;  %s1378_s14 = smov (!%p211_p5, %s954_s14), 511 }
   0xd   : > { %s953_s15 = sshll.u32 %s1376_s13, 3  ;;  %s963_s19 = sshll.u32 %s1378_s14, 5 }
   0xe   : > { %s1054_s18 = scalar_lea.vmem %s1368_s0, %s953_s15  ;;  %s1059_s22 = scalar_lea.vmem %s1369_s1, %s963_s19 }
   0xf   : > { %234 = sbr.rel (%p957_p6) target bundleno = 25 (0x19), region = 32 }
  0x14   : > { %v1013_v0 = vmov 0.0  }
  0x15   : > { %235 = vst [vmem:[#allocation2 + $0x10] sm:$0xff] %v1013_v0 }
  0x16   : > { %236 = vst [vmem:[#allocation2] sm:$0xff] %v1013_v0 }
  0x17   : > { %237 = vst [vmem:[#allocation2 + $0x18] sm:$0xff] %v1013_v0 }
  0x18   : > { %238 = vst [vmem:[#allocation2 + $0x8] sm:$0xff] %v1013_v0 }
  0x19 PF: > { %v435_v1 = vld [vmem:[%s1059_s22 + $0x5e0] sm:$0xff]  ;;  %v436_v63 = vld [vmem:[%s1059_s22 + $0x5e8] sm:$0xff]  ;;  %p958_p7 = scmp.ne.s32.totalorder %s1003_s9, 7 }
  0x1a   : > { %v431_v2 = vld [vmem:[%s1059_s22 + $0x5c0] sm:$0xff]  ;;  %543 = vmatpush.msra.mxu2 %v435_v1  ;;  %v500_v0 = vld [vmem:[%s1059_s22 + $0x7e8] sm:$0xff] }
  0x1b   : > { %v499_v3 = vld [vmem:[%s1059_s22 + $0x7e0] sm:$0xff] }
  0x1c   : > { %563 = vmatpush.msra.mxu3 %v499_v3  ;;  %v307_v4 = vld [vmem:[%s1059_s22 + $0x1e0] sm:$0xff]  ;;  %544 = vmatpush.msra.mxu2 %v431_v2  ;;  %v432_v3 = vld [vmem:[%s1059_s22 + $0x5c8] sm:$0xff] }
  0x1d   : > { %v371_v5 = vld [vmem:[%s1059_s22 + $0x3e0] sm:$0xff]  ;;  %503 = vmatpush.msra.mxu0 %v307_v4  ;;  %v308_v4 = vld [vmem:[%s1059_s22 + $0x1e8] sm:$0xff] }
  0x1e   : > { %v427_v6 = vld [vmem:[%s1059_s22 + $0x5a0] sm:$0xff]  ;;  %523 = vmatpush.msra.mxu1 %v371_v5  ;;  %v372_v5 = vld [vmem:[%s1059_s22 + $0x3e8] sm:$0xff] }
  0x1f   : > { %v495_v7 = vld [vmem:[%s1059_s22 + $0x7c0] sm:$0xff]  ;;  %545 = vmatpush.msra.mxu2 %v427_v6  ;;  %v496_v6 = vld [vmem:[%s1059_s22 + $0x7c8] sm:$0xff] }
  0x20   : > { %v303_v8 = vld [vmem:[%s1059_s22 + $0x1c0] sm:$0xff]  ;;  %564 = vmatpush.msra.mxu3 %v495_v7  ;;  %v428_v7 = vld [vmem:[%s1059_s22 + $0x5a8] sm:$0xff] }
  0x21   : > { %v367_v9 = vld [vmem:[%s1059_s22 + $0x3c0] sm:$0xff]  ;;  %504 = vmatpush.msra.mxu0 %v303_v8  ;;  %v304_v8 = vld [vmem:[%s1059_s22 + $0x1c8] sm:$0xff] }
  0x22   : > { %v491_v10 = vld [vmem:[%s1059_s22 + $0x7a0] sm:$0xff]  ;;  %524 = vmatpush.msra.mxu1 %v367_v9  ;;  %v368_v9 = vld [vmem:[%s1059_s22 + $0x3c8] sm:$0xff] }
  0x23   : > { %v299_v11 = vld [vmem:[%s1059_s22 + $0x1a0] sm:$0xff]  ;;  %565 = vmatpush.msra.mxu3 %v491_v10  ;;  %v492_v10 = vld [vmem:[%s1059_s22 + $0x7a8] sm:$0xff] }
  0x24   : > { %v423_v12 = vld [vmem:[%s1059_s22 + $0x580] sm:$0xff]  ;;  %505 = vmatpush.msra.mxu0 %v299_v11  ;;  %v424_v11 = vld [vmem:[%s1059_s22 + $0x588] sm:$0xff] }
  0x25   : > { %v363_v13 = vld [vmem:[%s1059_s22 + $0x3a0] sm:$0xff]  ;;  %546 = vmatpush.msra.mxu2 %v423_v12  ;;  %v300_v12 = vld [vmem:[%s1059_s22 + $0x1a8] sm:$0xff] }
  0x26   : > { %v487_v14 = vld [vmem:[%s1059_s22 + $0x780] sm:$0xff]  ;;  %525 = vmatpush.msra.mxu1 %v363_v13  ;;  %v364_v13 = vld [vmem:[%s1059_s22 + $0x3a8] sm:$0xff] }
  0x27   : > { %v295_v15 = vld [vmem:[%s1059_s22 + $0x180] sm:$0xff]  ;;  %566 = vmatpush.msra.mxu3 %v487_v14  ;;  %v488_v14 = vld [vmem:[%s1059_s22 + $0x788] sm:$0xff] }
  0x28   : > { %v359_v16 = vld [vmem:[%s1059_s22 + $0x380] sm:$0xff]  ;;  %506 = vmatpush.msra.mxu0 %v295_v15  ;;  %v420_v15 = vld [vmem:[%s1059_s22 + $0x568] sm:$0xff] }
  0x29   : > { %v419_v17 = vld [vmem:[%s1059_s22 + $0x560] sm:$0xff]  ;;  %526 = vmatpush.msra.mxu1 %v359_v16  ;;  %v296_v16 = vld [vmem:[%s1059_s22 + $0x188] sm:$0xff] }
  0x2a   : > { %v483_v18 = vld [vmem:[%s1059_s22 + $0x760] sm:$0xff]  ;;  %547 = vmatpush.msra.mxu2 %v419_v17  ;;  %v360_v17 = vld [vmem:[%s1059_s22 + $0x388] sm:$0xff] }
  0x2b   : > { %v291_v19 = vld [vmem:[%s1059_s22 + $0x160] sm:$0xff]  ;;  %567 = vmatpush.msra.mxu3 %v483_v18  ;;  %v484_v18 = vld [vmem:[%s1059_s22 + $0x768] sm:$0xff] }
  0x2c   : > { %v355_v20 = vld [vmem:[%s1059_s22 + $0x360] sm:$0xff]  ;;  %507 = vmatpush.msra.mxu0 %v291_v19  ;;  %v416_v19 = vld [vmem:[%s1059_s22 + $0x548] sm:$0xff] }
  0x2d   : > { %v415_v21 = vld [vmem:[%s1059_s22 + $0x540] sm:$0xff]  ;;  %527 = vmatpush.msra.mxu1 %v355_v20  ;;  %v292_v20 = vld [vmem:[%s1059_s22 + $0x168] sm:$0xff] }
  0x2e   : > { %v479_v22 = vld [vmem:[%s1059_s22 + $0x740] sm:$0xff]  ;;  %548 = vmatpush.msra.mxu2 %v415_v21  ;;  %v356_v21 = vld [vmem:[%s1059_s22 + $0x368] sm:$0xff] }
  0x2f   : > { %v287_v23 = vld [vmem:[%s1059_s22 + $0x140] sm:$0xff]  ;;  %568 = vmatpush.msra.mxu3 %v479_v22  ;;  %v480_v22 = vld [vmem:[%s1059_s22 + $0x748] sm:$0xff] }
  0x30   : > { %v351_v24 = vld [vmem:[%s1059_s22 + $0x340] sm:$0xff]  ;;  %508 = vmatpush.msra.mxu0 %v287_v23  ;;  %v412_v23 = vld [vmem:[%s1059_s22 + $0x528] sm:$0xff] }
  0x31   : > { %v411_v25 = vld [vmem:[%s1059_s22 + $0x520] sm:$0xff]  ;;  %528 = vmatpush.msra.mxu1 %v351_v24  ;;  %v288_v24 = vld [vmem:[%s1059_s22 + $0x148] sm:$0xff] }
  0x32   : > { %v475_v26 = vld [vmem:[%s1059_s22 + $0x720] sm:$0xff]  ;;  %549 = vmatpush.msra.mxu2 %v411_v25  ;;  %v352_v25 = vld [vmem:[%s1059_s22 + $0x348] sm:$0xff] }
  0x33   : > { %v283_v27 = vld [vmem:[%s1059_s22 + $0x120] sm:$0xff]  ;;  %569 = vmatpush.msra.mxu3 %v475_v26  ;;  %v476_v26 = vld [vmem:[%s1059_s22 + $0x728] sm:$0xff] }
  0x34   : > { %v347_v28 = vld [vmem:[%s1059_s22 + $0x320] sm:$0xff]  ;;  %509 = vmatpush.msra.mxu0 %v283_v27  ;;  %v408_v27 = vld [vmem:[%s1059_s22 + $0x508] sm:$0xff] }
  0x35   : > { %v407_v29 = vld [vmem:[%s1059_s22 + $0x500] sm:$0xff]  ;;  %529 = vmatpush.msra.mxu1 %v347_v28  ;;  %v284_v28 = vld [vmem:[%s1059_s22 + $0x128] sm:$0xff] }
  0x36   : > { %v471_v30 = vld [vmem:[%s1059_s22 + $0x700] sm:$0xff]  ;;  %550 = vmatpush.msra.mxu2 %v407_v29  ;;  %v348_v29 = vld [vmem:[%s1059_s22 + $0x328] sm:$0xff] }
  0x37   : > { %v279_v31 = vld [vmem:[%s1059_s22 + $0x100] sm:$0xff]  ;;  %570 = vmatpush.msra.mxu3 %v471_v30  ;;  %v472_v30 = vld [vmem:[%s1059_s22 + $0x708] sm:$0xff] }
  0x38   : > { %v343_v32 = vld [vmem:[%s1059_s22 + $0x300] sm:$0xff]  ;;  %510 = vmatpush.msra.mxu0 %v279_v31  ;;  %v404_v31 = vld [vmem:[%s1059_s22 + $0x4e8] sm:$0xff] }
  0x39   : > { %v403_v33 = vld [vmem:[%s1059_s22 + $0x4e0] sm:$0xff]  ;;  %530 = vmatpush.msra.mxu1 %v343_v32  ;;  %v280_v32 = vld [vmem:[%s1059_s22 + $0x108] sm:$0xff] }
  0x3a   : > { %v467_v34 = vld [vmem:[%s1059_s22 + $0x6e0] sm:$0xff]  ;;  %551 = vmatpush.msra.mxu2 %v403_v33  ;;  %v344_v33 = vld [vmem:[%s1059_s22 + $0x308] sm:$0xff] }
  0x3b   : > { %v275_v35 = vld [vmem:[%s1059_s22 + $0xe0] sm:$0xff]  ;;  %571 = vmatpush.msra.mxu3 %v467_v34  ;;  %v468_v34 = vld [vmem:[%s1059_s22 + $0x6e8] sm:$0xff] }
  0x3c   : > { %v339_v36 = vld [vmem:[%s1059_s22 + $0x2e0] sm:$0xff]  ;;  %511 = vmatpush.msra.mxu0 %v275_v35  ;;  %v400_v35 = vld [vmem:[%s1059_s22 + $0x4c8] sm:$0xff] }
  0x3d   : > { %v399_v37 = vld [vmem:[%s1059_s22 + $0x4c0] sm:$0xff]  ;;  %531 = vmatpush.msra.mxu1 %v339_v36  ;;  %v276_v36 = vld [vmem:[%s1059_s22 + $0xe8] sm:$0xff] }
  0x3e   : > { %v463_v38 = vld [vmem:[%s1059_s22 + $0x6c0] sm:$0xff]  ;;  %552 = vmatpush.msra.mxu2 %v399_v37  ;;  %v340_v37 = vld [vmem:[%s1059_s22 + $0x2e8] sm:$0xff] }
  0x3f   : > { %v271_v39 = vld [vmem:[%s1059_s22 + $0xc0] sm:$0xff]  ;;  %572 = vmatpush.msra.mxu3 %v463_v38  ;;  %v464_v38 = vld [vmem:[%s1059_s22 + $0x6c8] sm:$0xff] }
  0x40   : > { %v335_v40 = vld [vmem:[%s1059_s22 + $0x2c0] sm:$0xff]  ;;  %512 = vmatpush.msra.mxu0 %v271_v39  ;;  %v396_v39 = vld [vmem:[%s1059_s22 + $0x4a8] sm:$0xff] }
  0x41   : > { %v395_v41 = vld [vmem:[%s1059_s22 + $0x4a0] sm:$0xff]  ;;  %532 = vmatpush.msra.mxu1 %v335_v40  ;;  %v272_v40 = vld [vmem:[%s1059_s22 + $0xc8] sm:$0xff] }
  0x42   : > { %v459_v42 = vld [vmem:[%s1059_s22 + $0x6a0] sm:$0xff]  ;;  %553 = vmatpush.msra.mxu2 %v395_v41  ;;  %v336_v41 = vld [vmem:[%s1059_s22 + $0x2c8] sm:$0xff] }
  0x43   : > { %v267_v43 = vld [vmem:[%s1059_s22 + $0xa0] sm:$0xff]  ;;  %573 = vmatpush.msra.mxu3 %v459_v42  ;;  %v460_v42 = vld [vmem:[%s1059_s22 + $0x6a8] sm:$0xff] }
  0x44   : > { %v331_v44 = vld [vmem:[%s1059_s22 + $0x2a0] sm:$0xff]  ;;  %513 = vmatpush.msra.mxu0 %v267_v43  ;;  %v392_v43 = vld [vmem:[%s1059_s22 + $0x488] sm:$0xff] }
  0x45   : > { %v391_v45 = vld [vmem:[%s1059_s22 + $0x480] sm:$0xff]  ;;  %533 = vmatpush.msra.mxu1 %v331_v44  ;;  %v268_v44 = vld [vmem:[%s1059_s22 + $0xa8] sm:$0xff] }
  0x46   : > { %v455_v46 = vld [vmem:[%s1059_s22 + $0x680] sm:$0xff]  ;;  %554 = vmatpush.msra.mxu2 %v391_v45  ;;  %v332_v45 = vld [vmem:[%s1059_s22 + $0x2a8] sm:$0xff] }
  0x47   : > { %v263_v47 = vld [vmem:[%s1059_s22 + $0x80] sm:$0xff]  ;;  %574 = vmatpush.msra.mxu3 %v455_v46  ;;  %v456_v46 = vld [vmem:[%s1059_s22 + $0x688] sm:$0xff] }
  0x48   : > { %v327_v48 = vld [vmem:[%s1059_s22 + $0x280] sm:$0xff]  ;;  %514 = vmatpush.msra.mxu0 %v263_v47  ;;  %v388_v47 = vld [vmem:[%s1059_s22 + $0x468] sm:$0xff] }
  0x49   : > { %v387_v49 = vld [vmem:[%s1059_s22 + $0x460] sm:$0xff]  ;;  %534 = vmatpush.msra.mxu1 %v327_v48  ;;  %v264_v48 = vld [vmem:[%s1059_s22 + $0x88] sm:$0xff] }
  0x4a   : > { %v451_v50 = vld [vmem:[%s1059_s22 + $0x660] sm:$0xff]  ;;  %555 = vmatpush.msra.mxu2 %v387_v49  ;;  %v328_v49 = vld [vmem:[%s1059_s22 + $0x288] sm:$0xff] }
  0x4b   : > { %v259_v51 = vld [vmem:[%s1059_s22 + $0x60] sm:$0xff]  ;;  %575 = vmatpush.msra.mxu3 %v451_v50  ;;  %v452_v50 = vld [vmem:[%s1059_s22 + $0x668] sm:$0xff] }
  0x4c   : > { %v323_v52 = vld [vmem:[%s1059_s22 + $0x260] sm:$0xff]  ;;  %515 = vmatpush.msra.mxu0 %v259_v51  ;;  %v384_v51 = vld [vmem:[%s1059_s22 + $0x448] sm:$0xff] }
  0x4d   : > { %v383_v53 = vld [vmem:[%s1059_s22 + $0x440] sm:$0xff]  ;;  %535 = vmatpush.msra.mxu1 %v323_v52  ;;  %v260_v52 = vld [vmem:[%s1059_s22 + $0x68] sm:$0xff] }
  0x4e   : > { %v447_v54 = vld [vmem:[%s1059_s22 + $0x640] sm:$0xff]  ;;  %556 = vmatpush.msra.mxu2 %v383_v53  ;;  %v324_v53 = vld [vmem:[%s1059_s22 + $0x268] sm:$0xff] }
  0x4f   : > { %v255_v55 = vld [vmem:[%s1059_s22 + $0x40] sm:$0xff]  ;;  %576 = vmatpush.msra.mxu3 %v447_v54  ;;  %v448_v54 = vld [vmem:[%s1059_s22 + $0x648] sm:$0xff] }
  0x50   : > { %v319_v56 = vld [vmem:[%s1059_s22 + $0x240] sm:$0xff]  ;;  %516 = vmatpush.msra.mxu0 %v255_v55  ;;  %v380_v55 = vld [vmem:[%s1059_s22 + $0x428] sm:$0xff] }
  0x51   : > { %v379_v57 = vld [vmem:[%s1059_s22 + $0x420] sm:$0xff]  ;;  %536 = vmatpush.msra.mxu1 %v319_v56  ;;  %v256_v56 = vld [vmem:[%s1059_s22 + $0x48] sm:$0xff] }
  0x52   : > { %v443_v58 = vld [vmem:[%s1059_s22 + $0x620] sm:$0xff]  ;;  %557 = vmatpush.msra.mxu2 %v379_v57  ;;  %v320_v57 = vld [vmem:[%s1059_s22 + $0x248] sm:$0xff] }
  0x53   : > { %v251_v59 = vld [vmem:[%s1059_s22 + $0x20] sm:$0xff]  ;;  %577 = vmatpush.msra.mxu3 %v443_v58  ;;  %v444_v58 = vld [vmem:[%s1059_s22 + $0x628] sm:$0xff] }
  0x54   : > { %v315_v60 = vld [vmem:[%s1059_s22 + $0x220] sm:$0xff]  ;;  %517 = vmatpush.msra.mxu0 %v251_v59  ;;  %v376_v59 = vld [vmem:[%s1059_s22 + $0x408] sm:$0xff] }
  0x55   : > { %v375_v61 = vld [vmem:[%s1059_s22 + $0x400] sm:$0xff]  ;;  %537 = vmatpush.msra.mxu1 %v315_v60  ;;  %v252_v60 = vld [vmem:[%s1059_s22 + $0x28] sm:$0xff] }
  0x56   : > { %v439_v62 = vld [vmem:[%s1059_s22 + $0x600] sm:$0xff]  ;;  %558 = vmatpush.msra.mxu2 %v375_v61  ;;  %v1187_v61 = vld [vmem:[%s1054_s18 + $0x10] sm:$0xff] }
  0x57   : > { %v247_v1 = vld [vmem:[%s1059_s22] sm:$0xff]  ;;  %578 = vmatpush.msra.mxu3 %v439_v62  ;;  %v316_v62 = vld [vmem:[%s1059_s22 + $0x228] sm:$0xff]  ;;  %559 = vmatmul.f32.vlgmr.msra.gmra.mxu2 %v1187_v61 }
  0x58   : > { %v311_v2 = vld [vmem:[%s1059_s22 + $0x200] sm:$0xff]  ;;  %623 = vmatpush.msrb.mxu2 %v436_v63  ;;  %518 = vmatpush.msra.mxu0 %v247_v1  ;;  %v437_v63 = vld [vmem:[%s1059_s22 + $0x5f0] sm:$0xff]  ;;  %v1193_v1 = vld [vmem:[%s1054_s18 + $0x18] sm:$0xff] }
  0x59   : > { %643 = vmatpush.msrb.mxu3 %v500_v0  ;;  %538 = vmatpush.msra.mxu1 %v311_v2  ;;  %v440_v0 = vld [vmem:[%s1059_s22 + $0x608] sm:$0xff] }
  0x5a   : > { %624 = vmatpush.msrb.mxu2 %v432_v3  ;;  %583 = vmatpush.msrb.mxu0 %v308_v4  ;;  %v248_v2 = vld [vmem:[%s1059_s22 + $0x8] sm:$0xff]  ;;  %v433_v3 = vld [vmem:[%s1059_s22 + $0x5d0] sm:$0xff] }
  0x5b   : > { %603 = vmatpush.msrb.mxu1 %v372_v5  ;;  %644 = vmatpush.msrb.mxu3 %v496_v6  ;;  %v501_v4 = vld [vmem:[%s1059_s22 + $0x7f0] sm:$0xff]  ;;  %v312_v5 = vld [vmem:[%s1059_s22 + $0x208] sm:$0xff]  ;;  %v1201_v6 = vld [vmem:[%s1054_s18] sm:$0xff] }
  0x5c   : > { %625 = vmatpush.msrb.mxu2 %v428_v7  ;;  %584 = vmatpush.msrb.mxu0 %v304_v8  ;;  %v1205_v7 = vld [vmem:[%s1054_s18 + $0x8] sm:$0xff]  ;;  %v309_v8 = vld [vmem:[%s1059_s22 + $0x1f0] sm:$0xff] }
  0x5d   : > { %604 = vmatpush.msrb.mxu1 %v368_v9  ;;  %645 = vmatpush.msrb.mxu3 %v492_v10  ;;  %v373_v9 = vld [vmem:[%s1059_s22 + $0x3f0] sm:$0xff] }
  0x5e   : > { %626 = vmatpush.msrb.mxu2 %v424_v11  ;;  %585 = vmatpush.msrb.mxu0 %v300_v12  ;;  %v429_v10 = vld [vmem:[%s1059_s22 + $0x5b0] sm:$0xff] }
  0x5f   : > { %605 = vmatpush.msrb.mxu1 %v364_v13  ;;  %646 = vmatpush.msrb.mxu3 %v488_v14  ;;  %v497_v11 = vld [vmem:[%s1059_s22 + $0x7d0] sm:$0xff] }
  0x60   : > { %627 = vmatpush.msrb.mxu2 %v420_v15  ;;  %586 = vmatpush.msrb.mxu0 %v296_v16  ;;  %v305_v12 = vld [vmem:[%s1059_s22 + $0x1d0] sm:$0xff] }
  0x61   : > { %606 = vmatpush.msrb.mxu1 %v360_v17  ;;  %647 = vmatpush.msrb.mxu3 %v484_v18  ;;  %v369_v13 = vld [vmem:[%s1059_s22 + $0x3d0] sm:$0xff] }
  0x62   : > { %628 = vmatpush.msrb.mxu2 %v416_v19  ;;  %587 = vmatpush.msrb.mxu0 %v292_v20  ;;  %v425_v14 = vld [vmem:[%s1059_s22 + $0x590] sm:$0xff] }
  0x63   : > { %607 = vmatpush.msrb.mxu1 %v356_v21  ;;  %648 = vmatpush.msrb.mxu3 %v480_v22  ;;  %v493_v15 = vld [vmem:[%s1059_s22 + $0x7b0] sm:$0xff] }
  0x64   : > { %629 = vmatpush.msrb.mxu2 %v412_v23  ;;  %588 = vmatpush.msrb.mxu0 %v288_v24  ;;  %v301_v16 = vld [vmem:[%s1059_s22 + $0x1b0] sm:$0xff] }
  0x65   : > { %608 = vmatpush.msrb.mxu1 %v352_v25  ;;  %649 = vmatpush.msrb.mxu3 %v476_v26  ;;  %v365_v17 = vld [vmem:[%s1059_s22 + $0x3b0] sm:$0xff] }
  0x66   : > { %630 = vmatpush.msrb.mxu2 %v408_v27  ;;  %589 = vmatpush.msrb.mxu0 %v284_v28  ;;  %v421_v18 = vld [vmem:[%s1059_s22 + $0x570] sm:$0xff] }
  0x67   : > { %609 = vmatpush.msrb.mxu1 %v348_v29  ;;  %650 = vmatpush.msrb.mxu3 %v472_v30  ;;  %v489_v19 = vld [vmem:[%s1059_s22 + $0x790] sm:$0xff] }
  0x68   : > { %631 = vmatpush.msrb.mxu2 %v404_v31  ;;  %590 = vmatpush.msrb.mxu0 %v280_v32  ;;  %v297_v20 = vld [vmem:[%s1059_s22 + $0x190] sm:$0xff] }
  0x69   : > { %610 = vmatpush.msrb.mxu1 %v344_v33  ;;  %651 = vmatpush.msrb.mxu3 %v468_v34  ;;  %v361_v21 = vld [vmem:[%s1059_s22 + $0x390] sm:$0xff] }
  0x6a   : > { %632 = vmatpush.msrb.mxu2 %v400_v35  ;;  %591 = vmatpush.msrb.mxu0 %v276_v36  ;;  %v417_v22 = vld [vmem:[%s1059_s22 + $0x550] sm:$0xff] }
  0x6b   : > { %611 = vmatpush.msrb.mxu1 %v340_v37  ;;  %652 = vmatpush.msrb.mxu3 %v464_v38  ;;  %v485_v23 = vld [vmem:[%s1059_s22 + $0x770] sm:$0xff] }
  0x6c   : > { %633 = vmatpush.msrb.mxu2 %v396_v39  ;;  %592 = vmatpush.msrb.mxu0 %v272_v40  ;;  %v293_v24 = vld [vmem:[%s1059_s22 + $0x170] sm:$0xff] }
  0x6d   : > { %612 = vmatpush.msrb.mxu1 %v336_v41  ;;  %653 = vmatpush.msrb.mxu3 %v460_v42  ;;  %v357_v25 = vld [vmem:[%s1059_s22 + $0x370] sm:$0xff] }
  0x6e   : > { %634 = vmatpush.msrb.mxu2 %v392_v43  ;;  %593 = vmatpush.msrb.mxu0 %v268_v44  ;;  %v413_v26 = vld [vmem:[%s1059_s22 + $0x530] sm:$0xff] }
  0x6f   : > { %613 = vmatpush.msrb.mxu1 %v332_v45  ;;  %654 = vmatpush.msrb.mxu3 %v456_v46  ;;  %v481_v27 = vld [vmem:[%s1059_s22 + $0x750] sm:$0xff] }
  0x70   : > { %635 = vmatpush.msrb.mxu2 %v388_v47  ;;  %594 = vmatpush.msrb.mxu0 %v264_v48  ;;  %v289_v28 = vld [vmem:[%s1059_s22 + $0x150] sm:$0xff] }
  0x71   : > { %614 = vmatpush.msrb.mxu1 %v328_v49  ;;  %655 = vmatpush.msrb.mxu3 %v452_v50  ;;  %v353_v29 = vld [vmem:[%s1059_s22 + $0x350] sm:$0xff] }
  0x72   : > { %636 = vmatpush.msrb.mxu2 %v384_v51  ;;  %595 = vmatpush.msrb.mxu0 %v260_v52  ;;  %v409_v30 = vld [vmem:[%s1059_s22 + $0x510] sm:$0xff] }
  0x73   : > { %615 = vmatpush.msrb.mxu1 %v324_v53  ;;  %656 = vmatpush.msrb.mxu3 %v448_v54  ;;  %v477_v31 = vld [vmem:[%s1059_s22 + $0x730] sm:$0xff] }
  0x74   : > { %637 = vmatpush.msrb.mxu2 %v380_v55  ;;  %596 = vmatpush.msrb.mxu0 %v256_v56  ;;  %v285_v32 = vld [vmem:[%s1059_s22 + $0x130] sm:$0xff] }
  0x75   : > { %616 = vmatpush.msrb.mxu1 %v320_v57  ;;  %657 = vmatpush.msrb.mxu3 %v444_v58  ;;  %v349_v33 = vld [vmem:[%s1059_s22 + $0x330] sm:$0xff] }
  0x76   : > { %638 = vmatpush.msrb.mxu2 %v376_v59  ;;  %597 = vmatpush.msrb.mxu0 %v252_v60  ;;  %v405_v34 = vld [vmem:[%s1059_s22 + $0x4f0] sm:$0xff] }
  0x77   : > { %617 = vmatpush.msrb.mxu1 %v316_v62  ;;  %658 = vmatpush.msrb.mxu3 %v440_v0  ;;  %v473_v35 = vld [vmem:[%s1059_s22 + $0x710] sm:$0xff] }
  0x78   : > { %703 = vmatpush.msra.mxu2 %v437_v63  ;;  %579 = vmatmul.f32.vlgmr.msra.gmra.mxu3 %v1193_v1  ;;  %v281_v36 = vld [vmem:[%s1059_s22 + $0x110] sm:$0xff] }
  0x79   : > { %598 = vmatpush.msrb.mxu0 %v248_v2  ;;  %723 = vmatpush.msra.mxu3 %v501_v4  ;;  %v345_v37 = vld [vmem:[%s1059_s22 + $0x310] sm:$0xff]  ;;  %v438_v2 = vld [vmem:[%s1059_s22 + $0x5f8] sm:$0xff] }
  0x7a   : > { %704 = vmatpush.msra.mxu2 %v433_v3  ;;  %618 = vmatpush.msrb.mxu1 %v312_v5  ;;  %v401_v38 = vld [vmem:[%s1059_s22 + $0x4d0] sm:$0xff] }
  0x7b   : > { %519 = vmatmul.f32.vlgmr.msra.gmra.mxu0 %v1201_v6  ;;  %539 = vmatmul.f32.vlgmr.msra.gmra.mxu1 %v1205_v7  ;;  %v469_v39 = vld [vmem:[%s1059_s22 + $0x6f0] sm:$0xff] }
  0x7c   : > { %663 = vmatpush.msra.mxu0 %v309_v8  ;;  %683 = vmatpush.msra.mxu1 %v373_v9  ;;  %v277_v40 = vld [vmem:[%s1059_s22 + $0xf0] sm:$0xff]  ;;  %v434_v8 = vld [vmem:[%s1059_s22 + $0x5d8] sm:$0xff] }
  0x7d   : > { %705 = vmatpush.msra.mxu2 %v429_v10  ;;  %724 = vmatpush.msra.mxu3 %v497_v11  ;;  %v341_v41 = vld [vmem:[%s1059_s22 + $0x2f0] sm:$0xff]  ;;  %v502_v9 = vld [vmem:[%s1059_s22 + $0x7f8] sm:$0xff] }
  0x7e   : > { %664 = vmatpush.msra.mxu0 %v305_v12  ;;  %684 = vmatpush.msra.mxu1 %v369_v13  ;;  %v397_v42 = vld [vmem:[%s1059_s22 + $0x4b0] sm:$0xff]  ;;  %v310_v12 = vld [vmem:[%s1059_s22 + $0x1f8] sm:$0xff] }
  0x7f   : > { %706 = vmatpush.msra.mxu2 %v425_v14  ;;  %725 = vmatpush.msra.mxu3 %v493_v15  ;;  %v465_v43 = vld [vmem:[%s1059_s22 + $0x6d0] sm:$0xff]  ;;  %v374_v13 = vld [vmem:[%s1059_s22 + $0x3f8] sm:$0xff] }
  0x80   : > { %665 = vmatpush.msra.mxu0 %v301_v16  ;;  %685 = vmatpush.msra.mxu1 %v365_v17  ;;  %v273_v44 = vld [vmem:[%s1059_s22 + $0xd0] sm:$0xff]  ;;  %v430_v14 = vld [vmem:[%s1059_s22 + $0x5b8] sm:$0xff] }
  0x81   : > { %707 = vmatpush.msra.mxu2 %v421_v18  ;;  %726 = vmatpush.msra.mxu3 %v489_v19  ;;  %v337_v45 = vld [vmem:[%s1059_s22 + $0x2d0] sm:$0xff]  ;;  %v498_v15 = vld [vmem:[%s1059_s22 + $0x7d8] sm:$0xff] }
  0x82   : > { %666 = vmatpush.msra.mxu0 %v297_v20  ;;  %686 = vmatpush.msra.mxu1 %v361_v21  ;;  %v393_v46 = vld [vmem:[%s1059_s22 + $0x490] sm:$0xff]  ;;  %v306_v16 = vld [vmem:[%s1059_s22 + $0x1d8] sm:$0xff] }
  0x83   : > { %708 = vmatpush.msra.mxu2 %v417_v22  ;;  %727 = vmatpush.msra.mxu3 %v485_v23  ;;  %v461_v47 = vld [vmem:[%s1059_s22 + $0x6b0] sm:$0xff]  ;;  %v370_v17 = vld [vmem:[%s1059_s22 + $0x3d8] sm:$0xff] }
  0x84   : > { %667 = vmatpush.msra.mxu0 %v293_v24  ;;  %687 = vmatpush.msra.mxu1 %v357_v25  ;;  %v269_v48 = vld [vmem:[%s1059_s22 + $0xb0] sm:$0xff]  ;;  %v426_v18 = vld [vmem:[%s1059_s22 + $0x598] sm:$0xff] }
  0x85   : > { %709 = vmatpush.msra.mxu2 %v413_v26  ;;  %728 = vmatpush.msra.mxu3 %v481_v27  ;;  %v333_v49 = vld [vmem:[%s1059_s22 + $0x2b0] sm:$0xff]  ;;  %v494_v19 = vld [vmem:[%s1059_s22 + $0x7b8] sm:$0xff] }
  0x86   : > { %668 = vmatpush.msra.mxu0 %v289_v28  ;;  %688 = vmatpush.msra.mxu1 %v353_v29  ;;  %v389_v50 = vld [vmem:[%s1059_s22 + $0x470] sm:$0xff]  ;;  %v302_v20 = vld [vmem:[%s1059_s22 + $0x1b8] sm:$0xff] }
  0x87   : > { %710 = vmatpush.msra.mxu2 %v409_v30  ;;  %729 = vmatpush.msra.mxu3 %v477_v31  ;;  %v457_v51 = vld [vmem:[%s1059_s22 + $0x690] sm:$0xff]  ;;  %v366_v21 = vld [vmem:[%s1059_s22 + $0x3b8] sm:$0xff] }
  0x88   : > { %669 = vmatpush.msra.mxu0 %v285_v32  ;;  %689 = vmatpush.msra.mxu1 %v349_v33  ;;  %v265_v52 = vld [vmem:[%s1059_s22 + $0x90] sm:$0xff]  ;;  %v422_v22 = vld [vmem:[%s1059_s22 + $0x578] sm:$0xff] }
  0x89   : > { %711 = vmatpush.msra.mxu2 %v405_v34  ;;  %730 = vmatpush.msra.mxu3 %v473_v35  ;;  %v329_v53 = vld [vmem:[%s1059_s22 + $0x290] sm:$0xff]  ;;  %v490_v23 = vld [vmem:[%s1059_s22 + $0x798] sm:$0xff] }
  0x8a   : > { %670 = vmatpush.msra.mxu0 %v281_v36  ;;  %690 = vmatpush.msra.mxu1 %v345_v37  ;;  %v385_v54 = vld [vmem:[%s1059_s22 + $0x450] sm:$0xff]  ;;  %v298_v24 = vld [vmem:[%s1059_s22 + $0x198] sm:$0xff] }
  0x8b   : > { %712 = vmatpush.msra.mxu2 %v401_v38  ;;  %731 = vmatpush.msra.mxu3 %v469_v39  ;;  %v453_v55 = vld [vmem:[%s1059_s22 + $0x670] sm:$0xff]  ;;  %v362_v25 = vld [vmem:[%s1059_s22 + $0x398] sm:$0xff] }
  0x8c   : > { %671 = vmatpush.msra.mxu0 %v277_v40  ;;  %691 = vmatpush.msra.mxu1 %v341_v41  ;;  %v261_v56 = vld [vmem:[%s1059_s22 + $0x70] sm:$0xff]  ;;  %v418_v26 = vld [vmem:[%s1059_s22 + $0x558] sm:$0xff] }
  0x8d   : > { %713 = vmatpush.msra.mxu2 %v397_v42  ;;  %732 = vmatpush.msra.mxu3 %v465_v43  ;;  %v325_v57 = vld [vmem:[%s1059_s22 + $0x270] sm:$0xff]  ;;  %v486_v27 = vld [vmem:[%s1059_s22 + $0x778] sm:$0xff] }
  0x8e   : > { %672 = vmatpush.msra.mxu0 %v273_v44  ;;  %692 = vmatpush.msra.mxu1 %v337_v45  ;;  %v381_v58 = vld [vmem:[%s1059_s22 + $0x430] sm:$0xff]  ;;  %v294_v28 = vld [vmem:[%s1059_s22 + $0x178] sm:$0xff] }
  0x8f   : > { %714 = vmatpush.msra.mxu2 %v393_v46  ;;  %733 = vmatpush.msra.mxu3 %v461_v47  ;;  %v449_v59 = vld [vmem:[%s1059_s22 + $0x650] sm:$0xff]  ;;  %v358_v29 = vld [vmem:[%s1059_s22 + $0x378] sm:$0xff] }
  0x90   : > { %673 = vmatpush.msra.mxu0 %v269_v48  ;;  %693 = vmatpush.msra.mxu1 %v333_v49  ;;  %v257_v60 = vld [vmem:[%s1059_s22 + $0x50] sm:$0xff]  ;;  %v414_v30 = vld [vmem:[%s1059_s22 + $0x538] sm:$0xff] }
  0x91   : > { %715 = vmatpush.msra.mxu2 %v389_v50  ;;  %734 = vmatpush.msra.mxu3 %v457_v51  ;;  %v321_v62 = vld [vmem:[%s1059_s22 + $0x250] sm:$0xff]  ;;  %v482_v31 = vld [vmem:[%s1059_s22 + $0x758] sm:$0xff] }
  0x92   : > { %674 = vmatpush.msra.mxu0 %v265_v52  ;;  %694 = vmatpush.msra.mxu1 %v329_v53  ;;  %v377_v63 = vld [vmem:[%s1059_s22 + $0x410] sm:$0xff]  ;;  %v290_v32 = vld [vmem:[%s1059_s22 + $0x158] sm:$0xff] }
  0x93   : > { %716 = vmatpush.msra.mxu2 %v385_v54  ;;  %735 = vmatpush.msra.mxu3 %v453_v55  ;;  %v445_v0 = vld [vmem:[%s1059_s22 + $0x630] sm:$0xff]  ;;  %v354_v33 = vld [vmem:[%s1059_s22 + $0x358] sm:$0xff] }
  0x94   : > { %675 = vmatpush.msra.mxu0 %v261_v56  ;;  %695 = vmatpush.msra.mxu1 %v325_v57  ;;  %v253_v3 = vld [vmem:[%s1059_s22 + $0x30] sm:$0xff]  ;;  %v410_v34 = vld [vmem:[%s1059_s22 + $0x518] sm:$0xff] }
  0x95   : > { %717 = vmatpush.msra.mxu2 %v381_v58  ;;  %736 = vmatpush.msra.mxu3 %v449_v59  ;;  %v317_v4 = vld [vmem:[%s1059_s22 + $0x230] sm:$0xff]  ;;  %v478_v35 = vld [vmem:[%s1059_s22 + $0x738] sm:$0xff] }
  0x96   : > { %676 = vmatpush.msra.mxu0 %v257_v60  ;;  %696 = vmatpush.msra.mxu1 %v321_v62  ;;  %v441_v5 = vld [vmem:[%s1059_s22 + $0x610] sm:$0xff]  ;;  %v286_v36 = vld [vmem:[%s1059_s22 + $0x138] sm:$0xff] }
  0x97   : > { %718 = vmatpush.msra.mxu2 %v377_v63  ;;  %737 = vmatpush.msra.mxu3 %v445_v0  ;;  %v249_v10 = vld [vmem:[%s1059_s22 + $0x10] sm:$0xff]  ;;  %v350_v37 = vld [vmem:[%s1059_s22 + $0x338] sm:$0xff] }
  0x98   : > { %639 = vmatmul.f32.vlgmr.msrb.gmra.mxu2 %v1187_v61  ;;  %677 = vmatpush.msra.mxu0 %v253_v3  ;;  %v313_v11 = vld [vmem:[%s1059_s22 + $0x210] sm:$0xff]  ;;  %v406_v38 = vld [vmem:[%s1059_s22 + $0x4f8] sm:$0xff] }
  0x99   : > { %783 = vmatpush.msrb.mxu2 %v438_v2  ;;  %697 = vmatpush.msra.mxu1 %v317_v4  ;;  %v474_v39 = vld [vmem:[%s1059_s22 + $0x718] sm:$0xff] }
  0x9a   : > { %738 = vmatpush.msra.mxu3 %v441_v5  ;;  %678 = vmatpush.msra.mxu0 %v249_v10  ;;  %v282_v40 = vld [vmem:[%s1059_s22 + $0x118] sm:$0xff] }
  0x9b   : > { %659 = vmatmul.f32.vlgmr.msrb.gmra.mxu3 %v1193_v1  ;;  %784 = vmatpush.msrb.mxu2 %v434_v8  ;;  %v346_v41 = vld [vmem:[%s1059_s22 + $0x318] sm:$0xff] }
  0x9c   : > { %803 = vmatpush.msrb.mxu3 %v502_v9  ;;  %698 = vmatpush.msra.mxu1 %v313_v11  ;;  %v402_v42 = vld [vmem:[%s1059_s22 + $0x4d8] sm:$0xff] }
  0x9d   : > { %599 = vmatmul.f32.vlgmr.msrb.gmra.mxu0 %v1201_v6  ;;  %619 = vmatmul.f32.vlgmr.msrb.gmra.mxu1 %v1205_v7  ;;  %v470_v43 = vld [vmem:[%s1059_s22 + $0x6f8] sm:$0xff] }
  0x9e   : > { %743 = vmatpush.msrb.mxu0 %v310_v12  ;;  %763 = vmatpush.msrb.mxu1 %v374_v13  ;;  %v278_v44 = vld [vmem:[%s1059_s22 + $0xf8] sm:$0xff] }
  0x9f   : > { %785 = vmatpush.msrb.mxu2 %v430_v14  ;;  %804 = vmatpush.msrb.mxu3 %v498_v15  ;;  %v342_v45 = vld [vmem:[%s1059_s22 + $0x2f8] sm:$0xff] }
  0xa0   : > { %744 = vmatpush.msrb.mxu0 %v306_v16  ;;  %764 = vmatpush.msrb.mxu1 %v370_v17  ;;  %v398_v46 = vld [vmem:[%s1059_s22 + $0x4b8] sm:$0xff] }
  0xa1   : > { %786 = vmatpush.msrb.mxu2 %v426_v18  ;;  %805 = vmatpush.msrb.mxu3 %v494_v19  ;;  %v466_v47 = vld [vmem:[%s1059_s22 + $0x6d8] sm:$0xff] }
  0xa2   : > { %745 = vmatpush.msrb.mxu0 %v302_v20  ;;  %765 = vmatpush.msrb.mxu1 %v366_v21  ;;  %v274_v48 = vld [vmem:[%s1059_s22 + $0xd8] sm:$0xff] }
  0xa3   : > { %787 = vmatpush.msrb.mxu2 %v422_v22  ;;  %806 = vmatpush.msrb.mxu3 %v490_v23  ;;  %v338_v49 = vld [vmem:[%s1059_s22 + $0x2d8] sm:$0xff] }
  0xa4   : > { %746 = vmatpush.msrb.mxu0 %v298_v24  ;;  %766 = vmatpush.msrb.mxu1 %v362_v25  ;;  %v394_v50 = vld [vmem:[%s1059_s22 + $0x498] sm:$0xff] }
  0xa5   : > { %788 = vmatpush.msrb.mxu2 %v418_v26  ;;  %807 = vmatpush.msrb.mxu3 %v486_v27  ;;  %v462_v51 = vld [vmem:[%s1059_s22 + $0x6b8] sm:$0xff]  ;;  %v240_v26 = vld [vmem:[#allocation2] sm:$0xff] }
  0xa6   : > { %747 = vmatpush.msrb.mxu0 %v294_v28  ;;  %767 = vmatpush.msrb.mxu1 %v358_v29  ;;  %v270_v52 = vld [vmem:[%s1059_s22 + $0xb8] sm:$0xff] }
  0xa7   : > { %789 = vmatpush.msrb.mxu2 %v414_v30  ;;  %808 = vmatpush.msrb.mxu3 %v482_v31  ;;  %v334_v53 = vld [vmem:[%s1059_s22 + $0x2b8] sm:$0xff] }
  0xa8   : > { %748 = vmatpush.msrb.mxu0 %v290_v32  ;;  %768 = vmatpush.msrb.mxu1 %v354_v33  ;;  %v390_v54 = vld [vmem:[%s1059_s22 + $0x478] sm:$0xff] }
  0xa9   : > { %790 = vmatpush.msrb.mxu2 %v410_v34  ;;  %809 = vmatpush.msrb.mxu3 %v478_v35  ;;  %v458_v55 = vld [vmem:[%s1059_s22 + $0x698] sm:$0xff] }
  0xaa   : > { %749 = vmatpush.msrb.mxu0 %v286_v36  ;;  %769 = vmatpush.msrb.mxu1 %v350_v37  ;;  %v266_v56 = vld [vmem:[%s1059_s22 + $0x98] sm:$0xff] }
  0xab   : > { %791 = vmatpush.msrb.mxu2 %v406_v38  ;;  %810 = vmatpush.msrb.mxu3 %v474_v39  ;;  %v330_v57 = vld [vmem:[%s1059_s22 + $0x298] sm:$0xff] }
  0xac   : > { %750 = vmatpush.msrb.mxu0 %v282_v40  ;;  %770 = vmatpush.msrb.mxu1 %v346_v41  ;;  %v386_v58 = vld [vmem:[%s1059_s22 + $0x458] sm:$0xff]  ;;  %v242_v41 = vld [vmem:[#allocation2 + $0x8] sm:$0xff] }
  0xad   : > { %792 = vmatpush.msrb.mxu2 %v402_v42  ;;  %811 = vmatpush.msrb.mxu3 %v470_v43  ;;  %v454_v59 = vld [vmem:[%s1059_s22 + $0x678] sm:$0xff] }
  0xae   : > { %751 = vmatpush.msrb.mxu0 %v278_v44  ;;  %771 = vmatpush.msrb.mxu1 %v342_v45  ;;  %v262_v60 = vld [vmem:[%s1059_s22 + $0x78] sm:$0xff] }
  0xaf   : > { %793 = vmatpush.msrb.mxu2 %v398_v46  ;;  %812 = vmatpush.msrb.mxu3 %v466_v47  ;;  %v326_v62 = vld [vmem:[%s1059_s22 + $0x278] sm:$0xff] }
  0xb0   : > { %752 = vmatpush.msrb.mxu0 %v274_v48  ;;  %772 = vmatpush.msrb.mxu1 %v338_v49  ;;  %v382_v63 = vld [vmem:[%s1059_s22 + $0x438] sm:$0xff] }
  0xb1   : > { %794 = vmatpush.msrb.mxu2 %v394_v50  ;;  %813 = vmatpush.msrb.mxu3 %v462_v51  ;;  %v450_v0 = vld [vmem:[%s1059_s22 + $0x658] sm:$0xff] }
  0xb2   : > { %719 = vmatmul.f32.vlgmr.msra.gmra.mxu2 %v1187_v61  ;;  %753 = vmatpush.msrb.mxu0 %v270_v52  ;;  %v258_v2 = vld [vmem:[%s1059_s22 + $0x58] sm:$0xff] }
  0xb3   : > { %773 = vmatpush.msrb.mxu1 %v334_v53  ;;  %795 = vmatpush.msrb.mxu2 %v390_v54  ;;  %v322_v3 = vld [vmem:[%s1059_s22 + $0x258] sm:$0xff] }
  0xb4   : > { %814 = vmatpush.msrb.mxu3 %v458_v55  ;;  %754 = vmatpush.msrb.mxu0 %v266_v56  ;;  %v378_v4 = vld [vmem:[%s1059_s22 + $0x418] sm:$0xff] }
  0xb5   : > { %739 = vmatmul.f32.vlgmr.msra.gmra.mxu3 %v1193_v1  ;;  %774 = vmatpush.msrb.mxu1 %v330_v57  ;;  %v446_v5 = vld [vmem:[%s1059_s22 + $0x638] sm:$0xff] }
  0xb6   : > { %796 = vmatpush.msrb.mxu2 %v386_v58  ;;  %815 = vmatpush.msrb.mxu3 %v454_v59  ;;  %v254_v8 = vld [vmem:[%s1059_s22 + $0x38] sm:$0xff] }
  0xb7   : > { %679 = vmatmul.f32.vlgmr.msra.gmra.mxu0 %v1201_v6  ;;  %699 = vmatmul.f32.vlgmr.msra.gmra.mxu1 %v1205_v7  ;;  %v318_v9 = vld [vmem:[%s1059_s22 + $0x238] sm:$0xff] }
  0xb8   : > { %755 = vmatpush.msrb.mxu0 %v262_v60  ;;  %775 = vmatpush.msrb.mxu1 %v326_v62  ;;  %v442_v10 = vld [vmem:[%s1059_s22 + $0x618] sm:$0xff] }
  0xb9   : > { %797 = vmatpush.msrb.mxu2 %v382_v63  ;;  %816 = vmatpush.msrb.mxu3 %v450_v0  ;;  %v250_v11 = vld [vmem:[%s1059_s22 + $0x18] sm:$0xff] }
  0xba   : > { %756 = vmatpush.msrb.mxu0 %v258_v2  ;;  %776 = vmatpush.msrb.mxu1 %v322_v3  ;;  %v314_v12 = vld [vmem:[%s1059_s22 + $0x218] sm:$0xff] }
  0xbb   : > { %798 = vmatpush.msrb.mxu2 %v378_v4  ;;  %817 = vmatpush.msrb.mxu3 %v446_v5  ;;  %v241_v33 = vld [vmem:[#allocation2 + $0x18] sm:$0xff] }
  0xbc   : > { %799 = vmatmul.f32.vlgmr.msrb.gmra.mxu2 %v1187_v61  ;;  %757 = vmatpush.msrb.mxu0 %v254_v8  ;;  %v239_v61 = vld [vmem:[#allocation2 + $0x10] sm:$0xff] }
  0xbd   : > { %777 = vmatpush.msrb.mxu1 %v318_v9  ;;  %818 = vmatpush.msrb.mxu3 %v442_v10 }
  0xbe   : > { %819 = vmatmul.f32.vlgmr.msrb.gmra.mxu3 %v1193_v1  ;;  %758 = vmatpush.msrb.mxu0 %v250_v11 }
  0xbf   : > { %778 = vmatpush.msrb.mxu1 %v314_v12  ;;  %759 = vmatmul.f32.vlgmr.msrb.gmra.mxu0 %v1201_v6 }
  0xc0   : > { %779 = vmatmul.f32.vlgmr.msrb.gmra.mxu1 %v1205_v7 }
  0xda   : > { %v560_v16 = vpop.f32.mrf.mxu2 }
  0xf8   : > { %v520_v13 = vpop.f32.mrf.mxu0  ;;  %v540_v14 = vpop.f32.mrf.mxu1 }
  0xf9   : > { %v541_v15 = vadd.f32 %v540_v14, %v520_v13 }
  0xfb   : > { %v561_v17 = vadd.f32 %v560_v16, %v541_v15  ;;  %v580_v18 = vpop.f32.mrf.mxu3 }
  0xfd   : > { %v581_v19 = vadd.f32 %v580_v18, %v561_v17 }
  0xff   : > { %v823_v20 = vadd.f32 %v581_v19, %v239_v61 }
 0x101   : > { %827 = vst [vmem:[#allocation2 + $0x10] sm:$0xff] %v823_v20 }
 0x11a   : > { %v600_v21 = vpop.f32.mrf.mxu0  ;;  %v620_v22 = vpop.f32.mrf.mxu1 }
 0x11b   : > { %v640_v23 = vpop.f32.mrf.mxu2  ;;  %v621_v1 = vadd.f32 %v620_v22, %v600_v21 }
 0x11d   : > { %v641_v24 = vadd.f32 %v640_v23, %v621_v1 }
 0x11e   : > { %v660_v25 = vpop.f32.mrf.mxu3 }
 0x11f   : > { %v661_v6 = vadd.f32 %v660_v25, %v641_v24 }
 0x121   : > { %v824_v27 = vadd.f32 %v661_v6, %v240_v26 }
 0x123   : > { %828 = vst [vmem:[#allocation2] sm:$0xff] %v824_v27 }
 0x134   : > { %v680_v7 = vpop.f32.mrf.mxu0  ;;  %v700_v28 = vpop.f32.mrf.mxu1 }
 0x135   : > { %v720_v29 = vpop.f32.mrf.mxu2  ;;  %v701_v30 = vadd.f32 %v700_v28, %v680_v7 }
 0x137   : > { %v721_v31 = vadd.f32 %v720_v29, %v701_v30 }
 0x138   : > { %v740_v32 = vpop.f32.mrf.mxu3 }
 0x139   : > { %v741_v34 = vadd.f32 %v740_v32, %v721_v31 }
 0x13b   : > { %v825_v35 = vadd.f32 %v741_v34, %v241_v33 }
 0x13c   : > { %v760_v36 = vpop.f32.mrf.mxu0 }
 0x13d   : > { %829 = vst [vmem:[#allocation2 + $0x18] sm:$0xff] %v825_v35  ;;  %v780_v37 = vpop.f32.mrf.mxu1 }
 0x13e   : > { %v781_v38 = vadd.f32 %v780_v37, %v760_v36 }
 0x13f   : > { %v800_v39 = vpop.f32.mrf.mxu2 }
 0x140   : > { %v801_v40 = vadd.f32 %v800_v39, %v781_v38 }
 0x141   : > { %v820_v42 = vpop.f32.mrf.mxu3 }
 0x142   : > { %v821_v43 = vadd.f32 %v820_v42, %v801_v40  ;;  %834 = sbr.rel (%p958_p7) target bundleno = 335 (0x14f), region = 36 }
 0x144   : > { %v826_v44 = vadd.f32 %v821_v43, %v242_v41 }
 0x146   : > { %830 = vst [vmem:[#allocation2 + $0x8] sm:$0xff] %v826_v44 }
 0x147   : > { %v835_v45 = vld [vmem:[#allocation2 + $0x10] sm:$0xff]  ;;  %v836_v46 = vld [vmem:[#allocation2] sm:$0xff]  ;;  %v837_v47 = vld [vmem:[#allocation2 + $0x18] sm:$0xff] }
 0x148   : > { %839 = vst [vmem:[%s1370_s2] sm:$0xff] %v835_v45 }
 0x149   : > { %840 = vst [vmem:[%s1370_s2 + $0x8] sm:$0xff] %v836_v46 }
 0x14a   : > { %841 = vst [vmem:[%s1370_s2 + $0x10] sm:$0xff] %v837_v47 }
 0x14d   : > { %v838_v48 = vld [vmem:[#allocation2 + $0x8] sm:$0xff] }
 0x14e   : > { %842 = vst [vmem:[%s1370_s2 + $0x18] sm:$0xff] %v838_v48 }
 0x14f PF: > { %s12_s11 = sadd.s32 1, %s1011_s11   ;;  %s1371_s9 = smov %s1007_s10 }
 0x150   : > { %p9_p8 = scmp.ge.s32.totalorder %s12_s11, 10   ;;  %s1372_s10 = smov %s1374_s12 }
 0x152   :  { %11 = sbr.rel (!%p9_p8) target bundleno = 2 (0x2), region = 69 }

// kernel: cnnrnn_forward.7
= control target key start
LH: loop header
LB: loop body
LE: loop exit
PB: predicated region body
PF: predicated region fallthrough
CT: control target
= control target key end

     0   :  { %s1636_s0 = inlined_call_operand.vmem [shape: f32[4,2,512], index: 0, kind: input, shape index: {}]   ;;  %s1637_s1 = inlined_call_operand.vmem [shape: f32[128,512], index: 1, kind: input, shape index: {}]   ;;  %s1638_s2 = inlined_call_operand.vmem [shape: f32[1,512], index: 2, kind: input, shape index: {}]   ;;  %s1639_s3 = inlined_call_operand.vmem [shape: f32[128,10], index: 3, kind: input, shape index: {}]   ;;  %s1640_s4 = inlined_call_operand.vmem [shape: f32[1,10], index: 4, kind: input, shape index: {}]   ;;  %s1641_s5 = inlined_call_operand.hbm [shape: f32[2,10], index: 5, kind: output, shape index: {}]  }
   0x1   :  { %v961_v0 = vld [vmem:[%s1637_s1 + $0x1f0] sm:$0xff]  ;;  %v966_v1 = vld [vmem:[%s1637_s1 + $0x1f8] sm:$0xff]  ;;  %v993_v6 = vld [vmem:[%s1637_s1 + $0x1e8] sm:$0xff] }
   0x2   :  { %v971_v2 = vld [vmem:[%s1637_s1 + $0x1d0] sm:$0xff]  ;;  %127 = vmatpush.msra.mxu2 %v961_v0  ;;  %147 = vmatpush.msra.mxu3 %v966_v1  ;;  %v978_v3 = vld [vmem:[%s1637_s1 + $0x1d8] sm:$0xff]  ;;  %v1000_v7 = vld [vmem:[%s1637_s1 + $0x1e0] sm:$0xff] }
   0x3   :  { %v983_v4 = vld [vmem:[%s1637_s1 + $0x1b0] sm:$0xff]  ;;  %v988_v5 = vld [vmem:[%s1637_s1 + $0x1b8] sm:$0xff]  ;;  %v1005_v8 = vld [vmem:[%s1637_s1 + $0x1c8] sm:$0xff]  ;;  %107 = vmatpush.msra.mxu1 %v993_v6  ;;  %87 = vmatpush.msra.mxu0 %v1000_v7 }
   0x4   :  { %128 = vmatpush.msra.mxu2 %v971_v2  ;;  %148 = vmatpush.msra.mxu3 %v978_v3  ;;  %v1011_v9 = vld [vmem:[%s1637_s1 + $0x190] sm:$0xff]  ;;  %v1016_v10 = vld [vmem:[%s1637_s1 + $0x198] sm:$0xff]  ;;  %v1022_v11 = vld [vmem:[%s1637_s1 + $0x1c0] sm:$0xff] }
   0x5   :  { %v1029_v12 = vld [vmem:[%s1637_s1 + $0x1a8] sm:$0xff]  ;;  %v1034_v13 = vld [vmem:[%s1637_s1 + $0x1a0] sm:$0xff]  ;;  %108 = vmatpush.msra.mxu1 %v1005_v8  ;;  %v1040_v14 = vld [vmem:[%s1637_s1 + $0x170] sm:$0xff]  ;;  %88 = vmatpush.msra.mxu0 %v1022_v11 }
   0x6   :  { %129 = vmatpush.msra.mxu2 %v983_v4  ;;  %149 = vmatpush.msra.mxu3 %v988_v5  ;;  %v1045_v15 = vld [vmem:[%s1637_s1 + $0x178] sm:$0xff]  ;;  %v1053_v16 = vld [vmem:[%s1637_s1 + $0x188] sm:$0xff]  ;;  %v1058_v17 = vld [vmem:[%s1637_s1 + $0x180] sm:$0xff] }
   0x7   :  { %109 = vmatpush.msra.mxu1 %v1029_v12  ;;  %v1064_v18 = vld [vmem:[%s1637_s1 + $0x150] sm:$0xff]  ;;  %v1069_v19 = vld [vmem:[%s1637_s1 + $0x158] sm:$0xff]  ;;  %89 = vmatpush.msra.mxu0 %v1034_v13  ;;  %v1077_v20 = vld [vmem:[%s1637_s1 + $0x168] sm:$0xff] }
   0x8   :  { %130 = vmatpush.msra.mxu2 %v1011_v9  ;;  %150 = vmatpush.msra.mxu3 %v1016_v10  ;;  %v1082_v21 = vld [vmem:[%s1637_s1 + $0x160] sm:$0xff]  ;;  %v1088_v22 = vld [vmem:[%s1637_s1 + $0x130] sm:$0xff]  ;;  %v1093_v23 = vld [vmem:[%s1637_s1 + $0x138] sm:$0xff] }
   0x9   :  { %110 = vmatpush.msra.mxu1 %v1053_v16  ;;  %90 = vmatpush.msra.mxu0 %v1058_v17  ;;  %v1101_v24 = vld [vmem:[%s1637_s1 + $0x148] sm:$0xff]  ;;  %v1106_v25 = vld [vmem:[%s1637_s1 + $0x140] sm:$0xff]  ;;  %v1112_v26 = vld [vmem:[%s1637_s1 + $0x110] sm:$0xff] }
   0xa   :  { %131 = vmatpush.msra.mxu2 %v1040_v14  ;;  %151 = vmatpush.msra.mxu3 %v1045_v15  ;;  %v1117_v27 = vld [vmem:[%s1637_s1 + $0x118] sm:$0xff]  ;;  %v1125_v28 = vld [vmem:[%s1637_s1 + $0x128] sm:$0xff]  ;;  %v1130_v29 = vld [vmem:[%s1637_s1 + $0x120] sm:$0xff] }
   0xb   :  { %111 = vmatpush.msra.mxu1 %v1077_v20  ;;  %91 = vmatpush.msra.mxu0 %v1082_v21  ;;  %v1136_v30 = vld [vmem:[%s1637_s1 + $0xf0] sm:$0xff]  ;;  %v1141_v31 = vld [vmem:[%s1637_s1 + $0xf8] sm:$0xff]  ;;  %v1149_v32 = vld [vmem:[%s1637_s1 + $0x108] sm:$0xff] }
   0xc   :  { %132 = vmatpush.msra.mxu2 %v1064_v18  ;;  %152 = vmatpush.msra.mxu3 %v1069_v19  ;;  %v1154_v33 = vld [vmem:[%s1637_s1 + $0x100] sm:$0xff]  ;;  %v1160_v34 = vld [vmem:[%s1637_s1 + $0xd0] sm:$0xff]  ;;  %v1165_v35 = vld [vmem:[%s1637_s1 + $0xd8] sm:$0xff] }
   0xd   :  { %112 = vmatpush.msra.mxu1 %v1101_v24  ;;  %92 = vmatpush.msra.mxu0 %v1106_v25  ;;  %1672 = vst [vmem:[#allocation5_spill] sm:$0xff] %v1160_v34  ;;  %v1173_v36 = vld [vmem:[%s1637_s1 + $0xe8] sm:$0xff]  ;;  %v1178_v37 = vld [vmem:[%s1637_s1 + $0xe0] sm:$0xff]  ;;  %v1184_v38 = vld [vmem:[%s1637_s1 + $0xb0] sm:$0xff] }
   0xe   :  { %133 = vmatpush.msra.mxu2 %v1088_v22  ;;  %153 = vmatpush.msra.mxu3 %v1093_v23  ;;  %1673 = vst [vmem:[#allocation6_spill] sm:$0xff] %v1165_v35  ;;  %v1189_v39 = vld [vmem:[%s1637_s1 + $0xb8] sm:$0xff]  ;;  %v1197_v40 = vld [vmem:[%s1637_s1 + $0xc8] sm:$0xff]  ;;  %v1202_v41 = vld [vmem:[%s1637_s1 + $0xc0] sm:$0xff] }
   0xf   :  { %113 = vmatpush.msra.mxu1 %v1125_v28  ;;  %93 = vmatpush.msra.mxu0 %v1130_v29  ;;  %1674 = vst [vmem:[#allocation7_spill] sm:$0xff] %v1184_v38  ;;  %v1208_v42 = vld [vmem:[%s1637_s1 + $0x90] sm:$0xff]  ;;  %v1213_v43 = vld [vmem:[%s1637_s1 + $0x98] sm:$0xff]  ;;  %v1219_v44 = vld [vmem:[%s1637_s1 + $0xa8] sm:$0xff] }
  0x10   :  { %134 = vmatpush.msra.mxu2 %v1112_v26  ;;  %154 = vmatpush.msra.mxu3 %v1117_v27  ;;  %1675 = vst [vmem:[#allocation8_spill] sm:$0xff] %v1189_v39  ;;  %v1226_v45 = vld [vmem:[%s1637_s1 + $0xa0] sm:$0xff] }
  0x11   :  { %114 = vmatpush.msra.mxu1 %v1149_v32  ;;  %94 = vmatpush.msra.mxu0 %v1154_v33  ;;  %1676 = vst [vmem:[#allocation9_spill] sm:$0xff] %v1208_v42 }
  0x12   :  { %135 = vmatpush.msra.mxu2 %v1136_v30  ;;  %155 = vmatpush.msra.mxu3 %v1141_v31  ;;  %1677 = vst [vmem:[#allocation10_spill] sm:$0xff] %v1213_v43 }
  0x13   :  { %115 = vmatpush.msra.mxu1 %v1173_v36  ;;  %95 = vmatpush.msra.mxu0 %v1178_v37  ;;  %1678 = vst [vmem:[#allocation11_spill] sm:$0xff] %v1219_v44 }
  0x14   :  { %136 = vmatpush.msra.mxu2 %v1160_v34  ;;  %156 = vmatpush.msra.mxu3 %v1165_v35  ;;  %1679 = vst [vmem:[#allocation12_spill] sm:$0xff] %v1226_v45 }
  0x16   :  { %137 = vmatpush.msra.mxu2 %v1184_v38  ;;  %157 = vmatpush.msra.mxu3 %v1189_v39 }
  0x17   :  { %10 = vsyncpa [#allocation3], 0  ;;  %116 = vmatpush.msra.mxu1 %v1197_v40  ;;  %v1232_v46 = vld [vmem:[%s1637_s1 + $0x70] sm:$0xff]  ;;  %v1237_v47 = vld [vmem:[%s1637_s1 + $0x78] sm:$0xff]  ;;  %96 = vmatpush.msra.mxu0 %v1202_v41  ;;  %v926_v62 = vmov 0.0   ;;  %vm174_vm0 = vcmask 1041408  }
  0x18   :  { %1680 = vst [vmem:[#allocation13_spill] sm:$0xff] %v1232_v46  ;;  %138 = vmatpush.msra.mxu2 %v1208_v42  ;;  %158 = vmatpush.msra.mxu3 %v1213_v43  ;;  %v1245_v48 = vld [vmem:[%s1637_s1 + $0x88] sm:$0xff]  ;;  %v1250_v49 = vld [vmem:[%s1637_s1 + $0x80] sm:$0xff]  ;;  %v1256_v50 = vld [vmem:[%s1637_s1 + $0x50] sm:$0xff]  ;;  %vm176_vm1 = vcmask 1045508   ;;  %vm178_vm2 = vcmask 1043456  }
  0x19   :  { %1681 = vst [vmem:[#allocation14_spill] sm:$0xff] %v1237_v47  ;;  %117 = vmatpush.msra.mxu1 %v1219_v44  ;;  %v1261_v51 = vld [vmem:[%s1637_s1 + $0x58] sm:$0xff]  ;;  %97 = vmatpush.msra.mxu0 %v1226_v45  ;;  %v1269_v52 = vld [vmem:[%s1637_s1 + $0x68] sm:$0xff]  ;;  %v1274_v53 = vld [vmem:[%s1637_s1 + $0x60] sm:$0xff]  ;;  %s927_s9 = smov [#allocation2]   ;;  %s809_s13 = sshll.u32 %s1641_s5, 4  ;;  %s810_s13 = int_to_ptr.hbm [resolvable:$true] %s809_s13 }
  0x1a   :  { %1682 = vst [vmem:[#allocation15_spill] sm:$0xff] %v1245_v48  ;;  %139 = vmatpush.msra.mxu2 %v1232_v46  ;;  %159 = vmatpush.msra.mxu3 %v1237_v47  ;;  %v1280_v54 = vld [vmem:[%s1637_s1 + $0x30] sm:$0xff]  ;;  %v1285_v55 = vld [vmem:[%s1637_s1 + $0x38] sm:$0xff]  ;;  %v1293_v56 = vld [vmem:[%s1637_s1 + $0x48] sm:$0xff]  ;;  %s807_s10 = sshll.u32 %s927_s9, 4  ;;  %s808_s10 = int_to_ptr.vmem [resolvable:$true] %s807_s10 }
  0x1b   :  { %1683 = vst [vmem:[#allocation16_spill] sm:$0xff] %v1250_v49  ;;  %118 = vmatpush.msra.mxu1 %v1245_v48  ;;  %98 = vmatpush.msra.mxu0 %v1250_v49  ;;  %v1298_v57 = vld [vmem:[%s1637_s1 + $0x40] sm:$0xff]  ;;  %v1304_v58 = vld [vmem:[%s1637_s1 + $0x10] sm:$0xff]  ;;  %v1309_v59 = vld [vmem:[%s1637_s1 + $0x18] sm:$0xff] }
  0x1c   :  { %1684 = vst [vmem:[#allocation17_spill] sm:$0xff] %v1256_v50  ;;  %140 = vmatpush.msra.mxu2 %v1256_v50  ;;  %160 = vmatpush.msra.mxu3 %v1261_v51  ;;  %v1319_v60 = vld [vmem:[%s1637_s1 + $0x28] sm:$0xff]  ;;  %v1324_v61 = vld [vmem:[%s1637_s1 + $0x20] sm:$0xff] }
  0x1d   :  { %1685 = vst [vmem:[#allocation18_spill] sm:$0xff] %v1261_v51  ;;  %119 = vmatpush.msra.mxu1 %v1269_v52  ;;  %99 = vmatpush.msra.mxu0 %v1274_v53  ;;  %v1331_v63 = vld [vmem:[%s1637_s1 + $0x8] sm:$0xff] }
  0x1e   :  { %1686 = vst [vmem:[#allocation19_spill] sm:$0xff] %v1269_v52  ;;  %141 = vmatpush.msra.mxu2 %v1280_v54  ;;  %161 = vmatpush.msra.mxu3 %v1285_v55 }
  0x1f   :  { %1687 = vst [vmem:[#allocation20_spill] sm:$0xff] %v1274_v53  ;;  %120 = vmatpush.msra.mxu1 %v1293_v56  ;;  %100 = vmatpush.msra.mxu0 %v1298_v57 }
  0x20   :  { %1688 = vst [vmem:[#allocation21_spill] sm:$0xff] %v1280_v54  ;;  %142 = vmatpush.msra.mxu2 %v1304_v58  ;;  %162 = vmatpush.msra.mxu3 %v1309_v59 }
  0x21   :  { %1689 = vst [vmem:[#allocation22_spill] sm:$0xff] %v1285_v55  ;;  %143 = vmatmul.f32.vlgmr.msra.gmra.mxu2 %v926_v62  ;;  %163 = vmatmul.f32.vlgmr.msra.gmra.mxu3 %v926_v62  ;;  %v1336_v55 = vld [vmem:[%s1637_s1] sm:$0xff] }
  0x22   :  { %1690 = vst [vmem:[#allocation23_spill] sm:$0xff] %v1293_v56  ;;  %121 = vmatpush.msra.mxu1 %v1319_v60  ;;  %101 = vmatpush.msra.mxu0 %v1324_v61 }
  0x23   :  { %1691 = vst [vmem:[#allocation24_spill] sm:$0xff] %v1298_v57  ;;  %307 = vmatpush.msrb.mxu2 %v961_v0  ;;  %327 = vmatpush.msrb.mxu3 %v966_v1 }
  0x24   :  { %1692 = vst [vmem:[#allocation25_spill] sm:$0xff] %v1304_v58  ;;  %122 = vmatpush.msra.mxu1 %v1331_v63  ;;  %102 = vmatpush.msra.mxu0 %v1336_v55 }
  0x25   :  { %1693 = vst [vmem:[#allocation26_spill] sm:$0xff] %v1309_v59  ;;  %123 = vmatmul.f32.vlgmr.msra.gmra.mxu1 %v926_v62  ;;  %103 = vmatmul.f32.vlgmr.msra.gmra.mxu0 %v926_v62 }
  0x26   :  { %1694 = vst [vmem:[#allocation27_spill] sm:$0xff] %v1319_v60  ;;  %267 = vmatpush.msrb.mxu0 %v1000_v7  ;;  %287 = vmatpush.msrb.mxu1 %v993_v6 }
  0x27   :  { %1695 = vst [vmem:[#allocation28_spill] sm:$0xff] %v1324_v61  ;;  %308 = vmatpush.msrb.mxu2 %v971_v2  ;;  %328 = vmatpush.msrb.mxu3 %v978_v3 }
  0x28   :  { %1696 = vst [vmem:[#allocation29_spill] sm:$0xff] %v1331_v63  ;;  %268 = vmatpush.msrb.mxu0 %v1022_v11  ;;  %288 = vmatpush.msrb.mxu1 %v1005_v8  ;;  %v1698_v62 = vld [vmem:[#allocation22_spill] sm:$0xff] }
  0x29   :  { %1697 = vst [vmem:[#allocation30_spill] sm:$0xff] %v1336_v55  ;;  %309 = vmatpush.msrb.mxu2 %v983_v4  ;;  %329 = vmatpush.msrb.mxu3 %v988_v5 }
  0x2a   :  { %269 = vmatpush.msrb.mxu0 %v1034_v13  ;;  %289 = vmatpush.msrb.mxu1 %v1029_v12 }
  0x2b   :  { %310 = vmatpush.msrb.mxu2 %v1011_v9  ;;  %330 = vmatpush.msrb.mxu3 %v1016_v10 }
  0x2c   :  { %270 = vmatpush.msrb.mxu0 %v1058_v17  ;;  %290 = vmatpush.msrb.mxu1 %v1053_v16 }
  0x2d   :  { %311 = vmatpush.msrb.mxu2 %v1040_v14  ;;  %331 = vmatpush.msrb.mxu3 %v1045_v15 }
  0x2e   :  { %271 = vmatpush.msrb.mxu0 %v1082_v21  ;;  %291 = vmatpush.msrb.mxu1 %v1077_v20 }
  0x2f   :  { %312 = vmatpush.msrb.mxu2 %v1064_v18  ;;  %332 = vmatpush.msrb.mxu3 %v1069_v19 }
  0x30   :  { %272 = vmatpush.msrb.mxu0 %v1106_v25  ;;  %292 = vmatpush.msrb.mxu1 %v1101_v24 }
  0x31   :  { %313 = vmatpush.msrb.mxu2 %v1088_v22  ;;  %333 = vmatpush.msrb.mxu3 %v1093_v23 }
  0x32   :  { %273 = vmatpush.msrb.mxu0 %v1130_v29  ;;  %293 = vmatpush.msrb.mxu1 %v1125_v28 }
  0x33   :  { %314 = vmatpush.msrb.mxu2 %v1112_v26  ;;  %334 = vmatpush.msrb.mxu3 %v1117_v27 }
  0x34   :  { %274 = vmatpush.msrb.mxu0 %v1154_v33  ;;  %294 = vmatpush.msrb.mxu1 %v1149_v32 }
  0x35   :  { %315 = vmatpush.msrb.mxu2 %v1136_v30  ;;  %335 = vmatpush.msrb.mxu3 %v1141_v31 }
  0x36   :  { %275 = vmatpush.msrb.mxu0 %v1178_v37  ;;  %295 = vmatpush.msrb.mxu1 %v1173_v36 }
  0x37   :  { %316 = vmatpush.msrb.mxu2 %v1160_v34  ;;  %336 = vmatpush.msrb.mxu3 %v1165_v35 }
  0x38   :  { %276 = vmatpush.msrb.mxu0 %v1202_v41  ;;  %296 = vmatpush.msrb.mxu1 %v1197_v40 }
  0x39   :  { %317 = vmatpush.msrb.mxu2 %v1184_v38  ;;  %337 = vmatpush.msrb.mxu3 %v1189_v39 }
  0x3a   :  { %277 = vmatpush.msrb.mxu0 %v1226_v45  ;;  %297 = vmatpush.msrb.mxu1 %v1219_v44 }
  0x3b   :  { %318 = vmatpush.msrb.mxu2 %v1208_v42  ;;  %338 = vmatpush.msrb.mxu3 %v1213_v43 }
  0x3c   :  { %278 = vmatpush.msrb.mxu0 %v1250_v49  ;;  %298 = vmatpush.msrb.mxu1 %v1245_v48 }
  0x3d   :  { %319 = vmatpush.msrb.mxu2 %v1232_v46  ;;  %339 = vmatpush.msrb.mxu3 %v1237_v47 }
  0x3e   :  { %279 = vmatpush.msrb.mxu0 %v1274_v53  ;;  %299 = vmatpush.msrb.mxu1 %v1269_v52 }
  0x3f   :  { %320 = vmatpush.msrb.mxu2 %v1256_v50  ;;  %340 = vmatpush.msrb.mxu3 %v1261_v51 }
  0x40   :  { %280 = vmatpush.msrb.mxu0 %v1298_v57  ;;  %300 = vmatpush.msrb.mxu1 %v1293_v56 }
  0x41   :  { %321 = vmatpush.msrb.mxu2 %v1280_v54  ;;  %341 = vmatpush.msrb.mxu3 %v1698_v62 }
  0x42   :  { %281 = vmatpush.msrb.mxu0 %v1324_v61  ;;  %301 = vmatpush.msrb.mxu1 %v1319_v60 }
  0x43   :  { %322 = vmatpush.msrb.mxu2 %v1304_v58  ;;  %342 = vmatpush.msrb.mxu3 %v1309_v59 }
  0x44   :  { %282 = vmatpush.msrb.mxu0 %v1336_v55  ;;  %302 = vmatpush.msrb.mxu1 %v1331_v63 }
  0x45   :  { %472 = vmatpush.msra.mxu2 %v961_v0  ;;  %492 = vmatpush.msra.mxu3 %v966_v1 }
  0x46   :  { %432 = vmatpush.msra.mxu0 %v1000_v7  ;;  %452 = vmatpush.msra.mxu1 %v993_v6 }
  0x47   :  { %473 = vmatpush.msra.mxu2 %v971_v2  ;;  %493 = vmatpush.msra.mxu3 %v978_v3 }
  0x48   :  { %433 = vmatpush.msra.mxu0 %v1022_v11  ;;  %453 = vmatpush.msra.mxu1 %v1005_v8 }
  0x49   :  { %474 = vmatpush.msra.mxu2 %v983_v4  ;;  %494 = vmatpush.msra.mxu3 %v988_v5 }
  0x4a   :  { %434 = vmatpush.msra.mxu0 %v1034_v13  ;;  %454 = vmatpush.msra.mxu1 %v1029_v12 }
  0x4b   :  { %475 = vmatpush.msra.mxu2 %v1011_v9  ;;  %495 = vmatpush.msra.mxu3 %v1016_v10 }
  0x4c   :  { %435 = vmatpush.msra.mxu0 %v1058_v17  ;;  %455 = vmatpush.msra.mxu1 %v1053_v16 }
  0x4d   :  { %476 = vmatpush.msra.mxu2 %v1040_v14  ;;  %496 = vmatpush.msra.mxu3 %v1045_v15 }
  0x4e   :  { %436 = vmatpush.msra.mxu0 %v1082_v21  ;;  %456 = vmatpush.msra.mxu1 %v1077_v20 }
  0x4f   :  { %477 = vmatpush.msra.mxu2 %v1064_v18  ;;  %497 = vmatpush.msra.mxu3 %v1069_v19 }
  0x50   :  { %437 = vmatpush.msra.mxu0 %v1106_v25  ;;  %457 = vmatpush.msra.mxu1 %v1101_v24 }
  0x51   :  { %478 = vmatpush.msra.mxu2 %v1088_v22  ;;  %498 = vmatpush.msra.mxu3 %v1093_v23 }
  0x52   :  { %438 = vmatpush.msra.mxu0 %v1130_v29  ;;  %458 = vmatpush.msra.mxu1 %v1125_v28 }
  0x53   :  { %479 = vmatpush.msra.mxu2 %v1112_v26  ;;  %499 = vmatpush.msra.mxu3 %v1117_v27 }
  0x54   :  { %439 = vmatpush.msra.mxu0 %v1154_v33  ;;  %459 = vmatpush.msra.mxu1 %v1149_v32 }
  0x55   :  { %480 = vmatpush.msra.mxu2 %v1136_v30  ;;  %500 = vmatpush.msra.mxu3 %v1141_v31 }
  0x56   :  { %440 = vmatpush.msra.mxu0 %v1178_v37  ;;  %460 = vmatpush.msra.mxu1 %v1173_v36 }
  0x57   :  { %481 = vmatpush.msra.mxu2 %v1160_v34  ;;  %501 = vmatpush.msra.mxu3 %v1165_v35 }
  0x58   :  { %441 = vmatpush.msra.mxu0 %v1202_v41  ;;  %461 = vmatpush.msra.mxu1 %v1197_v40 }
  0x59   :  { %482 = vmatpush.msra.mxu2 %v1184_v38  ;;  %502 = vmatpush.msra.mxu3 %v1189_v39 }
  0x5a   :  { %442 = vmatpush.msra.mxu0 %v1226_v45  ;;  %462 = vmatpush.msra.mxu1 %v1219_v44 }
  0x5b   :  { %483 = vmatpush.msra.mxu2 %v1208_v42  ;;  %503 = vmatpush.msra.mxu3 %v1213_v43 }
  0x5c   :  { %443 = vmatpush.msra.mxu0 %v1250_v49  ;;  %463 = vmatpush.msra.mxu1 %v1245_v48 }
  0x5d   :  { %484 = vmatpush.msra.mxu2 %v1232_v46  ;;  %504 = vmatpush.msra.mxu3 %v1237_v47 }
  0x5e   :  { %444 = vmatpush.msra.mxu0 %v1274_v53  ;;  %464 = vmatpush.msra.mxu1 %v1269_v52 }
  0x5f   :  { %485 = vmatpush.msra.mxu2 %v1256_v50  ;;  %505 = vmatpush.msra.mxu3 %v1261_v51  ;;  %v85_v51 = vld [vmem:[%s1638_s2] sm:$0xf] }
  0x60   :  { %445 = vmatpush.msra.mxu0 %v1298_v57  ;;  %465 = vmatpush.msra.mxu1 %v1293_v56  ;;  %v184_v50 = vperm.slane %v85_v51, 1  ;;  %v186_v56 = vperm.slane %v85_v51, 3 }
  0x61   :  { %486 = vmatpush.msra.mxu2 %v1280_v54  ;;  %506 = vmatpush.msra.mxu3 %v1698_v62 }
  0x62   :  { %446 = vmatpush.msra.mxu0 %v1324_v61  ;;  %466 = vmatpush.msra.mxu1 %v1319_v60  ;;  %v185_v61 = vperm.slane %v85_v51, 2  ;;  %v183_v60 = vperm.slane %v85_v51, 0  ;;  %v187_v57 = vrot.slane %v184_v50, 6  ;;  %v189_v47 = vrot.slane %v186_v56, 2  ;;  %v86_v50 = vld [vmem:[%s1636_s0] sm:$0xff] }
  0x63   :  { %487 = vmatpush.msra.mxu2 %v1304_v58  ;;  %507 = vmatpush.msra.mxu3 %v1309_v59 }
  0x64   :  { %447 = vmatpush.msra.mxu0 %v1336_v55  ;;  %467 = vmatpush.msra.mxu1 %v1331_v63  ;;  %v188_v54 = vrot.slane %v185_v61, 4  ;;  %v190_v59 = vsel %vm174_vm0, %v183_v60, %v187_v57 }
  0x66   :  { %v191_v42 = vsel %vm176_vm1, %v188_v54, %v189_v47 }
  0x67   :  { %v1482_v61 = vsel %vm178_vm2, %v190_v59, %v191_v42 }
  0x68   :  { %1699 = vst [vmem:[#allocation31_spill] sm:$0xff] %v1482_v61 }
  0xa2   :  { %v124_v62 = vpop.f32.mrf.mxu1  ;;  %v104_v46 = vpop.f32.mrf.mxu0 }
  0xa3   :  { %v171_v55 = vrot.slane %v124_v62, 6 }
  0xa4   :  { %v144_v63 = vpop.f32.mrf.mxu2  ;;  %v164_v52 = vpop.f32.mrf.mxu3 }
  0xa5   :  { %v172_v58 = vrot.slane %v144_v63, 4  ;;  %v173_v53 = vrot.slane %v164_v52, 2  ;;  %v175_v43 = vsel %vm174_vm0, %v104_v46, %v171_v55 }
  0xa7   :  { %v177_v51 = vsel %vm176_vm1, %v172_v58, %v173_v53 }
  0xa8   :  { %v179_v56 = vsel %vm178_vm2, %v175_v43, %v177_v51 }
  0xa9   :  { %v181_v62 = vadd.f32 %v179_v56, %v86_v50 }
  0xab   :  { %v194_v57 = vadd.f32 %v1482_v61, %v181_v62 }
  0xad   :  { %v818_v60 = vmul.f32 -1.442695, %v194_v57  ;;  %v215_v52 = vrot.slane %v194_v57, 2  ;;  %v239_v63 = vrot.slane %v194_v57, 6  ;;  %v236_v51 = vrot.slane %v194_v57, 4 }
  0xaf   :  { %836 = vpow2.f32 %v818_v60  ;;  %v819_v46 = vmul.f32 -1.442695, %v215_v52  ;;  %v820_v47 = vmul.f32 -1.442695, %v239_v63 }
  0xb1   :  { %838 = vpow2.f32 %v819_v46 }
  0xb2   :  { %840 = vpow2.f32 %v820_v47 }
  0xb5   :  { %v837_v54 = vpop.eup %836 }
  0xb6   :  { %v198_v55 = vadd.f32 1.0, %v837_v54 }
  0xb7   :  { %v839_v48 = vpop.eup %838 }
  0xb8   :  { %v841_v53 = vpop.eup %840  ;;  %842 = vrcp.f32 %v198_v55  ;;  %v220_v43 = vadd.f32 1.0, %v839_v48  ;;  %v210_v52 = vand.u32 2147483648, %v198_v55  ;;  %v208_v47 = vand.u32 2147483647, %v198_v55 }
  0xb9   :  { %v244_v58 = vadd.f32 1.0, %v841_v53  ;;  %vm204_vm4 = vweird.f32 %v198_v55 }
  0xba   :  { %844 = vrcp.f32 %v220_v43  ;;  %v232_v61 = vand.u32 2147483648, %v220_v43  ;;  %v230_v49 = vand.u32 2147483647, %v220_v43  ;;  %v211_v39 = vor.u32 1.1754944e-38, %v210_v52 }
  0xbb   :  { %846 = vrcp.f32 %v244_v58  ;;  %vm209_vm7 = vcmp.eq.f32.partialorder %v208_v47, 8.507059e+37  ;;  %vm226_vm8 = vweird.f32 %v220_v43  ;;  %v256_v52 = vand.u32 2147483648, %v244_v58 }
  0xbc   :  { %848 = vtanh.f32 %v236_v51  ;;  %vm231_vm10 = vcmp.eq.f32.partialorder %v230_v49, 8.507059e+37  ;;  %vm250_vm12 = vweird.f32 %v244_v58 }
  0xbe   :  { %v843_v42 = vpop.eup %842 }
  0xbf   :  { %v200_v59 = vmul.f32 %v843_v42, %v198_v55  ;;  %vm205_vm3 = vweird.f32 %v843_v42 }
  0xc0   :  { %v845_v50 = vpop.eup %844  ;;  %vm206_vm6 = vmor %vm204_vm4, %vm205_vm3 }
  0xc1   :  { %v847_v56 = vpop.eup %846  ;;  %v201_v62 = vsub.f32 1.0, %v200_v59  ;;  %v222_v60 = vmul.f32 %v845_v50, %v220_v43  ;;  %vm227_vm5 = vweird.f32 %v845_v50  ;;  %v257_v43 = vor.u32 1.1754944e-38, %v256_v52 }
  0xc2   :  { %v246_v63 = vmul.f32 %v847_v56, %v244_v58  ;;  %vm228_vm9 = vmor %vm226_vm8, %vm227_vm5  ;;  %vm251_vm11 = vweird.f32 %v847_v56 }
  0xc3   :  { %v202_v46 = vmul.f32 %v843_v42, %v201_v62  ;;  %v223_v54 = vsub.f32 1.0, %v222_v60  ;;  %v233_v62 = vor.u32 1.1754944e-38, %v232_v61  ;;  %v849_v60 = vpop.eup %848  ;;  %vm252_vm13 = vmor %vm250_vm12, %vm251_vm11 }
  0xc4   :  { %v247_v38 = vsub.f32 1.0, %v246_v63 }
  0xc5   :  { %v203_v48 = vadd.f32 %v843_v42, %v202_v46  ;;  %v224_v53 = vmul.f32 %v845_v50, %v223_v54 }
  0xc6   :  { %v248_v55 = vmul.f32 %v847_v56, %v247_v38  ;;  %v1726_v38 = vld [vmem:[#allocation31_spill] sm:$0xff] }
  0xc7   :  { %v207_v57 = vsel %vm206_vm6, %v843_v42, %v203_v48  ;;  %v225_v59 = vadd.f32 %v845_v50, %v224_v53  ;;  %v254_v42 = vand.u32 2147483647, %v244_v58 }
  0xc8   :  { %v212_v44 = vsel %vm209_vm7, %v211_v39, %v207_v57  ;;  %v249_v34 = vadd.f32 %v847_v56, %v248_v55 }
  0xc9   :  { %v229_v45 = vsel %vm228_vm9, %v845_v50, %v225_v59  ;;  %v261_v46 = vmul.f32 %v849_v60, %v212_v44  ;;  %vm255_vm14 = vcmp.eq.f32.partialorder %v254_v42, 8.507059e+37 }
  0xca   :  { %v234_v51 = vsel %vm231_vm10, %v233_v62, %v229_v45  ;;  %v253_v39 = vsel %vm252_vm13, %v847_v56, %v249_v34 }
  0xcb   :  { %v260_v35 = vmul.f32 0.0, %v234_v51  ;;  %v258_v49 = vsel %vm255_vm14, %v257_v43, %v253_v39 }
  0xcd   :  { %v1485_v54 = vadd.f32 %v261_v46, %v260_v35 }
  0xcf   :  { %850 = vtanh.f32 %v1485_v54 }
  0xd5   :  { %v851_v61 = vpop.eup %850 }
  0xd6   :  { %v264_v50 = vmul.f32 %v851_v61, %v258_v49 }
  0xd8   :  { %283 = vmatmul.f32.vlgmr.msrb.gmra.mxu0 %v264_v50  ;;  %303 = vmatmul.f32.vlgmr.msrb.gmra.mxu1 %v264_v50 }
  0xd9   :  { %323 = vmatmul.f32.vlgmr.msrb.gmra.mxu2 %v264_v50  ;;  %343 = vmatmul.f32.vlgmr.msrb.gmra.mxu3 %v264_v50 }
  0xda   :  { %597 = vmatpush.msrb.mxu0 %v1000_v7  ;;  %617 = vmatpush.msrb.mxu1 %v993_v6  ;;  %v1706_v6 = vld [vmem:[#allocation16_spill] sm:$0xff]  ;;  %v1707_v7 = vld [vmem:[#allocation15_spill] sm:$0xff] }
  0xdb   :  { %637 = vmatpush.msrb.mxu2 %v961_v0  ;;  %657 = vmatpush.msrb.mxu3 %v966_v1  ;;  %v1700_v0 = vld [vmem:[#allocation5_spill] sm:$0xff]  ;;  %v1701_v1 = vld [vmem:[#allocation6_spill] sm:$0xff] }
  0xdc   :  { %598 = vmatpush.msrb.mxu0 %v1022_v11  ;;  %618 = vmatpush.msrb.mxu1 %v1005_v8  ;;  %v1708_v8 = vld [vmem:[#allocation9_spill] sm:$0xff]  ;;  %v1711_v11 = vld [vmem:[#allocation19_spill] sm:$0xff] }
  0xdd   :  { %638 = vmatpush.msrb.mxu2 %v971_v2  ;;  %658 = vmatpush.msrb.mxu3 %v978_v3  ;;  %v1702_v2 = vld [vmem:[#allocation12_spill] sm:$0xff]  ;;  %v1703_v3 = vld [vmem:[#allocation11_spill] sm:$0xff] }
  0xde   :  { %599 = vmatpush.msrb.mxu0 %v1034_v13  ;;  %619 = vmatpush.msrb.mxu1 %v1029_v12  ;;  %v1712_v12 = vld [vmem:[#allocation13_spill] sm:$0xff]  ;;  %v1713_v13 = vld [vmem:[#allocation14_spill] sm:$0xff] }
  0xdf   :  { %639 = vmatpush.msrb.mxu2 %v983_v4  ;;  %659 = vmatpush.msrb.mxu3 %v988_v5  ;;  %v1704_v4 = vld [vmem:[#allocation7_spill] sm:$0xff]  ;;  %v1705_v5 = vld [vmem:[#allocation8_spill] sm:$0xff] }
  0xe0   :  { %600 = vmatpush.msrb.mxu0 %v1058_v17  ;;  %620 = vmatpush.msrb.mxu1 %v1053_v16  ;;  %v1716_v16 = vld [vmem:[#allocation17_spill] sm:$0xff]  ;;  %v1717_v17 = vld [vmem:[#allocation18_spill] sm:$0xff] }
  0xe1   :  { %640 = vmatpush.msrb.mxu2 %v1011_v9  ;;  %660 = vmatpush.msrb.mxu3 %v1016_v10  ;;  %v1709_v9 = vld [vmem:[#allocation10_spill] sm:$0xff]  ;;  %v1710_v10 = vld [vmem:[#allocation20_spill] sm:$0xff] }
  0xe2   :  { %601 = vmatpush.msrb.mxu0 %v1082_v21  ;;  %621 = vmatpush.msrb.mxu1 %v1077_v20  ;;  %v1720_v20 = vld [vmem:[#allocation21_spill] sm:$0xff]  ;;  %v1721_v21 = vld [vmem:[#allocation22_spill] sm:$0xff] }
  0xe3   :  { %641 = vmatpush.msrb.mxu2 %v1040_v14  ;;  %661 = vmatpush.msrb.mxu3 %v1045_v15  ;;  %v1714_v14 = vld [vmem:[#allocation24_spill] sm:$0xff]  ;;  %v1715_v15 = vld [vmem:[#allocation23_spill] sm:$0xff] }
  0xe4   :  { %602 = vmatpush.msrb.mxu0 %v1106_v25  ;;  %622 = vmatpush.msrb.mxu1 %v1101_v24  ;;  %v1724_v24 = vld [vmem:[#allocation25_spill] sm:$0xff]  ;;  %v1725_v25 = vld [vmem:[#allocation26_spill] sm:$0xff] }
  0xe5   :  { %642 = vmatpush.msrb.mxu2 %v1064_v18  ;;  %662 = vmatpush.msrb.mxu3 %v1069_v19  ;;  %v1718_v18 = vld [vmem:[#allocation28_spill] sm:$0xff]  ;;  %v1719_v19 = vld [vmem:[#allocation27_spill] sm:$0xff] }
  0xe6   :  { %603 = vmatpush.msrb.mxu0 %v1130_v29  ;;  %623 = vmatpush.msrb.mxu1 %v1125_v28 }
  0xe7   :  { %643 = vmatpush.msrb.mxu2 %v1088_v22  ;;  %663 = vmatpush.msrb.mxu3 %v1093_v23  ;;  %v1722_v22 = vld [vmem:[#allocation30_spill] sm:$0xff]  ;;  %v1723_v23 = vld [vmem:[#allocation29_spill] sm:$0xff] }
  0xe8   :  { %604 = vmatpush.msrb.mxu0 %v1154_v33  ;;  %624 = vmatpush.msrb.mxu1 %v1149_v32  ;;  %v821_v33 = vld [vmem:[%s1636_s0 + $0x8] sm:$0xff] }
  0xe9   :  { %644 = vmatpush.msrb.mxu2 %v1112_v26  ;;  %664 = vmatpush.msrb.mxu3 %v1117_v27 }
  0xea   :  { %605 = vmatpush.msrb.mxu0 %v1178_v37  ;;  %625 = vmatpush.msrb.mxu1 %v1173_v36 }
  0xeb   :  { %645 = vmatpush.msrb.mxu2 %v1136_v30  ;;  %665 = vmatpush.msrb.mxu3 %v1141_v31 }
  0xec   :  { %606 = vmatpush.msrb.mxu0 %v1202_v41  ;;  %626 = vmatpush.msrb.mxu1 %v1197_v40 }
  0xed   :  { %646 = vmatpush.msrb.mxu2 %v1700_v0  ;;  %666 = vmatpush.msrb.mxu3 %v1701_v1 }
  0xee   :  { %607 = vmatpush.msrb.mxu0 %v1702_v2  ;;  %627 = vmatpush.msrb.mxu1 %v1703_v3 }
  0xef   :  { %647 = vmatpush.msrb.mxu2 %v1704_v4  ;;  %667 = vmatpush.msrb.mxu3 %v1705_v5 }
  0xf0   :  { %608 = vmatpush.msrb.mxu0 %v1706_v6  ;;  %628 = vmatpush.msrb.mxu1 %v1707_v7 }
  0xf1   :  { %648 = vmatpush.msrb.mxu2 %v1708_v8  ;;  %668 = vmatpush.msrb.mxu3 %v1709_v9 }
  0xf2   :  { %609 = vmatpush.msrb.mxu0 %v1710_v10  ;;  %629 = vmatpush.msrb.mxu1 %v1711_v11 }
  0xf3   :  { %649 = vmatpush.msrb.mxu2 %v1712_v12  ;;  %669 = vmatpush.msrb.mxu3 %v1713_v13 }
  0xf4   :  { %610 = vmatpush.msrb.mxu0 %v1714_v14  ;;  %630 = vmatpush.msrb.mxu1 %v1715_v15 }
  0xf5   :  { %650 = vmatpush.msrb.mxu2 %v1716_v16  ;;  %670 = vmatpush.msrb.mxu3 %v1717_v17 }
  0xf6   :  { %611 = vmatpush.msrb.mxu0 %v1718_v18  ;;  %631 = vmatpush.msrb.mxu1 %v1719_v19 }
  0xf7   :  { %651 = vmatpush.msrb.mxu2 %v1720_v20  ;;  %671 = vmatpush.msrb.mxu3 %v1721_v21 }
  0xf8   :  { %612 = vmatpush.msrb.mxu0 %v1722_v22  ;;  %632 = vmatpush.msrb.mxu1 %v1723_v23 }
  0xf9   :  { %652 = vmatpush.msrb.mxu2 %v1724_v24  ;;  %672 = vmatpush.msrb.mxu3 %v1725_v25 }
 0x155   :  { %v304_v26 = vpop.f32.mrf.mxu1  ;;  %v284_v32 = vpop.f32.mrf.mxu0 }
 0x156   :  { %v351_v27 = vrot.slane %v304_v26, 6 }
 0x158   :  { %v354_v34 = vsel %vm174_vm0, %v284_v32, %v351_v27 }
 0x15c   :  { %v324_v28 = vpop.f32.mrf.mxu2  ;;  %v344_v29 = vpop.f32.mrf.mxu3 }
 0x15d   :  { %v352_v30 = vrot.slane %v324_v28, 4  ;;  %v353_v31 = vrot.slane %v344_v29, 2 }
 0x15f   :  { %v355_v35 = vsel %vm176_vm1, %v352_v30, %v353_v31  ;;  %v825_v31 = vld [vmem:[%s1636_s0 + $0x10] sm:$0xff] }
 0x160   :  { %v356_v36 = vsel %vm178_vm2, %v354_v34, %v355_v35 }
 0x161   :  { %v358_v37 = vadd.f32 %v821_v33, %v356_v36 }
 0x163   :  { %v359_v40 = vadd.f32 %v358_v37, %v1726_v38 }
 0x165   :  { %v822_v41 = vmul.f32 -1.442695, %v359_v40  ;;  %v380_v44 = vrot.slane %v359_v40, 2  ;;  %v404_v45 = vrot.slane %v359_v40, 6  ;;  %v401_v55 = vrot.slane %v359_v40, 4 }
 0x167   :  { %852 = vpow2.f32 %v822_v41  ;;  %v823_v58 = vmul.f32 -1.442695, %v380_v44  ;;  %v824_v56 = vmul.f32 -1.442695, %v404_v45 }
 0x169   :  { %854 = vpow2.f32 %v823_v58 }
 0x16a   :  { %856 = vpow2.f32 %v824_v56 }
 0x16d   :  { %v853_v63 = vpop.eup %852 }
 0x16e   :  { %v363_v47 = vadd.f32 1.0, %v853_v63 }
 0x16f   :  { %v855_v48 = vpop.eup %854 }
 0x170   :  { %v857_v53 = vpop.eup %856  ;;  %858 = vrcp.f32 %v363_v47  ;;  %v385_v57 = vadd.f32 1.0, %v855_v48  ;;  %v375_v39 = vand.u32 2147483648, %v363_v47  ;;  %v373_v49 = vand.u32 2147483647, %v363_v47 }
 0x171   :  { %v409_v59 = vadd.f32 1.0, %v857_v53  ;;  %vm369_vm3 = vweird.f32 %v363_v47 }
 0x172   :  { %860 = vrcp.f32 %v385_v57  ;;  %v397_v0 = vand.u32 2147483648, %v385_v57  ;;  %v395_v3 = vand.u32 2147483647, %v385_v57  ;;  %v376_v4 = vor.u32 1.1754944e-38, %v375_v39 }
 0x173   :  { %862 = vrcp.f32 %v409_v59  ;;  %vm374_vm6 = vcmp.eq.f32.partialorder %v373_v49, 8.507059e+37  ;;  %vm391_vm7 = vweird.f32 %v385_v57  ;;  %v421_v18 = vand.u32 2147483648, %v409_v59 }
 0x174   :  { %864 = vtanh.f32 %v401_v55  ;;  %v398_v9 = vor.u32 1.1754944e-38, %v397_v0  ;;  %vm396_vm9 = vcmp.eq.f32.partialorder %v395_v3, 8.507059e+37  ;;  %vm415_vm11 = vweird.f32 %v409_v59 }
 0x175   :  { %v419_v19 = vand.u32 2147483647, %v409_v59  ;;  %v422_v21 = vor.u32 1.1754944e-38, %v421_v18 }
 0x176   :  { %v859_v62 = vpop.eup %858 }
 0x177   :  { %v365_v60 = vmul.f32 %v859_v62, %v363_v47  ;;  %vm370_vm15 = vweird.f32 %v859_v62  ;;  %vm420_vm13 = vcmp.eq.f32.partialorder %v419_v19, 8.507059e+37 }
 0x178   :  { %v861_v51 = vpop.eup %860  ;;  %vm371_vm5 = vmor %vm369_vm3, %vm370_vm15 }
 0x179   :  { %v863_v46 = vpop.eup %862  ;;  %v366_v52 = vsub.f32 1.0, %v365_v60  ;;  %v387_v42 = vmul.f32 %v861_v51, %v385_v57  ;;  %vm392_vm4 = vweird.f32 %v861_v51 }
 0x17a   :  { %v411_v43 = vmul.f32 %v863_v46, %v409_v59  ;;  %vm393_vm8 = vmor %vm391_vm7, %vm392_vm4  ;;  %v865_v11 = vpop.eup %864  ;;  %vm416_vm10 = vweird.f32 %v863_v46 }
 0x17b   :  { %v367_v61 = vmul.f32 %v859_v62, %v366_v52  ;;  %v388_v50 = vsub.f32 1.0, %v387_v42  ;;  %vm417_vm12 = vmor %vm415_vm11, %vm416_vm10 }
 0x17c   :  { %v412_v5 = vsub.f32 1.0, %v411_v43 }
 0x17d   :  { %v368_v1 = vadd.f32 %v859_v62, %v367_v61  ;;  %v389_v2 = vmul.f32 %v861_v51, %v388_v50 }
 0x17e   :  { %v413_v13 = vmul.f32 %v863_v46, %v412_v5 }
 0x17f   :  { %v372_v6 = vsel %vm371_vm5, %v859_v62, %v368_v1  ;;  %v390_v7 = vadd.f32 %v861_v51, %v389_v2 }
 0x180   :  { %v377_v8 = vsel %vm374_vm6, %v376_v4, %v372_v6  ;;  %v414_v17 = vadd.f32 %v863_v46, %v413_v13 }
 0x181   :  { %v394_v10 = vsel %vm393_vm8, %v861_v51, %v390_v7  ;;  %v426_v15 = vmul.f32 %v865_v11, %v377_v8 }
 0x182   :  { %v399_v12 = vsel %vm396_vm9, %v398_v9, %v394_v10  ;;  %v418_v20 = vsel %vm417_vm12, %v863_v46, %v414_v17 }
 0x183   :  { %v425_v14 = vmul.f32 %v399_v12, %v1485_v54  ;;  %v423_v23 = vsel %vm420_vm13, %v422_v21, %v418_v20 }
 0x185   :  { %v1560_v16 = vadd.f32 %v426_v15, %v425_v14 }
 0x187   :  { %866 = vtanh.f32 %v1560_v16 }
 0x18d   :  { %v867_v22 = vpop.eup %866 }
 0x18e   :  { %v429_v24 = vmul.f32 %v867_v22, %v423_v23 }
 0x190   :  { %448 = vmatmul.f32.vlgmr.msra.gmra.mxu0 %v429_v24  ;;  %468 = vmatmul.f32.vlgmr.msra.gmra.mxu1 %v429_v24 }
 0x191   :  { %488 = vmatmul.f32.vlgmr.msra.gmra.mxu2 %v429_v24  ;;  %508 = vmatmul.f32.vlgmr.msra.gmra.mxu3 %v429_v24  ;;  %v774_v24 = vld [vmem:[%s1639_s3 + $0x70] sm:$0xff] }
 0x20d   :  { %v469_v54 = vpop.f32.mrf.mxu1  ;;  %v449_v30 = vpop.f32.mrf.mxu0 }
 0x20e   :  { %v516_v25 = vrot.slane %v469_v54, 6  ;;  %v773_v54 = vld [vmem:[%s1639_s3 + $0x68] sm:$0xff] }
 0x210   :  { %v519_v32 = vsel %vm174_vm0, %v449_v30, %v516_v25  ;;  %v772_v25 = vld [vmem:[%s1639_s3 + $0x60] sm:$0xff]  ;;  %v769_v30 = vld [vmem:[%s1639_s3 + $0x48] sm:$0xff] }
 0x214   :  { %v489_v26 = vpop.f32.mrf.mxu2  ;;  %v509_v27 = vpop.f32.mrf.mxu3 }
 0x215   :  { %v517_v28 = vrot.slane %v489_v26, 4  ;;  %v518_v29 = vrot.slane %v509_v27, 2  ;;  %v771_v26 = vld [vmem:[%s1639_s3 + $0x58] sm:$0xff] }
 0x217   :  { %v520_v33 = vsel %vm176_vm1, %v517_v28, %v518_v29  ;;  %v770_v28 = vld [vmem:[%s1639_s3 + $0x50] sm:$0xff] }
 0x218   :  { %v521_v34 = vsel %vm178_vm2, %v519_v32, %v520_v33 }
 0x219   :  { %v523_v35 = vadd.f32 %v825_v31, %v521_v34 }
 0x21b   :  { %v524_v36 = vadd.f32 %v523_v35, %v1726_v38  ;;  %v768_v35 = vld [vmem:[%s1639_s3 + $0x40] sm:$0xff] }
 0x21d   :  { %v826_v37 = vmul.f32 -1.442695, %v524_v36  ;;  %v545_v40 = vrot.slane %v524_v36, 2  ;;  %v569_v41 = vrot.slane %v524_v36, 6  ;;  %v566_v60 = vrot.slane %v524_v36, 4 }
 0x21f   :  { %868 = vpow2.f32 %v826_v37  ;;  %v827_v44 = vmul.f32 -1.442695, %v545_v40  ;;  %v828_v45 = vmul.f32 -1.442695, %v569_v41  ;;  %v829_v37 = vld [vmem:[%s1636_s0 + $0x18] sm:$0xff] }
 0x221   :  { %870 = vpow2.f32 %v827_v44  ;;  %v767_v44 = vld [vmem:[%s1639_s3 + $0x38] sm:$0xff] }
 0x222   :  { %872 = vpow2.f32 %v828_v45 }
 0x225   :  { %v869_v58 = vpop.eup %868 }
 0x226   :  { %v528_v56 = vadd.f32 1.0, %v869_v58 }
 0x227   :  { %v871_v63 = vpop.eup %870 }
 0x228   :  { %v873_v47 = vpop.eup %872  ;;  %874 = vrcp.f32 %v528_v56  ;;  %v550_v48 = vadd.f32 1.0, %v871_v63  ;;  %v540_v52 = vand.u32 2147483648, %v528_v56  ;;  %v538_v43 = vand.u32 2147483647, %v528_v56 }
 0x229   :  { %v574_v53 = vadd.f32 1.0, %v873_v47  ;;  %vm534_vm15 = vweird.f32 %v528_v56  ;;  %v765_v47 = vld [vmem:[%s1639_s3 + $0x28] sm:$0xff] }
 0x22a   :  { %876 = vrcp.f32 %v550_v48  ;;  %v562_v49 = vand.u32 2147483648, %v550_v48  ;;  %v560_v1 = vand.u32 2147483647, %v550_v48  ;;  %v541_v2 = vor.u32 1.1754944e-38, %v540_v52  ;;  %v760_v52 = vld [vmem:[%s1639_s3] sm:$0xff] }
 0x22b   :  { %878 = vrcp.f32 %v574_v53  ;;  %vm539_vm5 = vcmp.eq.f32.partialorder %v538_v43, 8.507059e+37  ;;  %vm556_vm6 = vweird.f32 %v550_v48  ;;  %v586_v17 = vand.u32 2147483648, %v574_v53 }
 0x22c   :  { %880 = vtanh.f32 %v566_v60  ;;  %v563_v7 = vor.u32 1.1754944e-38, %v562_v49  ;;  %vm561_vm8 = vcmp.eq.f32.partialorder %v560_v1, 8.507059e+37  ;;  %vm580_vm10 = vweird.f32 %v574_v53 }
 0x22d   :  { %v584_v18 = vand.u32 2147483647, %v574_v53  ;;  %v587_v20 = vor.u32 1.1754944e-38, %v586_v17 }
 0x22e   :  { %v875_v57 = vpop.eup %874 }
 0x22f   :  { %v530_v59 = vmul.f32 %v875_v57, %v528_v56  ;;  %vm535_vm14 = vweird.f32 %v875_v57  ;;  %vm585_vm12 = vcmp.eq.f32.partialorder %v584_v18, 8.507059e+37  ;;  %v766_v56 = vld [vmem:[%s1639_s3 + $0x30] sm:$0xff] }
 0x230   :  { %v877_v62 = vpop.eup %876  ;;  %vm536_vm4 = vmor %vm534_vm15, %vm535_vm14 }
 0x231   :  { %v879_v51 = vpop.eup %878  ;;  %v531_v55 = vsub.f32 1.0, %v530_v59  ;;  %v552_v46 = vmul.f32 %v877_v62, %v550_v48  ;;  %vm557_vm3 = vweird.f32 %v877_v62  ;;  %v764_v59 = vld [vmem:[%s1639_s3 + $0x20] sm:$0xff] }
 0x232   :  { %v576_v42 = vmul.f32 %v879_v51, %v574_v53  ;;  %vm558_vm7 = vmor %vm556_vm6, %vm557_vm3  ;;  %v881_v9 = vpop.eup %880  ;;  %vm581_vm9 = vweird.f32 %v879_v51 }
 0x233   :  { %v532_v39 = vmul.f32 %v875_v57, %v531_v55  ;;  %v553_v61 = vsub.f32 1.0, %v552_v46  ;;  %vm582_vm11 = vmor %vm580_vm10, %vm581_vm9  ;;  %v761_v55 = vld [vmem:[%s1639_s3 + $0x8] sm:$0xff]  ;;  %vm800_vm9 = vcmask 74752  }
 0x234   :  { %v577_v3 = vsub.f32 1.0, %v576_v42 }
 0x235   :  { %v533_v50 = vadd.f32 %v875_v57, %v532_v39  ;;  %v554_v0 = vmul.f32 %v877_v62, %v553_v61 }
 0x236   :  { %v578_v11 = vmul.f32 %v879_v51, %v577_v3 }
 0x237   :  { %v537_v4 = vsel %vm536_vm4, %v875_v57, %v533_v50  ;;  %v555_v5 = vadd.f32 %v877_v62, %v554_v0 }
 0x238   :  { %v542_v6 = vsel %vm539_vm5, %v541_v2, %v537_v4  ;;  %v579_v15 = vadd.f32 %v879_v51, %v578_v11 }
 0x239   :  { %v559_v8 = vsel %vm558_vm7, %v877_v62, %v555_v5  ;;  %v591_v13 = vmul.f32 %v881_v9, %v542_v6 }
 0x23a   :  { %v564_v10 = vsel %vm561_vm8, %v563_v7, %v559_v8  ;;  %v583_v19 = vsel %vm582_vm11, %v879_v51, %v579_v15  ;;  %v762_v51 = vld [vmem:[%s1639_s3 + $0x10] sm:$0xff] }
 0x23b   :  { %v590_v12 = vmul.f32 %v564_v10, %v1560_v16  ;;  %v588_v22 = vsel %vm585_vm12, %v587_v20, %v583_v19  ;;  %v775_v16 = vld [vmem:[%s1639_s3 + $0x78] sm:$0xff] }
 0x23c   :  { %780 = vmatpush.msra.mxu0 %v775_v16 }
 0x23d   :  { %v1571_v14 = vadd.f32 %v591_v13, %v590_v12 }
 0x23e   :  { %781 = vmatpush.msra.mxu0 %v774_v24 }
 0x23f   :  { %882 = vtanh.f32 %v1571_v14 }
 0x240   :  { %782 = vmatpush.msra.mxu0 %v773_v54 }
 0x242   :  { %783 = vmatpush.msra.mxu0 %v772_v25 }
 0x244   :  { %784 = vmatpush.msra.mxu0 %v771_v26 }
 0x245   :  { %v883_v21 = vpop.eup %882 }
 0x246   :  { %v594_v23 = vmul.f32 %v883_v21, %v588_v22  ;;  %785 = vmatpush.msra.mxu0 %v770_v28 }
 0x248   :  { %613 = vmatmul.f32.vlgmr.msrb.gmra.mxu0 %v594_v23  ;;  %633 = vmatmul.f32.vlgmr.msrb.gmra.mxu1 %v594_v23 }
 0x249   :  { %653 = vmatmul.f32.vlgmr.msrb.gmra.mxu2 %v594_v23  ;;  %673 = vmatmul.f32.vlgmr.msrb.gmra.mxu3 %v594_v23 }
 0x24a   :  { %786 = vmatpush.msra.mxu0 %v769_v30 }
 0x24c   :  { %787 = vmatpush.msra.mxu0 %v768_v35 }
 0x24e   :  { %788 = vmatpush.msra.mxu0 %v767_v44 }
 0x250   :  { %789 = vmatpush.msra.mxu0 %v766_v56 }
 0x252   :  { %790 = vmatpush.msra.mxu0 %v765_v47 }
 0x254   :  { %791 = vmatpush.msra.mxu0 %v764_v59 }
 0x2c5   :  { %v634_v27 = vpop.f32.mrf.mxu1  ;;  %v614_v36 = vpop.f32.mrf.mxu0 }
 0x2c6   :  { %v681_v29 = vrot.slane %v634_v27, 6 }
 0x2c8   :  { %v684_v40 = vsel %vm174_vm0, %v614_v36, %v681_v29 }
 0x2cc   :  { %v654_v31 = vpop.f32.mrf.mxu2  ;;  %v674_v32 = vpop.f32.mrf.mxu3 }
 0x2cd   :  { %v682_v33 = vrot.slane %v654_v31, 4  ;;  %v683_v34 = vrot.slane %v674_v32, 2 }
 0x2cf   :  { %v685_v41 = vsel %vm176_vm1, %v682_v33, %v683_v34 }
 0x2d0   :  { %v686_v45 = vsel %vm178_vm2, %v684_v40, %v685_v41 }
 0x2d1   :  { %v688_v58 = vadd.f32 %v829_v37, %v686_v45 }
 0x2d3   :  { %v689_v63 = vadd.f32 %v688_v58, %v1726_v38  ;;  %v763_v38 = vld [vmem:[%s1639_s3 + $0x18] sm:$0xff] }
 0x2d4   :  { %792 = vmatpush.msra.mxu0 %v763_v38 }
 0x2d5   :  { %v830_v48 = vmul.f32 -1.442695, %v689_v63  ;;  %v710_v53 = vrot.slane %v689_v63, 2  ;;  %v734_v57 = vrot.slane %v689_v63, 6  ;;  %v731_v2 = vrot.slane %v689_v63, 4 }
 0x2d6   :  { %793 = vmatpush.msra.mxu0 %v762_v51 }
 0x2d7   :  { %884 = vpow2.f32 %v830_v48  ;;  %v831_v62 = vmul.f32 -1.442695, %v710_v53  ;;  %v832_v60 = vmul.f32 -1.442695, %v734_v57 }
 0x2d8   :  { %794 = vmatpush.msra.mxu0 %v761_v55 }
 0x2d9   :  { %886 = vpow2.f32 %v831_v62 }
 0x2da   :  { %888 = vpow2.f32 %v832_v60  ;;  %795 = vmatpush.msra.mxu0 %v760_v52 }
 0x2dd   :  { %v885_v46 = vpop.eup %884 }
 0x2de   :  { %v693_v42 = vadd.f32 1.0, %v885_v46 }
 0x2df   :  { %v887_v39 = vpop.eup %886 }
 0x2e0   :  { %v889_v43 = vpop.eup %888  ;;  %890 = vrcp.f32 %v693_v42  ;;  %v715_v61 = vadd.f32 1.0, %v887_v39  ;;  %v705_v6 = vand.u32 2147483648, %v693_v42  ;;  %v703_v9 = vand.u32 2147483647, %v693_v42 }
 0x2e1   :  { %v739_v49 = vadd.f32 1.0, %v889_v43  ;;  %vm699_vm1 = vweird.f32 %v693_v42 }
 0x2e2   :  { %892 = vrcp.f32 %v715_v61  ;;  %v727_v11 = vand.u32 2147483648, %v715_v61  ;;  %v725_v15 = vand.u32 2147483647, %v715_v61  ;;  %v706_v17 = vor.u32 1.1754944e-38, %v705_v6 }
 0x2e3   :  { %894 = vrcp.f32 %v739_v49  ;;  %vm704_vm14 = vcmp.eq.f32.partialorder %v703_v9, 8.507059e+37  ;;  %vm721_vm15 = vweird.f32 %v715_v61  ;;  %v751_v29 = vand.u32 2147483648, %v739_v49 }
 0x2e4   :  { %896 = vtanh.f32 %v731_v2  ;;  %v728_v22 = vor.u32 1.1754944e-38, %v727_v11  ;;  %vm726_vm4 = vcmp.eq.f32.partialorder %v725_v15, 8.507059e+37  ;;  %vm745_vm6 = vweird.f32 %v739_v49 }
 0x2e5   :  { %v749_v30 = vand.u32 2147483647, %v739_v49  ;;  %v752_v32 = vor.u32 1.1754944e-38, %v751_v29 }
 0x2e6   :  { %v891_v50 = vpop.eup %890 }
 0x2e7   :  { %v695_v0 = vmul.f32 %v891_v50, %v693_v42  ;;  %vm700_vm0 = vweird.f32 %v891_v50  ;;  %vm750_vm8 = vcmp.eq.f32.partialorder %v749_v30, 8.507059e+37 }
 0x2e8   :  { %v893_v1 = vpop.eup %892  ;;  %vm701_vm13 = vmor %vm699_vm1, %vm700_vm0 }
 0x2e9   :  { %v895_v3 = vpop.eup %894  ;;  %v696_v4 = vsub.f32 1.0, %v695_v0  ;;  %v717_v5 = vmul.f32 %v893_v1, %v715_v61  ;;  %vm722_vm2 = vweird.f32 %v893_v1 }
 0x2ea   :  { %v741_v7 = vmul.f32 %v895_v3, %v739_v49  ;;  %vm723_vm3 = vmor %vm721_vm15, %vm722_vm2  ;;  %v897_v16 = vpop.eup %896  ;;  %vm746_vm5 = vweird.f32 %v895_v3 }
 0x2eb   :  { %v697_v8 = vmul.f32 %v891_v50, %v696_v4  ;;  %v718_v10 = vsub.f32 1.0, %v717_v5  ;;  %vm747_vm7 = vmor %vm745_vm6, %vm746_vm5 }
 0x2ec   :  { %v742_v18 = vsub.f32 1.0, %v741_v7 }
 0x2ed   :  { %v698_v12 = vadd.f32 %v891_v50, %v697_v8  ;;  %v719_v13 = vmul.f32 %v893_v1, %v718_v10 }
 0x2ee   :  { %v743_v54 = vmul.f32 %v895_v3, %v742_v18 }
 0x2ef   :  { %v702_v19 = vsel %vm701_vm13, %v891_v50, %v698_v12  ;;  %v720_v20 = vadd.f32 %v893_v1, %v719_v13 }
 0x2f0   :  { %v707_v21 = vsel %vm704_vm14, %v706_v17, %v702_v19  ;;  %v744_v28 = vadd.f32 %v895_v3, %v743_v54 }
 0x2f1   :  { %v724_v23 = vsel %vm723_vm3, %v893_v1, %v720_v20  ;;  %v756_v26 = vmul.f32 %v897_v16, %v707_v21 }
 0x2f2   :  { %v729_v24 = vsel %vm726_vm4, %v728_v22, %v724_v23  ;;  %v748_v31 = vsel %vm747_vm7, %v895_v3, %v744_v28 }
 0x2f3   :  { %v755_v25 = vmul.f32 %v729_v24, %v1571_v14  ;;  %v753_v34 = vsel %vm750_vm8, %v752_v32, %v748_v31  ;;  %v835_v14 = vld [vmem:[%s1640_s4] ss:$0 sm:$0xff] }
 0x2f5   :  { %v757_v27 = vadd.f32 %v756_v26, %v755_v25 }
 0x2f7   :  { %898 = vtanh.f32 %v757_v27 }
 0x2fd   :  { %v899_v33 = vpop.eup %898 }
 0x2fe   :  { %v759_v35 = vmul.f32 %v899_v33, %v753_v34 }
 0x300   :  { %796 = vmatmul.f32.vlgmr.msra.gmra.mxu0 %v759_v35 }
 0x37d   :  { %v797_v36 = vpop.f32.mrf.mxu0 }
 0x37e   :  { %v798_v37 = vadd.f32 %v835_v14, %v797_v36 }
 0x380   :  { %801 = vst.msk [vmem:[#allocation2] sm:$0x3] %vm800_vm9, %v798_v37 }
 0x381   :  { %812 = dma.vmem_to_hbm [thread:$0]  %s808_s10, 32, %s810_s13, [#allocation3]  }
 0x382   :  { %924 = dma.done.wait [#allocation3], 32  }
 0x383   :  { %925 = vsyncadd [#allocation3], 4294967264 }
 0x384   :  { %817 = vsyncpa [#allocation3], 1 }

</bundles_post_ra>
